<compile_context>
chip_gen: v5e
topology: v5e:2x2
jax: 0.10.0
libtpu: 0.0.40
codegen_flags: <defaults>
</compile_context>

<pallas_src>
import numpy as np

import jax
import jax.numpy as jnp
from jax.experimental import pallas as pl
from jax.experimental.pallas import tpu as pltpu


# ---------------------------------------------------------------------------
# Host-side constant construction (done once at parameter-prep time)
# ---------------------------------------------------------------------------
def _round_up(x, k):
    return (x + k - 1) // k * k


def _resize_matrix(in_size, out_size, align_corners):
    """R (out, in): bilinear resize weights matching PyTorch F.interpolate."""
    m = np.zeros((out_size, in_size), np.float32)
    for o in range(out_size):
        if align_corners:
            src = 0.0 if out_size == 1 else o * (in_size - 1) / (out_size - 1)
        else:
            src = (o + 0.5) * (in_size / out_size) - 0.5
            src = max(src, 0.0)                 # PyTorch clamps negatives
        i0 = min(int(np.floor(src)), in_size - 1)
        i1 = min(i0 + 1, in_size - 1)
        w1 = src - i0
        m[o, i0] += 1.0 - w1
        m[o, i1] += w1
    return m


def _reflect_shift_matrix(size, delta):
    """S (size, size) 0/1: (X @ S)[:, j] = X[:, reflect(j + delta)]."""
    s = np.zeros((size, size), np.float32)
    for j in range(size):
        k = j + delta
        if k < 0:
            k = -k
        if k > size - 1:
            k = 2 * (size - 1) - k
        s[k, j] = 1.0
    return s


def init_params(key, in_size, out_size):
    """Raw PyTorch-style parameters for DecodingBlock(in_size, out_size)."""
    def conv_init(k, cout, cin, ksz):
        fan_in = cin * ksz * ksz
        bound = 1.0 / float(fan_in) ** 0.5
        kw, kb = jax.random.split(k)
        w = jax.random.uniform(kw, (cout, cin, ksz, ksz), jnp.float32,
                               -bound, bound)
        b = jax.random.uniform(kb, (cout,), jnp.float32, -bound, bound)
        return w, b

    k_up, k1, k2 = jax.random.split(key, 3)
    w_up, b_up = conv_init(k_up, out_size, in_size, 1)   # self.up 1x1 conv
    w1, b1 = conv_init(k1, out_size, in_size, 3)         # EncodingBlock conv1
    w2, b2 = conv_init(k2, out_size, out_size, 3)        # EncodingBlock conv2
    return dict(w_up=w_up, b_up=b_up,
                w1=w1, b1=b1, a1=jnp.asarray(0.25, jnp.float32),
                w2=w2, b2=b2, a2=jnp.asarray(0.25, jnp.float32))


def prepare_params(raw, in1_shape, in2_shape):
    """Fold resize/reflection structure into constant matmul operands."""
    c1, h1, w1 = in1_shape
    c2, h2, w2 = in2_shape
    ho, wo = 2 * h2, 2 * w2
    cout = raw["w_up"].shape[0]

    # Separable bilinear blends as matrices; kron -> act on flattened H*W.
    rh2 = _resize_matrix(h2, ho, align_corners=False)
    rw2 = _resize_matrix(w2, wo, align_corners=False)
    rh1 = _resize_matrix(h1, ho, align_corners=True)
    rw1 = _resize_matrix(w1, wo, align_corners=True)
    u2t = np.kron(rh2, rw2).T.astype(np.float32)          # (h2*w2, ho*wo)
    u1t = np.kron(rh1, rw1).T.astype(np.float32)          # (h1*w1, ho*wo)

    # Pad the skip-path contraction dim to a lane multiple (zeros -> exact).
    k1 = _round_up(h1 * w1, 128)
    u1t = np.pad(u1t, ((0, k1 - h1 * w1), (0, 0)))

    # Reflection-padded 3x3 tap shifts: G_t = S_row(dy-1) kron S_col(dx-1).
    srow = [_reflect_shift_matrix(ho, d) for d in (-1, 0, 1)]
    scol = [_reflect_shift_matrix(wo, d) for d in (-1, 0, 1)]
    g = np.stack([np.kron(srow[dy], scol[dx])
                  for dy in range(3) for dx in range(3)]).astype(np.float32)

    # 3x3 weights as per-tap (Cout, Cin) channel mixers, t = dy*3 + dx.
    w1_taps = jnp.transpose(raw["w1"], (2, 3, 0, 1)).reshape(9, cout, c1 + cout)
    w2_taps = jnp.transpose(raw["w2"], (2, 3, 0, 1)).reshape(9, cout, cout)

    return dict(
        u1t=jnp.asarray(u1t, jnp.bfloat16),               # (k1, M)
        u2t=jnp.asarray(u2t, jnp.bfloat16),               # (h2*w2, M)
        g=jnp.asarray(g, jnp.bfloat16),                   # (9, M, M), 0/1
        w_up=raw["w_up"][:, :, 0, 0].astype(jnp.float32), # (Cout, Cin2)
        b_up=raw["b_up"].reshape(cout, 1).astype(jnp.float32),
        w1=w1_taps.astype(jnp.float32),                   # (9, Cout, C1+Cout)
        b1=raw["b1"].reshape(cout, 1).astype(jnp.float32),
        w2=w2_taps.astype(jnp.float32),                   # (9, Cout, Cout)
        b2=raw["b2"].reshape(cout, 1).astype(jnp.float32),
        alphas=jnp.stack([raw["a1"], raw["a2"]]).astype(jnp.float32),  # SMEM
    )


# ---------------------------------------------------------------------------
# The fused Pallas kernel: one grid step == one batch element
# ---------------------------------------------------------------------------
def _decoding_block_kernel(x1_ref, x2_ref, u1t_ref, u2t_ref, wup_ref, bup_ref,
                           w1_ref, b1_ref, w2_ref, b2_ref, g_ref, alpha_ref,
                           out_ref, cat_ref):
    f32 = jnp.float32
    bf16 = jnp.bfloat16
    cout = out_ref.shape[1]
    m = out_ref.shape[2]                       # flattened H*W (lane-dense)

    # --- "up" branch: 1x1 conv folded before the separable bilinear-x2 blend
    wx2 = jnp.dot(wup_ref[...], x2_ref[0], preferred_element_type=f32)
    out2 = (jnp.dot(wx2.astype(bf16), u2t_ref[...], preferred_element_type=f32)
            + bup_ref[...])                                       # (Cout, M)

    # --- skip branch: align_corners=True bilinear resize as one matmul
    out1 = jnp.dot(x1_ref[0].astype(bf16), u1t_ref[...],
                   preferred_element_type=f32)                    # (C1, M)

    # --- channel concat (rows of the (C1+Cout, M) VMEM scratch)
    c_skip = out1.shape[0]
    cat_ref[0:c_skip, :] = out1
    cat_ref[c_skip:c_skip + cout, :] = out2

    # --- reflection-padded 3x3 conv + bias + PReLU, as 9 tap dots vs. G_t
    def conv3x3_prelu(x, w_taps, b_col, alpha):
        acc = jnp.zeros((cout, m), f32)
        for t in range(9):                     # static unroll: 3x3 taps
            wx = jnp.dot(w_taps[t], x, preferred_element_type=f32)
            acc = acc + jnp.dot(wx.astype(bf16), g_ref[t],
                                preferred_element_type=f32)
        y = acc + b_col[...]
        return jnp.where(y > 0, y, alpha * y)

    y = conv3x3_prelu(cat_ref[...], w1_ref, b1_ref, alpha_ref[0])
    y = conv3x3_prelu(y, w2_ref, b2_ref, alpha_ref[1])
    out_ref[0] = y.astype(out_ref.dtype)


def decoding_block_apply(prep, input1, input2):
    """DecodingBlock forward; inputs/outputs are NCHW like the PyTorch module."""
    n, c1, h1, w1 = input1.shape
    _, c2, h2, w2 = input2.shape
    cout = prep["w_up"].shape[0]
    m = prep["u2t"].shape[1]
    ho, wo = 2 * h2, 2 * w2
    k1 = prep["u1t"].shape[0]

    # Free row-major reshapes only (layout already (C, H*W) on lanes).
    x1 = input1.reshape(n, c1, h1 * w1)
    if k1 != h1 * w1:
        x1 = jnp.pad(x1, ((0, 0), (0, 0), (0, k1 - h1 * w1)))
    x2 = input2.reshape(n, c2, h2 * w2)

    bcast2 = lambda i: (0, 0)
    bcast3 = lambda i: (0, 0, 0)

    out = pl.pallas_call(
        _decoding_block_kernel,
        out_shape=jax.ShapeDtypeStruct((n, cout, m), jnp.float32),
        grid=(n,),
        in_specs=[
            pl.BlockSpec((1, c1, k1), lambda i: (i, 0, 0)),
            pl.BlockSpec((1, c2, h2 * w2), lambda i: (i, 0, 0)),
            pl.BlockSpec(prep["u1t"].shape, bcast2),
            pl.BlockSpec(prep["u2t"].shape, bcast2),
            pl.BlockSpec(prep["w_up"].shape, bcast2),
            pl.BlockSpec(prep["b_up"].shape, bcast2),
            pl.BlockSpec(prep["w1"].shape, bcast3),
            pl.BlockSpec(prep["b1"].shape, bcast2),
            pl.BlockSpec(prep["w2"].shape, bcast3),
            pl.BlockSpec(prep["b2"].shape, bcast2),
            pl.BlockSpec(prep["g"].shape, bcast3),
            pl.BlockSpec(memory_space=pltpu.MemorySpace.SMEM),
        ],
        out_specs=pl.BlockSpec((1, cout, m), lambda i: (i, 0, 0)),
        scratch_shapes=[pltpu.VMEM((c1 + cout, m), jnp.float32)],
        compiler_params=pltpu.CompilerParams(
            dimension_semantics=("parallel",),
            vmem_limit_bytes=32 * 1024 * 1024),
    )(x1, x2, prep["u1t"], prep["u2t"], prep["w_up"], prep["b_up"],
      prep["w1"], prep["b1"], prep["w2"], prep["b2"], prep["g"],
      prep["alphas"])

    return out.reshape(n, cout, ho, wo)


# ---------------------------------------------------------------------------
# Pure-JAX reference (no Pallas) for a correctness sanity check
# ---------------------------------------------------------------------------
def _source_index(in_size, out_size, align_corners):
    o = jnp.arange(out_size, dtype=jnp.float32)
    if align_corners:
        src = o * ((in_size - 1) / (out_size - 1)) if out_size > 1 else o * 0.0
    else:
        src = jnp.maximum((o + 0.5) * (in_size / out_size) - 0.5, 0.0)
    i0 = jnp.minimum(jnp.floor(src).astype(jnp.int32), in_size - 1)
    i1 = jnp.minimum(i0 + 1, in_size - 1)
    w1 = src - i0.astype(jnp.float32)
    return i0, i1, 1.0 - w1, w1


def _bilinear_nchw(x, oh, ow, align_corners):
    i0, i1, h0, h1 = _source_index(x.shape[2], oh, align_corners)
    j0, j1, v0, v1 = _source_index(x.shape[3], ow, align_corners)
    r = x[:, :, i0, :] * h0[:, None] + x[:, :, i1, :] * h1[:, None]
    return r[:, :, :, j0] * v0 + r[:, :, :, j1] * v1


def _conv3x3_reflect(x, w, b):
    n, _, hh, ww = x.shape
    xp = jnp.pad(x, ((0, 0), (0, 0), (1, 1), (1, 1)), mode="reflect")
    y = jnp.zeros((n, w.shape[0], hh, ww), jnp.float32)
    for dy in range(3):
        for dx in range(3):
            y = y + jnp.einsum("oc,nchw->nohw", w[:, :, dy, dx],
                               xp[:, :, dy:dy + hh, dx:dx + ww],
                               precision="highest")
    return y + b[None, :, None, None]


def reference_forward(raw, input1, input2):
    _, _, h2, w2 = input2.shape
    up = _bilinear_nchw(input2, 2 * h2, 2 * w2, align_corners=False)
    out2 = (jnp.einsum("oc,nchw->nohw", raw["w_up"][:, :, 0, 0], up,
                       precision="highest")
            + raw["b_up"][None, :, None, None])
    out1 = _bilinear_nchw(input1, 2 * h2, 2 * w2, align_corners=True)
    x = jnp.concatenate([out1, out2], axis=1)
    y = _conv3x3_reflect(x, raw["w1"], raw["b1"])
    y = jnp.where(y > 0, y, raw["a1"] * y)
    y = _conv3x3_reflect(y, raw["w2"], raw["b2"])
    y = jnp.where(y > 0, y, raw["a2"] * y)
    return y


# ---------------------------------------------------------------------------
if __name__ == "__main__":
    in_size, out_size = 8, 4                    # concat: 4 (skip) + 4 (up)
    n, h1, w1, h2, w2 = 2, 15, 15, 8, 8

    key = jax.random.PRNGKey(0)
    k1, k2, kp = jax.random.split(key, 3)
    input1 = jax.random.normal(k1, (n, in_size - out_size, h1, w1), jnp.float32)
    input2 = jax.random.normal(k2, (n, in_size, h2, w2), jnp.float32)

    raw = init_params(kp, in_size, out_size)
    prep = prepare_params(raw, input1.shape[1:], input2.shape[1:])

    fwd = jax.jit(decoding_block_apply)
    out = fwd(prep, input1, input2)
    jax.block_until_ready(out)

    assert out.shape == (n, out_size, 2 * h2, 2 * w2), out.shape
    assert out.dtype == jnp.float32

    # Loose tolerance: kernel uses bf16 matmul operands with f32 accumulation.
    ref = reference_forward(raw, input1, input2)
    err = float(jnp.max(jnp.abs(out - ref)))
    assert err < 5e-2, f"max abs err vs reference: {err}"

    print("KERNEL_OK")
</pallas_src>

<mosaic_0001>
module attributes {stable_mosaic.version = 11 : i64} {
  func.func @_decoding_block_kernel(%arg0: i32, %arg1: memref<1x4x256xf32, #tpu.memory_space<vmem>>, %arg2: memref<1x8x64xf32, #tpu.memory_space<vmem>>, %arg3: memref<256x256xbf16, #tpu.memory_space<vmem>>, %arg4: memref<64x256xbf16, #tpu.memory_space<vmem>>, %arg5: memref<4x8xf32, #tpu.memory_space<vmem>>, %arg6: memref<4x1xf32, #tpu.memory_space<vmem>>, %arg7: memref<9x4x8xf32, #tpu.memory_space<vmem>>, %arg8: memref<4x1xf32, #tpu.memory_space<vmem>>, %arg9: memref<9x4x4xf32, #tpu.memory_space<vmem>>, %arg10: memref<4x1xf32, #tpu.memory_space<vmem>>, %arg11: memref<9x256x256xbf16, #tpu.memory_space<vmem>>, %arg12: memref<2xf32, #tpu.memory_space<smem>>, %arg13: memref<1x4x256xf32, #tpu.memory_space<vmem>>, %arg14: memref<8x256xf32, #tpu.memory_space<vmem>>) attributes {dimension_semantics = [#tpu.dimension_semantics<parallel>], iteration_bounds = array<i64: 2>, scalar_prefetch = 0 : i64, scratch_operands = 1 : i64, tpu.core_type = #tpu.core_type<tc>, window_params = [{transform_indices = @transform_0, window_bounds = array<i64: 1, 4, 256>}, {transform_indices = @transform_1, window_bounds = array<i64: 1, 8, 64>}, {pipeline_mode = #tpu.pipeline_mode<synchronous>, transform_indices = @transform_2, window_bounds = array<i64: 256, 256>}, {pipeline_mode = #tpu.pipeline_mode<synchronous>, transform_indices = @transform_3, window_bounds = array<i64: 64, 256>}, {pipeline_mode = #tpu.pipeline_mode<synchronous>, transform_indices = @transform_4, window_bounds = array<i64: 4, 8>}, {pipeline_mode = #tpu.pipeline_mode<synchronous>, transform_indices = @transform_5, window_bounds = array<i64: 4, 1>}, {pipeline_mode = #tpu.pipeline_mode<synchronous>, transform_indices = @transform_6, window_bounds = array<i64: 9, 4, 8>}, {pipeline_mode = #tpu.pipeline_mode<synchronous>, transform_indices = @transform_7, window_bounds = array<i64: 4, 1>}, {pipeline_mode = #tpu.pipeline_mode<synchronous>, transform_indices = @transform_8, window_bounds = array<i64: 9, 4, 4>}, {pipeline_mode = #tpu.pipeline_mode<synchronous>, transform_indices = @transform_9, window_bounds = array<i64: 4, 1>}, {pipeline_mode = #tpu.pipeline_mode<synchronous>, transform_indices = @transform_10, window_bounds = array<i64: 9, 256, 256>}, {transform_indices = @transform_11, window_bounds = array<i64: 2>}, {transform_indices = @transform_12, window_bounds = array<i64: 1, 4, 256>}]} {
    %c0 = arith.constant 0 : index
    %c0_0 = arith.constant 0 : index
    %0 = vector.load %arg5[%c0, %c0_0] : memref<4x8xf32, #tpu.memory_space<vmem>>, vector<4x8xf32>
    %c0_1 = arith.constant 0 : index
    %c0_2 = arith.constant 0 : index
    %c0_3 = arith.constant 0 : index
    %1 = vector.load %arg2[%c0_1, %c0_2, %c0_3] : memref<1x8x64xf32, #tpu.memory_space<vmem>>, vector<1x8x64xf32>
    %2 = vector.shape_cast %1 : vector<1x8x64xf32> to vector<8x64xf32>
    %cst = arith.constant dense<0.000000e+00> : vector<4x64xf32>
    %3 = tpu.matmul %0, %2, %cst {dimension_numbers = #tpu.dot_dimension_numbers<[1], [0], [0], [1], [0, 0, 1, 1], [], []>} : vector<4x8xf32>, vector<8x64xf32>, vector<4x64xf32> -> vector<4x64xf32>
    %4 = arith.truncf %3 : vector<4x64xf32> to vector<4x64xbf16>
    %c0_4 = arith.constant 0 : index
    %c0_5 = arith.constant 0 : index
    %5 = vector.load %arg4[%c0_4, %c0_5] : memref<64x256xbf16, #tpu.memory_space<vmem>>, vector<64x256xbf16>
    %cst_6 = arith.constant dense<0.000000e+00> : vector<4x256xf32>
    %6 = tpu.matmul %4, %5, %cst_6 {dimension_numbers = #tpu.dot_dimension_numbers<[1], [0], [0], [1], [0, 0, 1, 1], [], []>} : vector<4x64xbf16>, vector<64x256xbf16>, vector<4x256xf32> -> vector<4x256xf32>
    %c0_7 = arith.constant 0 : index
    %c0_8 = arith.constant 0 : index
    %7 = vector.load %arg6[%c0_7, %c0_8] : memref<4x1xf32, #tpu.memory_space<vmem>>, vector<4x1xf32>
    %8 = vector.broadcast %7 : vector<4x1xf32> to vector<4x256xf32>
    %9 = arith.addf %6, %8 : vector<4x256xf32>
    %c0_9 = arith.constant 0 : index
    %c0_10 = arith.constant 0 : index
    %c0_11 = arith.constant 0 : index
    %10 = vector.load %arg1[%c0_9, %c0_10, %c0_11] : memref<1x4x256xf32, #tpu.memory_space<vmem>>, vector<1x4x256xf32>
    %11 = vector.shape_cast %10 : vector<1x4x256xf32> to vector<4x256xf32>
    %12 = arith.truncf %11 : vector<4x256xf32> to vector<4x256xbf16>
    %c0_12 = arith.constant 0 : index
    %c0_13 = arith.constant 0 : index
    %13 = vector.load %arg3[%c0_12, %c0_13] : memref<256x256xbf16, #tpu.memory_space<vmem>>, vector<256x256xbf16>
    %cst_14 = arith.constant dense<0.000000e+00> : vector<4x256xf32>
    %14 = tpu.matmul %12, %13, %cst_14 {dimension_numbers = #tpu.dot_dimension_numbers<[1], [0], [0], [1], [0, 0, 1, 1], [], []>} : vector<4x256xbf16>, vector<256x256xbf16>, vector<4x256xf32> -> vector<4x256xf32>
    %c0_15 = arith.constant 0 : index
    %c0_16 = arith.constant 0 : index
    %15 = vector.load %arg14[%c0_15, %c0_16] : memref<8x256xf32, #tpu.memory_space<vmem>>, vector<4x256xf32>
    tpu.vector_store %arg14[%c0_15, %c0_16], %14 {strides = array<i32>} : memref<8x256xf32, #tpu.memory_space<vmem>>, vector<4x256xf32>,
    %c4 = arith.constant 4 : index
    %c0_17 = arith.constant 0 : index
    %16 = vector.load %arg14[%c4, %c0_17] : memref<8x256xf32, #tpu.memory_space<vmem>>, vector<4x256xf32>
    tpu.vector_store %arg14[%c4, %c0_17], %9 {strides = array<i32>} : memref<8x256xf32, #tpu.memory_space<vmem>>, vector<4x256xf32>,
    %c0_18 = arith.constant 0 : index
    %c0_19 = arith.constant 0 : index
    %17 = vector.load %arg14[%c0_18, %c0_19] : memref<8x256xf32, #tpu.memory_space<vmem>>, vector<8x256xf32>
    %c0_20 = arith.constant 0 : index
    %18 = memref.load %arg12[%c0_20] : memref<2xf32, #tpu.memory_space<smem>>
    %cst_21 = arith.constant 0.000000e+00 : f32
    %19 = vector.broadcast %cst_21 : f32 to vector<4x256xf32>
    %c0_22 = arith.constant 0 : index
    %c0_23 = arith.constant 0 : index
    %c0_24 = arith.constant 0 : index
    %20 = vector.load %arg7[%c0_22, %c0_23, %c0_24] : memref<9x4x8xf32, #tpu.memory_space<vmem>>, vector<1x4x8xf32>
    %21 = vector.shape_cast %20 : vector<1x4x8xf32> to vector<4x8xf32>
    %cst_25 = arith.constant dense<0.000000e+00> : vector<4x256xf32>
    %22 = tpu.matmul %21, %17, %cst_25 {dimension_numbers = #tpu.dot_dimension_numbers<[1], [0], [0], [1], [0, 0, 1, 1], [], []>} : vector<4x8xf32>, vector<8x256xf32>, vector<4x256xf32> -> vector<4x256xf32>
    %23 = arith.truncf %22 : vector<4x256xf32> to vector<4x256xbf16>
    %c0_26 = arith.constant 0 : index
    %c0_27 = arith.constant 0 : index
    %c0_28 = arith.constant 0 : index
    %24 = vector.load %arg11[%c0_26, %c0_27, %c0_28] : memref<9x256x256xbf16, #tpu.memory_space<vmem>>, vector<1x256x256xbf16>
    %25 = vector.shape_cast %24 : vector<1x256x256xbf16> to vector<256x256xbf16>
    %cst_29 = arith.constant dense<0.000000e+00> : vector<4x256xf32>
    %26 = tpu.matmul %23, %25, %cst_29 {dimension_numbers = #tpu.dot_dimension_numbers<[1], [0], [0], [1], [0, 0, 1, 1], [], []>} : vector<4x256xbf16>, vector<256x256xbf16>, vector<4x256xf32> -> vector<4x256xf32>
    %27 = arith.addf %19, %26 : vector<4x256xf32>
    %c1 = arith.constant 1 : index
    %c0_30 = arith.constant 0 : index
    %c0_31 = arith.constant 0 : index
    %28 = vector.load %arg7[%c1, %c0_30, %c0_31] : memref<9x4x8xf32, #tpu.memory_space<vmem>>, vector<1x4x8xf32>
    %29 = vector.shape_cast %28 : vector<1x4x8xf32> to vector<4x8xf32>
    %cst_32 = arith.constant dense<0.000000e+00> : vector<4x256xf32>
    %30 = tpu.matmul %29, %17, %cst_32 {dimension_numbers = #tpu.dot_dimension_numbers<[1], [0], [0], [1], [0, 0, 1, 1], [], []>} : vector<4x8xf32>, vector<8x256xf32>, vector<4x256xf32> -> vector<4x256xf32>
    %31 = arith.truncf %30 : vector<4x256xf32> to vector<4x256xbf16>
    %c1_33 = arith.constant 1 : index
    %c0_34 = arith.constant 0 : index
    %c0_35 = arith.constant 0 : index
    %32 = vector.load %arg11[%c1_33, %c0_34, %c0_35] : memref<9x256x256xbf16, #tpu.memory_space<vmem>>, vector<1x256x256xbf16>
    %33 = vector.shape_cast %32 : vector<1x256x256xbf16> to vector<256x256xbf16>
    %cst_36 = arith.constant dense<0.000000e+00> : vector<4x256xf32>
    %34 = tpu.matmul %31, %33, %cst_36 {dimension_numbers = #tpu.dot_dimension_numbers<[1], [0], [0], [1], [0, 0, 1, 1], [], []>} : vector<4x256xbf16>, vector<256x256xbf16>, vector<4x256xf32> -> vector<4x256xf32>
    %35 = arith.addf %27, %34 : vector<4x256xf32>
    %c2 = arith.constant 2 : index
    %c0_37 = arith.constant 0 : index
    %c0_38 = arith.constant 0 : index
    %36 = vector.load %arg7[%c2, %c0_37, %c0_38] : memref<9x4x8xf32, #tpu.memory_space<vmem>>, vector<1x4x8xf32>
    %37 = vector.shape_cast %36 : vector<1x4x8xf32> to vector<4x8xf32>
    %cst_39 = arith.constant dense<0.000000e+00> : vector<4x256xf32>
    %38 = tpu.matmul %37, %17, %cst_39 {dimension_numbers = #tpu.dot_dimension_numbers<[1], [0], [0], [1], [0, 0, 1, 1], [], []>} : vector<4x8xf32>, vector<8x256xf32>, vector<4x256xf32> -> vector<4x256xf32>
    %39 = arith.truncf %38 : vector<4x256xf32> to vector<4x256xbf16>
    %c2_40 = arith.constant 2 : index
    %c0_41 = arith.constant 0 : index
    %c0_42 = arith.constant 0 : index
    %40 = vector.load %arg11[%c2_40, %c0_41, %c0_42] : memref<9x256x256xbf16, #tpu.memory_space<vmem>>, vector<1x256x256xbf16>
    %41 = vector.shape_cast %40 : vector<1x256x256xbf16> to vector<256x256xbf16>
    %cst_43 = arith.constant dense<0.000000e+00> : vector<4x256xf32>
    %42 = tpu.matmul %39, %41, %cst_43 {dimension_numbers = #tpu.dot_dimension_numbers<[1], [0], [0], [1], [0, 0, 1, 1], [], []>} : vector<4x256xbf16>, vector<256x256xbf16>, vector<4x256xf32> -> vector<4x256xf32>
    %43 = arith.addf %35, %42 : vector<4x256xf32>
    %c3 = arith.constant 3 : index
    %c0_44 = arith.constant 0 : index
    %c0_45 = arith.constant 0 : index
    %44 = vector.load %arg7[%c3, %c0_44, %c0_45] : memref<9x4x8xf32, #tpu.memory_space<vmem>>, vector<1x4x8xf32>
    %45 = vector.shape_cast %44 : vector<1x4x8xf32> to vector<4x8xf32>
    %cst_46 = arith.constant dense<0.000000e+00> : vector<4x256xf32>
    %46 = tpu.matmul %45, %17, %cst_46 {dimension_numbers = #tpu.dot_dimension_numbers<[1], [0], [0], [1], [0, 0, 1, 1], [], []>} : vector<4x8xf32>, vector<8x256xf32>, vector<4x256xf32> -> vector<4x256xf32>
    %47 = arith.truncf %46 : vector<4x256xf32> to vector<4x256xbf16>
    %c3_47 = arith.constant 3 : index
    %c0_48 = arith.constant 0 : index
    %c0_49 = arith.constant 0 : index
    %48 = vector.load %arg11[%c3_47, %c0_48, %c0_49] : memref<9x256x256xbf16, #tpu.memory_space<vmem>>, vector<1x256x256xbf16>
    %49 = vector.shape_cast %48 : vector<1x256x256xbf16> to vector<256x256xbf16>
    %cst_50 = arith.constant dense<0.000000e+00> : vector<4x256xf32>
    %50 = tpu.matmul %47, %49, %cst_50 {dimension_numbers = #tpu.dot_dimension_numbers<[1], [0], [0], [1], [0, 0, 1, 1], [], []>} : vector<4x256xbf16>, vector<256x256xbf16>, vector<4x256xf32> -> vector<4x256xf32>
    %51 = arith.addf %43, %50 : vector<4x256xf32>
    %c4_51 = arith.constant 4 : index
    %c0_52 = arith.constant 0 : index
    %c0_53 = arith.constant 0 : index
    %52 = vector.load %arg7[%c4_51, %c0_52, %c0_53] : memref<9x4x8xf32, #tpu.memory_space<vmem>>, vector<1x4x8xf32>
    %53 = vector.shape_cast %52 : vector<1x4x8xf32> to vector<4x8xf32>
    %cst_54 = arith.constant dense<0.000000e+00> : vector<4x256xf32>
    %54 = tpu.matmul %53, %17, %cst_54 {dimension_numbers = #tpu.dot_dimension_numbers<[1], [0], [0], [1], [0, 0, 1, 1], [], []>} : vector<4x8xf32>, vector<8x256xf32>, vector<4x256xf32> -> vector<4x256xf32>
    %55 = arith.truncf %54 : vector<4x256xf32> to vector<4x256xbf16>
    %c4_55 = arith.constant 4 : index
    %c0_56 = arith.constant 0 : index
    %c0_57 = arith.constant 0 : index
    %56 = vector.load %arg11[%c4_55, %c0_56, %c0_57] : memref<9x256x256xbf16, #tpu.memory_space<vmem>>, vector<1x256x256xbf16>
    %57 = vector.shape_cast %56 : vector<1x256x256xbf16> to vector<256x256xbf16>
    %cst_58 = arith.constant dense<0.000000e+00> : vector<4x256xf32>
    %58 = tpu.matmul %55, %57, %cst_58 {dimension_numbers = #tpu.dot_dimension_numbers<[1], [0], [0], [1], [0, 0, 1, 1], [], []>} : vector<4x256xbf16>, vector<256x256xbf16>, vector<4x256xf32> -> vector<4x256xf32>
    %59 = arith.addf %51, %58 : vector<4x256xf32>
    %c5 = arith.constant 5 : index
    %c0_59 = arith.constant 0 : index
    %c0_60 = arith.constant 0 : index
    %60 = vector.load %arg7[%c5, %c0_59, %c0_60] : memref<9x4x8xf32, #tpu.memory_space<vmem>>, vector<1x4x8xf32>
    %61 = vector.shape_cast %60 : vector<1x4x8xf32> to vector<4x8xf32>
    %cst_61 = arith.constant dense<0.000000e+00> : vector<4x256xf32>
    %62 = tpu.matmul %61, %17, %cst_61 {dimension_numbers = #tpu.dot_dimension_numbers<[1], [0], [0], [1], [0, 0, 1, 1], [], []>} : vector<4x8xf32>, vector<8x256xf32>, vector<4x256xf32> -> vector<4x256xf32>
    %63 = arith.truncf %62 : vector<4x256xf32> to vector<4x256xbf16>
    %c5_62 = arith.constant 5 : index
    %c0_63 = arith.constant 0 : index
    %c0_64 = arith.constant 0 : index
    %64 = vector.load %arg11[%c5_62, %c0_63, %c0_64] : memref<9x256x256xbf16, #tpu.memory_space<vmem>>, vector<1x256x256xbf16>
    %65 = vector.shape_cast %64 : vector<1x256x256xbf16> to vector<256x256xbf16>
    %cst_65 = arith.constant dense<0.000000e+00> : vector<4x256xf32>
    %66 = tpu.matmul %63, %65, %cst_65 {dimension_numbers = #tpu.dot_dimension_numbers<[1], [0], [0], [1], [0, 0, 1, 1], [], []>} : vector<4x256xbf16>, vector<256x256xbf16>, vector<4x256xf32> -> vector<4x256xf32>
    %67 = arith.addf %59, %66 : vector<4x256xf32>
    %c6 = arith.constant 6 : index
    %c0_66 = arith.constant 0 : index
    %c0_67 = arith.constant 0 : index
    %68 = vector.load %arg7[%c6, %c0_66, %c0_67] : memref<9x4x8xf32, #tpu.memory_space<vmem>>, vector<1x4x8xf32>
    %69 = vector.shape_cast %68 : vector<1x4x8xf32> to vector<4x8xf32>
    %cst_68 = arith.constant dense<0.000000e+00> : vector<4x256xf32>
    %70 = tpu.matmul %69, %17, %cst_68 {dimension_numbers = #tpu.dot_dimension_numbers<[1], [0], [0], [1], [0, 0, 1, 1], [], []>} : vector<4x8xf32>, vector<8x256xf32>, vector<4x256xf32> -> vector<4x256xf32>
    %71 = arith.truncf %70 : vector<4x256xf32> to vector<4x256xbf16>
    %c6_69 = arith.constant 6 : index
    %c0_70 = arith.constant 0 : index
    %c0_71 = arith.constant 0 : index
    %72 = vector.load %arg11[%c6_69, %c0_70, %c0_71] : memref<9x256x256xbf16, #tpu.memory_space<vmem>>, vector<1x256x256xbf16>
    %73 = vector.shape_cast %72 : vector<1x256x256xbf16> to vector<256x256xbf16>
    %cst_72 = arith.constant dense<0.000000e+00> : vector<4x256xf32>
    %74 = tpu.matmul %71, %73, %cst_72 {dimension_numbers = #tpu.dot_dimension_numbers<[1], [0], [0], [1], [0, 0, 1, 1], [], []>} : vector<4x256xbf16>, vector<256x256xbf16>, vector<4x256xf32> -> vector<4x256xf32>
    %75 = arith.addf %67, %74 : vector<4x256xf32>
    %c7 = arith.constant 7 : index
    %c0_73 = arith.constant 0 : index
    %c0_74 = arith.constant 0 : index
    %76 = vector.load %arg7[%c7, %c0_73, %c0_74] : memref<9x4x8xf32, #tpu.memory_space<vmem>>, vector<1x4x8xf32>
    %77 = vector.shape_cast %76 : vector<1x4x8xf32> to vector<4x8xf32>
    %cst_75 = arith.constant dense<0.000000e+00> : vector<4x256xf32>
    %78 = tpu.matmul %77, %17, %cst_75 {dimension_numbers = #tpu.dot_dimension_numbers<[1], [0], [0], [1], [0, 0, 1, 1], [], []>} : vector<4x8xf32>, vector<8x256xf32>, vector<4x256xf32> -> vector<4x256xf32>
    %79 = arith.truncf %78 : vector<4x256xf32> to vector<4x256xbf16>
    %c7_76 = arith.constant 7 : index
    %c0_77 = arith.constant 0 : index
    %c0_78 = arith.constant 0 : index
    %80 = vector.load %arg11[%c7_76, %c0_77, %c0_78] : memref<9x256x256xbf16, #tpu.memory_space<vmem>>, vector<1x256x256xbf16>
    %81 = vector.shape_cast %80 : vector<1x256x256xbf16> to vector<256x256xbf16>
    %cst_79 = arith.constant dense<0.000000e+00> : vector<4x256xf32>
    %82 = tpu.matmul %79, %81, %cst_79 {dimension_numbers = #tpu.dot_dimension_numbers<[1], [0], [0], [1], [0, 0, 1, 1], [], []>} : vector<4x256xbf16>, vector<256x256xbf16>, vector<4x256xf32> -> vector<4x256xf32>
    %83 = arith.addf %75, %82 : vector<4x256xf32>
    %c8 = arith.constant 8 : index
    %c0_80 = arith.constant 0 : index
    %c0_81 = arith.constant 0 : index
    %84 = vector.load %arg7[%c8, %c0_80, %c0_81] : memref<9x4x8xf32, #tpu.memory_space<vmem>>, vector<1x4x8xf32>
    %85 = vector.shape_cast %84 : vector<1x4x8xf32> to vector<4x8xf32>
    %cst_82 = arith.constant dense<0.000000e+00> : vector<4x256xf32>
    %86 = tpu.matmul %85, %17, %cst_82 {dimension_numbers = #tpu.dot_dimension_numbers<[1], [0], [0], [1], [0, 0, 1, 1], [], []>} : vector<4x8xf32>, vector<8x256xf32>, vector<4x256xf32> -> vector<4x256xf32>
    %87 = arith.truncf %86 : vector<4x256xf32> to vector<4x256xbf16>
    %c8_83 = arith.constant 8 : index
    %c0_84 = arith.constant 0 : index
    %c0_85 = arith.constant 0 : index
    %88 = vector.load %arg11[%c8_83, %c0_84, %c0_85] : memref<9x256x256xbf16, #tpu.memory_space<vmem>>, vector<1x256x256xbf16>
    %89 = vector.shape_cast %88 : vector<1x256x256xbf16> to vector<256x256xbf16>
    %cst_86 = arith.constant dense<0.000000e+00> : vector<4x256xf32>
    %90 = tpu.matmul %87, %89, %cst_86 {dimension_numbers = #tpu.dot_dimension_numbers<[1], [0], [0], [1], [0, 0, 1, 1], [], []>} : vector<4x256xbf16>, vector<256x256xbf16>, vector<4x256xf32> -> vector<4x256xf32>
    %91 = arith.addf %83, %90 : vector<4x256xf32>
    %c0_87 = arith.constant 0 : index
    %c0_88 = arith.constant 0 : index
    %92 = vector.load %arg8[%c0_87, %c0_88] : memref<4x1xf32, #tpu.memory_space<vmem>>, vector<4x1xf32>
    %93 = vector.broadcast %92 : vector<4x1xf32> to vector<4x256xf32>
    %94 = arith.addf %91, %93 : vector<4x256xf32>
    %cst_89 = arith.constant 0.000000e+00 : f32
    %95 = vector.broadcast %cst_89 : f32 to vector<4x256xf32>
    %96 = arith.cmpf ogt, %94, %95 : vector<4x256xf32>
    %97 = vector.broadcast %18 : f32 to vector<4x256xf32>
    %98 = arith.mulf %97, %94 : vector<4x256xf32>
    %99 = arith.select %96, %94, %98 : vector<4x256xi1>, vector<4x256xf32>
    %c1_90 = arith.constant 1 : index
    %100 = memref.load %arg12[%c1_90] : memref<2xf32, #tpu.memory_space<smem>>
    %cst_91 = arith.constant 0.000000e+00 : f32
    %101 = vector.broadcast %cst_91 : f32 to vector<4x256xf32>
    %c0_92 = arith.constant 0 : index
    %c0_93 = arith.constant 0 : index
    %c0_94 = arith.constant 0 : index
    %102 = vector.load %arg9[%c0_92, %c0_93, %c0_94] : memref<9x4x4xf32, #tpu.memory_space<vmem>>, vector<1x4x4xf32>
    %103 = vector.shape_cast %102 : vector<1x4x4xf32> to vector<4x4xf32>
    %cst_95 = arith.constant dense<0.000000e+00> : vector<4x256xf32>
    %104 = tpu.matmul %103, %99, %cst_95 {dimension_numbers = #tpu.dot_dimension_numbers<[1], [0], [0], [1], [0, 0, 1, 1], [], []>} : vector<4x4xf32>, vector<4x256xf32>, vector<4x256xf32> -> vector<4x256xf32>
    %105 = arith.truncf %104 : vector<4x256xf32> to vector<4x256xbf16>
    %c0_96 = arith.constant 0 : index
    %c0_97 = arith.constant 0 : index
    %c0_98 = arith.constant 0 : index
    %106 = vector.load %arg11[%c0_96, %c0_97, %c0_98] : memref<9x256x256xbf16, #tpu.memory_space<vmem>>, vector<1x256x256xbf16>
    %107 = vector.shape_cast %106 : vector<1x256x256xbf16> to vector<256x256xbf16>
    %cst_99 = arith.constant dense<0.000000e+00> : vector<4x256xf32>
    %108 = tpu.matmul %105, %107, %cst_99 {dimension_numbers = #tpu.dot_dimension_numbers<[1], [0], [0], [1], [0, 0, 1, 1], [], []>} : vector<4x256xbf16>, vector<256x256xbf16>, vector<4x256xf32> -> vector<4x256xf32>
    %109 = arith.addf %101, %108 : vector<4x256xf32>
    %c1_100 = arith.constant 1 : index
    %c0_101 = arith.constant 0 : index
    %c0_102 = arith.constant 0 : index
    %110 = vector.load %arg9[%c1_100, %c0_101, %c0_102] : memref<9x4x4xf32, #tpu.memory_space<vmem>>, vector<1x4x4xf32>
    %111 = vector.shape_cast %110 : vector<1x4x4xf32> to vector<4x4xf32>
    %cst_103 = arith.constant dense<0.000000e+00> : vector<4x256xf32>
    %112 = tpu.matmul %111, %99, %cst_103 {dimension_numbers = #tpu.dot_dimension_numbers<[1], [0], [0], [1], [0, 0, 1, 1], [], []>} : vector<4x4xf32>, vector<4x256xf32>, vector<4x256xf32> -> vector<4x256xf32>
    %113 = arith.truncf %112 : vector<4x256xf32> to vector<4x256xbf16>
    %c1_104 = arith.constant 1 : index
    %c0_105 = arith.constant 0 : index
    %c0_106 = arith.constant 0 : index
    %114 = vector.load %arg11[%c1_104, %c0_105, %c0_106] : memref<9x256x256xbf16, #tpu.memory_space<vmem>>, vector<1x256x256xbf16>
    %115 = vector.shape_cast %114 : vector<1x256x256xbf16> to vector<256x256xbf16>
    %cst_107 = arith.constant dense<0.000000e+00> : vector<4x256xf32>
    %116 = tpu.matmul %113, %115, %cst_107 {dimension_numbers = #tpu.dot_dimension_numbers<[1], [0], [0], [1], [0, 0, 1, 1], [], []>} : vector<4x256xbf16>, vector<256x256xbf16>, vector<4x256xf32> -> vector<4x256xf32>
    %117 = arith.addf %109, %116 : vector<4x256xf32>
    %c2_108 = arith.constant 2 : index
    %c0_109 = arith.constant 0 : index
    %c0_110 = arith.constant 0 : index
    %118 = vector.load %arg9[%c2_108, %c0_109, %c0_110] : memref<9x4x4xf32, #tpu.memory_space<vmem>>, vector<1x4x4xf32>
    %119 = vector.shape_cast %118 : vector<1x4x4xf32> to vector<4x4xf32>
    %cst_111 = arith.constant dense<0.000000e+00> : vector<4x256xf32>
    %120 = tpu.matmul %119, %99, %cst_111 {dimension_numbers = #tpu.dot_dimension_numbers<[1], [0], [0], [1], [0, 0, 1, 1], [], []>} : vector<4x4xf32>, vector<4x256xf32>, vector<4x256xf32> -> vector<4x256xf32>
    %121 = arith.truncf %120 : vector<4x256xf32> to vector<4x256xbf16>
    %c2_112 = arith.constant 2 : index
    %c0_113 = arith.constant 0 : index
    %c0_114 = arith.constant 0 : index
    %122 = vector.load %arg11[%c2_112, %c0_113, %c0_114] : memref<9x256x256xbf16, #tpu.memory_space<vmem>>, vector<1x256x256xbf16>
    %123 = vector.shape_cast %122 : vector<1x256x256xbf16> to vector<256x256xbf16>
    %cst_115 = arith.constant dense<0.000000e+00> : vector<4x256xf32>
    %124 = tpu.matmul %121, %123, %cst_115 {dimension_numbers = #tpu.dot_dimension_numbers<[1], [0], [0], [1], [0, 0, 1, 1], [], []>} : vector<4x256xbf16>, vector<256x256xbf16>, vector<4x256xf32> -> vector<4x256xf32>
    %125 = arith.addf %117, %124 : vector<4x256xf32>
    %c3_116 = arith.constant 3 : index
    %c0_117 = arith.constant 0 : index
    %c0_118 = arith.constant 0 : index
    %126 = vector.load %arg9[%c3_116, %c0_117, %c0_118] : memref<9x4x4xf32, #tpu.memory_space<vmem>>, vector<1x4x4xf32>
    %127 = vector.shape_cast %126 : vector<1x4x4xf32> to vector<4x4xf32>
    %cst_119 = arith.constant dense<0.000000e+00> : vector<4x256xf32>
    %128 = tpu.matmul %127, %99, %cst_119 {dimension_numbers = #tpu.dot_dimension_numbers<[1], [0], [0], [1], [0, 0, 1, 1], [], []>} : vector<4x4xf32>, vector<4x256xf32>, vector<4x256xf32> -> vector<4x256xf32>
    %129 = arith.truncf %128 : vector<4x256xf32> to vector<4x256xbf16>
    %c3_120 = arith.constant 3 : index
    %c0_121 = arith.constant 0 : index
    %c0_122 = arith.constant 0 : index
    %130 = vector.load %arg11[%c3_120, %c0_121, %c0_122] : memref<9x256x256xbf16, #tpu.memory_space<vmem>>, vector<1x256x256xbf16>
    %131 = vector.shape_cast %130 : vector<1x256x256xbf16> to vector<256x256xbf16>
    %cst_123 = arith.constant dense<0.000000e+00> : vector<4x256xf32>
    %132 = tpu.matmul %129, %131, %cst_123 {dimension_numbers = #tpu.dot_dimension_numbers<[1], [0], [0], [1], [0, 0, 1, 1], [], []>} : vector<4x256xbf16>, vector<256x256xbf16>, vector<4x256xf32> -> vector<4x256xf32>
    %133 = arith.addf %125, %132 : vector<4x256xf32>
    %c4_124 = arith.constant 4 : index
    %c0_125 = arith.constant 0 : index
    %c0_126 = arith.constant 0 : index
    %134 = vector.load %arg9[%c4_124, %c0_125, %c0_126] : memref<9x4x4xf32, #tpu.memory_space<vmem>>, vector<1x4x4xf32>
    %135 = vector.shape_cast %134 : vector<1x4x4xf32> to vector<4x4xf32>
    %cst_127 = arith.constant dense<0.000000e+00> : vector<4x256xf32>
    %136 = tpu.matmul %135, %99, %cst_127 {dimension_numbers = #tpu.dot_dimension_numbers<[1], [0], [0], [1], [0, 0, 1, 1], [], []>} : vector<4x4xf32>, vector<4x256xf32>, vector<4x256xf32> -> vector<4x256xf32>
    %137 = arith.truncf %136 : vector<4x256xf32> to vector<4x256xbf16>
    %c4_128 = arith.constant 4 : index
    %c0_129 = arith.constant 0 : index
    %c0_130 = arith.constant 0 : index
    %138 = vector.load %arg11[%c4_128, %c0_129, %c0_130] : memref<9x256x256xbf16, #tpu.memory_space<vmem>>, vector<1x256x256xbf16>
    %139 = vector.shape_cast %138 : vector<1x256x256xbf16> to vector<256x256xbf16>
    %cst_131 = arith.constant dense<0.000000e+00> : vector<4x256xf32>
    %140 = tpu.matmul %137, %139, %cst_131 {dimension_numbers = #tpu.dot_dimension_numbers<[1], [0], [0], [1], [0, 0, 1, 1], [], []>} : vector<4x256xbf16>, vector<256x256xbf16>, vector<4x256xf32> -> vector<4x256xf32>
    %141 = arith.addf %133, %140 : vector<4x256xf32>
    %c5_132 = arith.constant 5 : index
    %c0_133 = arith.constant 0 : index
    %c0_134 = arith.constant 0 : index
    %142 = vector.load %arg9[%c5_132, %c0_133, %c0_134] : memref<9x4x4xf32, #tpu.memory_space<vmem>>, vector<1x4x4xf32>
    %143 = vector.shape_cast %142 : vector<1x4x4xf32> to vector<4x4xf32>
    %cst_135 = arith.constant dense<0.000000e+00> : vector<4x256xf32>
    %144 = tpu.matmul %143, %99, %cst_135 {dimension_numbers = #tpu.dot_dimension_numbers<[1], [0], [0], [1], [0, 0, 1, 1], [], []>} : vector<4x4xf32>, vector<4x256xf32>, vector<4x256xf32> -> vector<4x256xf32>
    %145 = arith.truncf %144 : vector<4x256xf32> to vector<4x256xbf16>
    %c5_136 = arith.constant 5 : index
    %c0_137 = arith.constant 0 : index
    %c0_138 = arith.constant 0 : index
    %146 = vector.load %arg11[%c5_136, %c0_137, %c0_138] : memref<9x256x256xbf16, #tpu.memory_space<vmem>>, vector<1x256x256xbf16>
    %147 = vector.shape_cast %146 : vector<1x256x256xbf16> to vector<256x256xbf16>
    %cst_139 = arith.constant dense<0.000000e+00> : vector<4x256xf32>
    %148 = tpu.matmul %145, %147, %cst_139 {dimension_numbers = #tpu.dot_dimension_numbers<[1], [0], [0], [1], [0, 0, 1, 1], [], []>} : vector<4x256xbf16>, vector<256x256xbf16>, vector<4x256xf32> -> vector<4x256xf32>
    %149 = arith.addf %141, %148 : vector<4x256xf32>
    %c6_140 = arith.constant 6 : index
    %c0_141 = arith.constant 0 : index
    %c0_142 = arith.constant 0 : index
    %150 = vector.load %arg9[%c6_140, %c0_141, %c0_142] : memref<9x4x4xf32, #tpu.memory_space<vmem>>, vector<1x4x4xf32>
    %151 = vector.shape_cast %150 : vector<1x4x4xf32> to vector<4x4xf32>
    %cst_143 = arith.constant dense<0.000000e+00> : vector<4x256xf32>
    %152 = tpu.matmul %151, %99, %cst_143 {dimension_numbers = #tpu.dot_dimension_numbers<[1], [0], [0], [1], [0, 0, 1, 1], [], []>} : vector<4x4xf32>, vector<4x256xf32>, vector<4x256xf32> -> vector<4x256xf32>
    %153 = arith.truncf %152 : vector<4x256xf32> to vector<4x256xbf16>
    %c6_144 = arith.constant 6 : index
    %c0_145 = arith.constant 0 : index
    %c0_146 = arith.constant 0 : index
    %154 = vector.load %arg11[%c6_144, %c0_145, %c0_146] : memref<9x256x256xbf16, #tpu.memory_space<vmem>>, vector<1x256x256xbf16>
    %155 = vector.shape_cast %154 : vector<1x256x256xbf16> to vector<256x256xbf16>
    %cst_147 = arith.constant dense<0.000000e+00> : vector<4x256xf32>
    %156 = tpu.matmul %153, %155, %cst_147 {dimension_numbers = #tpu.dot_dimension_numbers<[1], [0], [0], [1], [0, 0, 1, 1], [], []>} : vector<4x256xbf16>, vector<256x256xbf16>, vector<4x256xf32> -> vector<4x256xf32>
    %157 = arith.addf %149, %156 : vector<4x256xf32>
    %c7_148 = arith.constant 7 : index
    %c0_149 = arith.constant 0 : index
    %c0_150 = arith.constant 0 : index
    %158 = vector.load %arg9[%c7_148, %c0_149, %c0_150] : memref<9x4x4xf32, #tpu.memory_space<vmem>>, vector<1x4x4xf32>
    %159 = vector.shape_cast %158 : vector<1x4x4xf32> to vector<4x4xf32>
    %cst_151 = arith.constant dense<0.000000e+00> : vector<4x256xf32>
    %160 = tpu.matmul %159, %99, %cst_151 {dimension_numbers = #tpu.dot_dimension_numbers<[1], [0], [0], [1], [0, 0, 1, 1], [], []>} : vector<4x4xf32>, vector<4x256xf32>, vector<4x256xf32> -> vector<4x256xf32>
    %161 = arith.truncf %160 : vector<4x256xf32> to vector<4x256xbf16>
    %c7_152 = arith.constant 7 : index
    %c0_153 = arith.constant 0 : index
    %c0_154 = arith.constant 0 : index
    %162 = vector.load %arg11[%c7_152, %c0_153, %c0_154] : memref<9x256x256xbf16, #tpu.memory_space<vmem>>, vector<1x256x256xbf16>
    %163 = vector.shape_cast %162 : vector<1x256x256xbf16> to vector<256x256xbf16>
    %cst_155 = arith.constant dense<0.000000e+00> : vector<4x256xf32>
    %164 = tpu.matmul %161, %163, %cst_155 {dimension_numbers = #tpu.dot_dimension_numbers<[1], [0], [0], [1], [0, 0, 1, 1], [], []>} : vector<4x256xbf16>, vector<256x256xbf16>, vector<4x256xf32> -> vector<4x256xf32>
    %165 = arith.addf %157, %164 : vector<4x256xf32>
    %c8_156 = arith.constant 8 : index
    %c0_157 = arith.constant 0 : index
    %c0_158 = arith.constant 0 : index
    %166 = vector.load %arg9[%c8_156, %c0_157, %c0_158] : memref<9x4x4xf32, #tpu.memory_space<vmem>>, vector<1x4x4xf32>
    %167 = vector.shape_cast %166 : vector<1x4x4xf32> to vector<4x4xf32>
    %cst_159 = arith.constant dense<0.000000e+00> : vector<4x256xf32>
    %168 = tpu.matmul %167, %99, %cst_159 {dimension_numbers = #tpu.dot_dimension_numbers<[1], [0], [0], [1], [0, 0, 1, 1], [], []>} : vector<4x4xf32>, vector<4x256xf32>, vector<4x256xf32> -> vector<4x256xf32>
    %169 = arith.truncf %168 : vector<4x256xf32> to vector<4x256xbf16>
    %c8_160 = arith.constant 8 : index
    %c0_161 = arith.constant 0 : index
    %c0_162 = arith.constant 0 : index
    %170 = vector.load %arg11[%c8_160, %c0_161, %c0_162] : memref<9x256x256xbf16, #tpu.memory_space<vmem>>, vector<1x256x256xbf16>
    %171 = vector.shape_cast %170 : vector<1x256x256xbf16> to vector<256x256xbf16>
    %cst_163 = arith.constant dense<0.000000e+00> : vector<4x256xf32>
    %172 = tpu.matmul %169, %171, %cst_163 {dimension_numbers = #tpu.dot_dimension_numbers<[1], [0], [0], [1], [0, 0, 1, 1], [], []>} : vector<4x256xbf16>, vector<256x256xbf16>, vector<4x256xf32> -> vector<4x256xf32>
    %173 = arith.addf %165, %172 : vector<4x256xf32>
    %c0_164 = arith.constant 0 : index
    %c0_165 = arith.constant 0 : index
    %174 = vector.load %arg10[%c0_164, %c0_165] : memref<4x1xf32, #tpu.memory_space<vmem>>, vector<4x1xf32>
    %175 = vector.broadcast %174 : vector<4x1xf32> to vector<4x256xf32>
    %176 = arith.addf %173, %175 : vector<4x256xf32>
    %cst_166 = arith.constant 0.000000e+00 : f32
    %177 = vector.broadcast %cst_166 : f32 to vector<4x256xf32>
    %178 = arith.cmpf ogt, %176, %177 : vector<4x256xf32>
    %179 = vector.broadcast %100 : f32 to vector<4x256xf32>
    %180 = arith.mulf %179, %176 : vector<4x256xf32>
    %181 = arith.select %178, %176, %180 : vector<4x256xi1>, vector<4x256xf32>
    %c0_167 = arith.constant 0 : index
    %c0_168 = arith.constant 0 : index
    %c0_169 = arith.constant 0 : index
    %182 = vector.load %arg13[%c0_167, %c0_168, %c0_169] : memref<1x4x256xf32, #tpu.memory_space<vmem>>, vector<1x4x256xf32>
    %183 = vector.shape_cast %182 : vector<1x4x256xf32> to vector<4x256xf32>
    %184 = vector.shape_cast %181 : vector<4x256xf32> to vector<1x4x256xf32>
    tpu.vector_store %arg13[%c0_167, %c0_168, %c0_169], %184 {strides = array<i32>} : memref<1x4x256xf32, #tpu.memory_space<vmem>>, vector<1x4x256xf32>,
    return
  }
  func.func @transform_0(%arg0: i32) -> (i32, i32, i32) {
    %c0_i32 = arith.constant 0 : i32
    %c0_i32_0 = arith.constant 0 : i32
    %c0_i32_1 = arith.constant 0 : i32
    return %arg0, %c0_i32, %c0_i32_0 : i32, i32, i32
  }
  func.func @transform_1(%arg0: i32) -> (i32, i32, i32) {
    %c0_i32 = arith.constant 0 : i32
    %c0_i32_0 = arith.constant 0 : i32
    %c0_i32_1 = arith.constant 0 : i32
    return %arg0, %c0_i32, %c0_i32_0 : i32, i32, i32
  }
  func.func @transform_2(%arg0: i32) -> (i32, i32) {
    %c0_i32 = arith.constant 0 : i32
    %c0_i32_0 = arith.constant 0 : i32
    %c0_i32_1 = arith.constant 0 : i32
    return %c0_i32, %c0_i32_0 : i32, i32
  }
  func.func @transform_3(%arg0: i32) -> (i32, i32) {
    %c0_i32 = arith.constant 0 : i32
    %c0_i32_0 = arith.constant 0 : i32
    %c0_i32_1 = arith.constant 0 : i32
    return %c0_i32, %c0_i32_0 : i32, i32
  }
  func.func @transform_4(%arg0: i32) -> (i32, i32) {
    %c0_i32 = arith.constant 0 : i32
    %c0_i32_0 = arith.constant 0 : i32
    %c0_i32_1 = arith.constant 0 : i32
    return %c0_i32, %c0_i32_0 : i32, i32
  }
  func.func @transform_5(%arg0: i32) -> (i32, i32) {
    %c0_i32 = arith.constant 0 : i32
    %c0_i32_0 = arith.constant 0 : i32
    %c0_i32_1 = arith.constant 0 : i32
    return %c0_i32, %c0_i32_0 : i32, i32
  }
  func.func @transform_6(%arg0: i32) -> (i32, i32, i32) {
    %c0_i32 = arith.constant 0 : i32
    %c0_i32_0 = arith.constant 0 : i32
    %c0_i32_1 = arith.constant 0 : i32
    %c0_i32_2 = arith.constant 0 : i32
    return %c0_i32, %c0_i32_0, %c0_i32_1 : i32, i32, i32
  }
  func.func @transform_7(%arg0: i32) -> (i32, i32) {
    %c0_i32 = arith.constant 0 : i32
    %c0_i32_0 = arith.constant 0 : i32
    %c0_i32_1 = arith.constant 0 : i32
    return %c0_i32, %c0_i32_0 : i32, i32
  }
  func.func @transform_8(%arg0: i32) -> (i32, i32, i32) {
    %c0_i32 = arith.constant 0 : i32
    %c0_i32_0 = arith.constant 0 : i32
    %c0_i32_1 = arith.constant 0 : i32
    %c0_i32_2 = arith.constant 0 : i32
    return %c0_i32, %c0_i32_0, %c0_i32_1 : i32, i32, i32
  }
  func.func @transform_9(%arg0: i32) -> (i32, i32) {
    %c0_i32 = arith.constant 0 : i32
    %c0_i32_0 = arith.constant 0 : i32
    %c0_i32_1 = arith.constant 0 : i32
    return %c0_i32, %c0_i32_0 : i32, i32
  }
  func.func @transform_10(%arg0: i32) -> (i32, i32, i32) {
    %c0_i32 = arith.constant 0 : i32
    %c0_i32_0 = arith.constant 0 : i32
    %c0_i32_1 = arith.constant 0 : i32
    %c0_i32_2 = arith.constant 0 : i32
    return %c0_i32, %c0_i32_0, %c0_i32_1 : i32, i32, i32
  }
  func.func @transform_11(%arg0: i32) -> i32 {
    %c0_i32 = arith.constant 0 : i32
    %c0_i32_0 = arith.constant 0 : i32
    return %c0_i32 : i32
  }
  func.func @transform_12(%arg0: i32) -> (i32, i32, i32) {
    %c0_i32 = arith.constant 0 : i32
    %c0_i32_0 = arith.constant 0 : i32
    %c0_i32_1 = arith.constant 0 : i32
    return %arg0, %c0_i32, %c0_i32_0 : i32, i32, i32
  }
}

</mosaic_0001>

<bundles_post_ra>
// kernel: decoding_block_apply.1
= control target key start
LH: loop header
LB: loop body
LE: loop exit
PB: predicated region body
PF: predicated region fallthrough
CT: control target
= control target key end

     0   :  { %s8133_s0 = inlined_call_operand.vmem [shape: f32[2,4,256], index: 0, kind: input, shape index: {}]   ;;  %s8134_s1 = inlined_call_operand.vmem [shape: f32[2,8,64], index: 1, kind: input, shape index: {}]   ;;  %s8135_s2 = inlined_call_operand.hbm [shape: bf16[256,256], index: 2, kind: input, shape index: {}]   ;;  %s8136_s3 = inlined_call_operand.hbm [shape: bf16[64,256], index: 3, kind: input, shape index: {}]   ;;  %s8137_s4 = inlined_call_operand.hbm [shape: f32[4,8], index: 4, kind: input, shape index: {}]   ;;  %s8138_s5 = inlined_call_operand.vmem [shape: f32[4,1], index: 5, kind: input, shape index: {}]   ;;  %s8139_s6 = inlined_call_operand.vmem [shape: f32[9,4,8], index: 6, kind: input, shape index: {}]   ;;  %s8140_s7 = inlined_call_operand.vmem [shape: f32[4,1], index: 7, kind: input, shape index: {}]   ;;  %s8141_s8 = inlined_call_operand.vmem [shape: f32[9,4,4], index: 8, kind: input, shape index: {}]   ;;  %s8142_s9 = inlined_call_operand.vmem [shape: f32[4,1], index: 9, kind: input, shape index: {}]   ;;  %s8143_s10 = inlined_call_operand.hbm [shape: bf16[9,256,256], index: 10, kind: input, shape index: {}]   ;;  %s8144_s11 = inlined_call_operand.hbm [shape: f32[2], index: 11, kind: input, shape index: {}]   ;;  %s8145_s12 = inlined_call_operand.vmem [shape: f32[2,4,256], index: 12, kind: output, shape index: {}]  }
   0x1   :  { %8412 = sst [smem:[#allocation282_spill]] %s8135_s2 }
   0x2   :  { %8413 = sst [smem:[#allocation283_spill]] %s8136_s3 }
   0x3   :  { %17 = vsyncpa [#allocation4], 0 }
   0x4   :  { %18 = vsyncpa [#allocation7], 0 }
   0x5   :  { %19 = vsyncpa [#allocation10], 0 }
   0x6   :  { %20 = vsyncpa [#allocation5], 0  ;;  %s6633_s21 = smov 0  }
   0x7 LB: > { %s6639_s22 = sadd.s32 4294967295, %s6558_s21   ;;  %p4599_p0 = scmp.ge.s32.totalorder %s6558_s21, 1  ;;  %s6558_s21 = sphi %s6633_s21, %s26_s21  }
   0x8   : > { %p319_p1 = scmp.lt.s32.totalorder %s6558_s21, 3  ;;  %p6371_p2 = scmp.eq.s32.totalorder %s6639_s22, 0 }
   0x9   : > { %s8414_s3 = sld [smem:[#allocation283_spill]]  ;;  %s6560_s30 = smov [#allocation6]  }
   0xa   : > { %p6647_p3 = pnand %p4599_p0, %p319_p1  ;;  %s8416_s2 = sld [smem:[#allocation282_spill]] }
   0xb   : > { %s346_s13 = sshll.u32 %s6560_s30, 4  ;;  %s6561_s15 = smov [#allocation3]   ;;  %s347_s13 = int_to_ptr.vmem [resolvable:$true] %s346_s13 }
   0xc   : > { %p6355_p4 = pneg %p6647_p3  ;;  %s332_s16 = sshll.u32 %s6561_s15, 4  ;;  %s333_s16 = int_to_ptr.vmem [resolvable:$true] %s332_s16 }
   0xd   : > { %s359_s19 = sshll.u32 %s8137_s4, 4  ;;  %s6562_s20 = smov 128   ;;  %s360_s19 = int_to_ptr.hbm [resolvable:$true] %s359_s19 }
   0xe   : > { %p6658_p5 = pnand %p6371_p2, %p6355_p4  ;;  %s6563_s23 = smov 8  }
   0xf   : > { %s344_s25 = sshll.u32 %s8414_s3, 4  ;;  %s6564_s24 = smov [#allocation8]   ;;  %s345_s25 = int_to_ptr.hbm [resolvable:$true] %s344_s25 }
  0x10   : > { %s330_s29 = sshll.u32 %s8416_s2, 4  ;;  %s361_s27 = sshll.u32 %s6564_s24, 4  ;;  %s331_s29 = int_to_ptr.hbm [resolvable:$true] %s330_s29  ;;  %s362_s27 = int_to_ptr.vmem [resolvable:$true] %s361_s27 }
  0x11   : > { %6361 = dma.hbm_to_vmem [thread:$0]  (!%p6658_p5), %s345_s25, 1024, %s347_s13, [#allocation7], %s6562_s20, %s6562_s20, %s6563_s23  }
  0x12   : > { %6358 = dma.hbm_to_vmem [thread:$0]  (!%p6658_p5), %s331_s29, 4096, %s333_s16, [#allocation4], %s6562_s20, %s6562_s20, %s6563_s23  }
  0x13   : > { %s385_s15 = sshll.u32 %s8143_s10, 4  ;;  %s400_s2 = sshll.u32 %s8144_s11, 4  ;;  %s386_s15 = int_to_ptr.hbm [resolvable:$true] %s385_s15  ;;  %s401_s2 = int_to_ptr.hbm [resolvable:$true] %s400_s2 }
  0x14   : > { %6364 = dma.hbm_to_vmem [thread:$0]  (!%p6658_p5), %s360_s19, 64, %s362_s27, [#allocation7]  }
  0x15   : > { %s6565_s3 = smov [#allocation9]   ;;  %s6566_s29 = smov [#allocation11]  }
  0x16   : > { %s387_s25 = sshll.u32 %s6565_s3, 4  ;;  %428 = sbr.rel (%p6647_p3) target bundleno = 2976 (0xba0), region = 68  ;;  %s388_s25 = int_to_ptr.vmem [resolvable:$true] %s387_s25 }
  0x17   : > { %6367 = dma.hbm_to_vmem [thread:$0]  (!%p6658_p5), %s386_s15, 36864, %s388_s25, [#allocation10], %s6562_s20, %s6562_s20, %s6563_s23  }
  0x18   : > { %6370 = dma.hbm_to_smem (!%p6658_p5), %s401_s2, 16, %s6566_s29, [#allocation5]  }
  0x1b   : > { %6541 = dma.done.wait (%p6371_p2), [#allocation4], 4096  }
  0x1c   : > { %6543 = vsyncadd (%p6371_p2), [#allocation4], 4294963200 }
  0x1d   : > { %6545 = dma.done.wait (%p6371_p2), [#allocation7], 1088  }
  0x1e   : > { %6547 = vsyncadd (%p6371_p2), [#allocation7], 4294966208 }
  0x1f   : > { %6549 = dma.done.wait (%p6371_p2), [#allocation10], 36864  }
  0x20   : > { %6551 = vsyncadd (%p6371_p2), [#allocation10], 4294930432 }
  0x21   : > { %6553 = dma.done.wait (%p6371_p2), [#allocation5], 16  }
  0x22   : > { %6555 = vsyncadd (%p6371_p2), [#allocation5], 4294967280 }
  0x23   : > { %455 = sfence }
  0x24   : > { %p496_p6 = scmp.lt.s32.totalorder %s6639_s22, 1  ;;  %v4710_v0 = vld [vmem:[#allocation3 + $0x70] sm:$0xf]  ;;  %v6030_v1 = vld [vmem:[#allocation3 + $0x74] sm:$0xf0]  ;;  %vm513_vm0 = vcmask 64512  }
  0x25   : > { %v4702_v2 = vld [vmem:[#allocation3 + $0x60] sm:$0xf]  ;;  %v6028_v3 = vld [vmem:[#allocation3 + $0x64] sm:$0xf0]  ;;  %v4711_v4 = vor.u32 %v6030_v1, %v4710_v0  ;;  %v4774_v5 = vld [vmem:[#allocation3 + $0xf0] sm:$0xf] }
  0x26   : > { %s8951_s22 = smov (!%p496_p6, %s6639_s22), 1  ;;  %v6046_v6 = vld [vmem:[#allocation3 + $0xf4] sm:$0xf0]  ;;  %v511_v7 = vld [vmem:[#allocation8] sm:$0xf]  ;;  %v4703_v12 = vor.u32 %v6028_v3, %v4702_v2  ;;  %vm592_vm1 = vcmask 523264  }
  0x27   : > { %v4775_v8 = vor.u32 %v6046_v6, %v4774_v5  ;;  %v4644_v9 = vld [vmem:[#allocation6 + $0x30] sm:$0xf]  ;;  %v6014_v10 = vld [vmem:[#allocation6 + $0x34] sm:$0xf0]  ;;  %v6013_v11 = vld [vmem:[#allocation6 + $0x34] sm:$0xf]  ;;  %823 = vmatpush.bf16.msra.mxu3 %v4711_v4 }
  0x28   : > { %s6701_s2 = sshll.u32 %s8951_s22, 3  ;;  %v4646_v13 = vld [vmem:[#allocation6 + $0x38] sm:$0xf0]  ;;  %v4694_v14 = vld [vmem:[#allocation3 + $0x50] sm:$0xf]  ;;  %v4645_v15 = vor.u32 %v6014_v10, %v4644_v9  ;;  %s7742_s27 = sld [smem:[#allocation11]] }
  0x29   : > { %s500_s13 = scalar_lea.vmem %s8133_s0, %s6701_s2  ;;  %s504_s19 = scalar_lea.vmem %s8134_s1, %s6701_s2  ;;  %836 = vmatpush.bf16.msra.mxu0 %v4775_v8  ;;  %v4649_v16 = vor.u32 %v6013_v11, %v4646_v13  ;;  %v6026_v17 = vld [vmem:[#allocation3 + $0x54] sm:$0xf0]  ;;  %v4766_v18 = vld [vmem:[#allocation3 + $0xe0] sm:$0xf]  ;;  %v6044_v19 = vld [vmem:[#allocation3 + $0xe4] sm:$0xf0] }
  0x2a   : > { %v512_v20 = vld [vmem:[%s504_s19] sm:$0xff]  ;;  %v4767_v22 = vor.u32 %v6044_v19, %v4766_v18  ;;  %v4636_v23 = vld [vmem:[#allocation6 + $0x20] sm:$0xf]  ;;  %v6011_v25 = vld [vmem:[#allocation6 + $0x24] sm:$0xf]  ;;  %v4695_v26 = vor.u32 %v6026_v17, %v4694_v14  ;;  %vm3549_vm3 = vcmask 1043456   ;;  %s509_s25 = scalar_lea.vmem %s8145_s12, %s6701_s2 }
  0x2b   : > { %v622_v21 = vld [vmem:[%s500_s13] sm:$0xff]  ;;  %532 = vmatpush.msra.mxu1 %v512_v20  ;;  %613 = vmatpush.bf16.msra.mxu2 %v4649_v16  ;;  %v4686_v28 = vld [vmem:[#allocation3 + $0x40] sm:$0xf]  ;;  %v4758_v32 = vld [vmem:[#allocation3 + $0xd0] sm:$0xf]  ;;  %vm3545_vm4 = vcmask 31744  }
  0x2c   : > { %624 = vst [vmem:[#allocation1] ss:$2 sm:$0xff] %v622_v21  ;;  %v6012_v24 = vld [vmem:[#allocation6 + $0x24] sm:$0xf0]  ;;  %4617 = vmatmul.msk.f32.vlgmr.msra.gmra.mxu1 %vm513_vm0, %v511_v7  ;;  %824 = vmatpush.bf16.msra.mxu3 %v4703_v12  ;;  %v4638_v27 = vld [vmem:[#allocation6 + $0x28] sm:$0xf0] }
  0x2d   : > { %v6024_v29 = vld [vmem:[#allocation3 + $0x44] sm:$0xf0]  ;;  %600 = vmatpush.bf16.msrb.mxu1 %v4645_v15  ;;  %837 = vmatpush.bf16.msra.mxu0 %v4767_v22  ;;  %v4637_v30 = vor.u32 %v6012_v24, %v4636_v23  ;;  %v4641_v31 = vor.u32 %v6011_v25, %v4638_v27  ;;  %v6042_v33 = vld [vmem:[#allocation3 + $0xd4] sm:$0xf0]  ;;  %v4628_v34 = vld [vmem:[#allocation6 + $0x10] sm:$0xf] }
  0x2e   : > { %v4759_v35 = vor.u32 %v6042_v33, %v4758_v32  ;;  %v6010_v36 = vld [vmem:[#allocation6 + $0x14] sm:$0xf0]  ;;  %v6009_v37 = vld [vmem:[#allocation6 + $0x14] sm:$0xf]  ;;  %v4630_v38 = vld [vmem:[#allocation6 + $0x18] sm:$0xf0]  ;;  %v4687_v41 = vor.u32 %v6024_v29, %v4686_v28 }
  0x2f   : > { %614 = vmatpush.bf16.msra.mxu2 %v4641_v31  ;;  %v4633_v39 = vor.u32 %v6009_v37, %v4630_v38  ;;  %v4750_v40 = vld [vmem:[#allocation3 + $0xc0] sm:$0xf]  ;;  %v4678_v42 = vld [vmem:[#allocation3 + $0x30] sm:$0xf]  ;;  %v6022_v43 = vld [vmem:[#allocation3 + $0x34] sm:$0xf0]  ;;  %v4629_v45 = vor.u32 %v6010_v36, %v4628_v34 }
  0x30   : > { %825 = vmatpush.bf16.msra.mxu3 %v4695_v26  ;;  %v6040_v44 = vld [vmem:[#allocation3 + $0xc4] sm:$0xf0]  ;;  %v4620_v47 = vld [vmem:[#allocation6] sm:$0xf]  ;;  %v6007_v48 = vld [vmem:[#allocation6 + $0x4] sm:$0xf]  ;;  %v4679_v57 = vor.u32 %v6022_v43, %v4678_v42 }
  0x31   : > { %601 = vmatpush.bf16.msrb.mxu1 %v4637_v30  ;;  %838 = vmatpush.bf16.msra.mxu0 %v4759_v35  ;;  %v4751_v46 = vor.u32 %v6040_v44, %v4750_v40  ;;  %v4622_v49 = vld [vmem:[#allocation6 + $0x8] sm:$0xf0]  ;;  %v6008_v50 = vld [vmem:[#allocation6 + $0x4] sm:$0xf0]  ;;  %v6029_v51 = vld [vmem:[#allocation3 + $0x74] sm:$0xf] }
  0x32   : > { %v4712_v52 = vld [vmem:[#allocation3 + $0x78] sm:$0xf0]  ;;  %v4625_v53 = vor.u32 %v6007_v48, %v4622_v49  ;;  %v6045_v54 = vld [vmem:[#allocation3 + $0xf4] sm:$0xf]  ;;  %v4742_v56 = vld [vmem:[#allocation3 + $0xb0] sm:$0xf]  ;;  %v4621_v60 = vor.u32 %v6008_v50, %v4620_v47 }
  0x33   : > { %615 = vmatpush.bf16.msra.mxu2 %v4633_v39  ;;  %v4776_v55 = vld [vmem:[#allocation3 + $0xf8] sm:$0xf0]  ;;  %v6038_v59 = vld [vmem:[#allocation3 + $0xb4] sm:$0xf0]  ;;  %v4670_v61 = vld [vmem:[#allocation3 + $0x20] sm:$0xf]  ;;  %v4715_v1 = vor.u32 %v6029_v51, %v4712_v52 }
  0x34   : > { %826 = vmatpush.bf16.msra.mxu3 %v4687_v41  ;;  %v4779_v58 = vor.u32 %v6045_v54, %v4776_v55  ;;  %v6020_v62 = vld [vmem:[#allocation3 + $0x24] sm:$0xf0]  ;;  %v4743_v63 = vor.u32 %v6038_v59, %v4742_v56  ;;  %v6043_v0 = vld [vmem:[#allocation3 + $0xe4] sm:$0xf]  ;;  %v4768_v2 = vld [vmem:[#allocation3 + $0xe8] sm:$0xf0] }
  0x35   : > { %602 = vmatpush.bf16.msrb.mxu1 %v4629_v45  ;;  %839 = vmatpush.bf16.msra.mxu0 %v4751_v46  ;;  %v4734_v3 = vld [vmem:[#allocation3 + $0xa0] sm:$0xf]  ;;  %v6036_v4 = vld [vmem:[#allocation3 + $0xa4] sm:$0xf0]  ;;  %v6027_v5 = vld [vmem:[#allocation3 + $0x64] sm:$0xf]  ;;  %v4671_v7 = vor.u32 %v6020_v62, %v4670_v61  ;;  %v4771_v9 = vor.u32 %v6043_v0, %v4768_v2 }
  0x36   : > { %v4704_v6 = vld [vmem:[#allocation3 + $0x68] sm:$0xf0]  ;;  %v4662_v8 = vld [vmem:[#allocation3 + $0x10] sm:$0xf]  ;;  %v6018_v10 = vld [vmem:[#allocation3 + $0x14] sm:$0xf0]  ;;  %v4735_v11 = vor.u32 %v6036_v4, %v4734_v3 }
  0x37   : > { %616 = vmatpush.bf16.msra.mxu2 %v4625_v53  ;;  %v6041_v12 = vld [vmem:[#allocation3 + $0xd4] sm:$0xf]  ;;  %v4760_v13 = vld [vmem:[#allocation3 + $0xd8] sm:$0xf0]  ;;  %v4707_v14 = vor.u32 %v6027_v5, %v4704_v6  ;;  %v4726_v15 = vld [vmem:[#allocation3 + $0x90] sm:$0xf]  ;;  %v4663_v19 = vor.u32 %v6018_v10, %v4662_v8 }
  0x38   : > { %827 = vmatpush.bf16.msra.mxu3 %v4679_v57  ;;  %v6034_v16 = vld [vmem:[#allocation3 + $0x94] sm:$0xf0]  ;;  %v6025_v17 = vld [vmem:[#allocation3 + $0x54] sm:$0xf]  ;;  %v4696_v18 = vld [vmem:[#allocation3 + $0x58] sm:$0xf0]  ;;  %v4763_v20 = vor.u32 %v6041_v12, %v4760_v13 }
  0x39   : > { %603 = vmatpush.bf16.msrb.mxu1 %v4621_v60  ;;  %840 = vmatpush.bf16.msra.mxu0 %v4743_v63  ;;  %v4654_v21 = vld [vmem:[#allocation3] sm:$0xf]  ;;  %v6016_v22 = vld [vmem:[#allocation3 + $0x4] sm:$0xf0]  ;;  %v4727_v23 = vor.u32 %v6034_v16, %v4726_v15  ;;  %v4699_v24 = vor.u32 %v6025_v17, %v4696_v18  ;;  %v6023_v28 = vld [vmem:[#allocation3 + $0x44] sm:$0xf] }
  0x3a   : > { %v4655_v25 = vor.u32 %v6016_v22, %v4654_v21  ;;  %v625_v26 = vld.sshfl [vmem:[#allocation1] sm:$0xff pattern:$0x75316420]  ;;  %v6039_v30 = vld [vmem:[#allocation3 + $0xc4] sm:$0xf]  ;;  %v6567_v49 = vmov 0  }
  0x3b   : > { %862 = vmatpush.bf16.msrb.mxu2 %v4779_v58  ;;  %v629_v27 = vpack.c.bf16 %v625_v26, %v625_v26  ;;  %v4688_v29 = vld [vmem:[#allocation3 + $0x48] sm:$0xf0]  ;;  %v4718_v34 = vld [vmem:[#allocation3 + $0x80] sm:$0xf]  ;;  %v6032_v35 = vld [vmem:[#allocation3 + $0x84] sm:$0xf0]  ;;  %6397 = vset.pattern.permute.xlu0 %v6567_v49 }
  0x3c   : > { %828 = vmatpush.bf16.msra.mxu3 %v4671_v7  ;;  %v4691_v31 = vor.u32 %v6023_v28, %v4688_v29  ;;  %v4752_v32 = vld [vmem:[#allocation3 + $0xc8] sm:$0xf0]  ;;  %v4719_v36 = vor.u32 %v6032_v35, %v4718_v34  ;;  %v6021_v37 = vld [vmem:[#allocation3 + $0x34] sm:$0xf]  ;;  %v4680_v38 = vld [vmem:[#allocation3 + $0x38] sm:$0xf0]  ;;  %6398 = vset.pattern.permute.xlu1 %v6567_v49 }
  0x3d   : > { %849 = vmatpush.bf16.msra.mxu1 %v4715_v1  ;;  %841 = vmatpush.bf16.msra.mxu0 %v4735_v11  ;;  %v4755_v33 = vor.u32 %v6039_v30, %v4752_v32  ;;  %v4683_v39 = vor.u32 %v6021_v37, %v4680_v38  ;;  %v6037_v40 = vld [vmem:[#allocation3 + $0xb4] sm:$0xf]  ;;  %v4744_v41 = vld [vmem:[#allocation3 + $0xb8] sm:$0xf0]  ;;  %v6019_v44 = vld [vmem:[#allocation3 + $0x24] sm:$0xf] }
  0x3e   : > { %v4747_v42 = vor.u32 %v6037_v40, %v4744_v41  ;;  %v626_v43 = vld.sshfl [vmem:[#allocation1 + $0x8] sm:$0xff pattern:$0x75316420]  ;;  %v4672_v46 = vld [vmem:[#allocation3 + $0x28] sm:$0xf0]  ;;  %s5958_s15 = sld [smem:[#allocation11 + $0x1]] }
  0x3f   : > { %863 = vmatpush.bf16.msrb.mxu2 %v4771_v9  ;;  %v630_v45 = vpack.c.bf16 %v626_v43, %v626_v43  ;;  %v6035_v47 = vld [vmem:[#allocation3 + $0xa4] sm:$0xf]  ;;  %v4736_v48 = vld [vmem:[#allocation3 + $0xa8] sm:$0xf0]  ;;  %v4675_v50 = vor.u32 %v6019_v44, %v4672_v46  ;;  %v6017_v52 = vld [vmem:[#allocation3 + $0x14] sm:$0xf] }
  0x40   : > { %829 = vmatpush.bf16.msra.mxu3 %v4663_v19  ;;  %v4739_v51 = vor.u32 %v6035_v47, %v4736_v48  ;;  %v4664_v53 = vld [vmem:[#allocation3 + $0x18] sm:$0xf0]  ;;  %v6033_v54 = vld [vmem:[#allocation3 + $0x94] sm:$0xf]  ;;  %v546_v56 = vld [vmem:[%s8138_s5] sm:$0xf] }
  0x41   : > { %850 = vmatpush.bf16.msra.mxu1 %v4707_v14  ;;  %842 = vmatpush.bf16.msra.mxu0 %v4727_v23  ;;  %v4728_v55 = vld [vmem:[#allocation3 + $0x98] sm:$0xf0]  ;;  %v4667_v57 = vor.u32 %v6017_v52, %v4664_v53  ;;  %v6015_v59 = vld [vmem:[#allocation3 + $0x4] sm:$0xf]  ;;  %v4656_v60 = vld [vmem:[#allocation3 + $0x8] sm:$0xf0] }
  0x42   : > { %549 = vperm.xlu0 %6397, %v546_v56   ;;  %v4731_v58 = vor.u32 %v6033_v54, %v4728_v55  ;;  %v6031_v61 = vld [vmem:[#allocation3 + $0x84] sm:$0xf]  ;;  %v4720_v62 = vld [vmem:[#allocation3 + $0x88] sm:$0xf0]  ;;  %v4659_v63 = vor.u32 %v6015_v59, %v4656_v60  ;;  %v3528_v1 = vld [vmem:[%s8140_s7] sm:$0xf] }
  0x43   : > { %864 = vmatpush.bf16.msrb.mxu2 %v4763_v20  ;;  %v4723_v0 = vor.u32 %v6031_v61, %v4720_v62  ;;  %v6721_v17 = vld [vmem:[%s8139_s6] sm:$0xf]  ;;  %v4843_v18 = vld [vmem:[#allocation9 + $0x170] sm:$0xf]  ;;  %v6094_v19 = vld [vmem:[#allocation9 + $0x174] sm:$0xf0] }
  0x44   : > { %830 = vmatpush.bf16.msra.mxu3 %v4655_v25  ;;  %v6093_v20 = vld [vmem:[#allocation9 + $0x174] sm:$0xf]  ;;  %v6723_v21 = vor.u32 %v6094_v19, %v4843_v18  ;;  %v4845_v22 = vld [vmem:[#allocation9 + $0x178] sm:$0xf0]  ;;  %v4835_v23 = vld [vmem:[#allocation9 + $0x160] sm:$0xf] }
  0x45   : > { %851 = vmatpush.bf16.msra.mxu1 %v4699_v24  ;;  %843 = vmatpush.bf16.msra.mxu0 %v4719_v36  ;;  %v6727_v25 = vor.u32 %v6093_v20, %v4845_v22  ;;  %v6092_v26 = vld [vmem:[#allocation9 + $0x164] sm:$0xf0]  ;;  %v6091_v28 = vld [vmem:[#allocation9 + $0x164] sm:$0xf]  ;;  %v4837_v29 = vld [vmem:[#allocation9 + $0x168] sm:$0xf0] }
  0x46   : > { %v6090_v32 = vld [vmem:[#allocation9 + $0x154] sm:$0xf0]  ;;  %v6737_v34 = vor.u32 %v6091_v28, %v4837_v29  ;;  %v4907_v35 = vld [vmem:[#allocation9 + $0x1f0] sm:$0xf]  ;;  %v6089_v38 = vld [vmem:[#allocation9 + $0x154] sm:$0xf] }
  0x47   : > { %831 = vmatmul.bf16.vlgmr.msra.gmra.mxu3 %v629_v27  ;;  %865 = vmatpush.bf16.msrb.mxu2 %v4755_v33  ;;  %v6110_v36 = vld [vmem:[#allocation9 + $0x1f4] sm:$0xf0]  ;;  %v4819_v41 = vld [vmem:[#allocation9 + $0x140] sm:$0xf]  ;;  %v6747_v44 = vld [vmem:[%s8139_s6 + $0x4] sm:$0xf] }
  0x48   : > { %844 = vmatmul.bf16.vlgmr.msra.gmra.mxu0 %v630_v45  ;;  %v6742_v40 = vor.u32 %v6110_v36, %v4907_v35  ;;  %v4899_v43 = vld [vmem:[#allocation9 + $0x1e0] sm:$0xf]  ;;  %v6087_v47 = vld [vmem:[#allocation9 + $0x144] sm:$0xf]  ;;  %v6106_v52 = vld [vmem:[#allocation9 + $0x1d4] sm:$0xf0] }
  0x49   : > { %852 = vmatpush.bf16.msra.mxu1 %v4691_v31  ;;  %v4827_v31 = vld [vmem:[#allocation9 + $0x150] sm:$0xf]  ;;  %v6086_v55 = vld [vmem:[#allocation9 + $0x134] sm:$0xf0]  ;;  %v4883_v60 = vld [vmem:[#allocation9 + $0x1c0] sm:$0xf] }
  0x4a   : > { %3531 = vperm.xlu0 %6397, %v3528_v1   ;;  %v6740_v37 = vor.u32 %v6090_v32, %v4827_v31  ;;  %v4811_v54 = vld [vmem:[#allocation9 + $0x130] sm:$0xf]  ;;  %v6104_v61 = vld [vmem:[#allocation9 + $0x1c4] sm:$0xf0]  ;;  %v4803_v1 = vld [vmem:[#allocation9 + $0x120] sm:$0xf] }
  0x4b   : > { %866 = vmatpush.bf16.msrb.mxu2 %v4747_v42  ;;  %v6088_v42 = vld [vmem:[#allocation9 + $0x144] sm:$0xf0]  ;;  %v6767_v62 = vor.u32 %v6086_v55, %v4811_v54  ;;  %v4867_v22 = vld [vmem:[#allocation9 + $0x1a0] sm:$0xf]  ;;  %v6081_v29 = vld [vmem:[#allocation9 + $0x114] sm:$0xf] }
  0x4c   : > { %v6756_v49 = vor.u32 %v6088_v42, %v4819_v41  ;;  %v4787_v31 = vld [vmem:[#allocation9 + $0x100] sm:$0xf]  ;;  %v6080_v32 = vld [vmem:[#allocation9 + $0x104] sm:$0xf0]  ;;  %v6062_v35 = vld [vmem:[#allocation9 + $0x74] sm:$0xf0] }
  0x4d   : > { %853 = vmatpush.bf16.msra.mxu1 %v4683_v39  ;;  %v4829_v39 = vld [vmem:[#allocation9 + $0x158] sm:$0xf0]  ;;  %v6098_v42 = vld [vmem:[#allocation9 + $0x194] sm:$0xf0]  ;;  %v4963_v54 = vld [vmem:[#allocation9 + $0x60] sm:$0xf] }
  0x4e   : > { %v6751_v46 = vor.u32 %v6089_v38, %v4829_v39  ;;  %v6105_v39 = vld [vmem:[#allocation9 + $0x1d4] sm:$0xf]  ;;  %v6060_v55 = vld [vmem:[#allocation9 + $0x64] sm:$0xf0] }
  0x4f   : > { %867 = vmatpush.bf16.msrb.mxu2 %v4739_v51  ;;  %v4891_v51 = vld [vmem:[#allocation9 + $0x1d0] sm:$0xf] }
  0x51   : > { %854 = vmatpush.bf16.msra.mxu1 %v4675_v50  ;;  %v4821_v50 = vld [vmem:[#allocation9 + $0x148] sm:$0xf0] }
  0x52   : > { %v6764_v59 = vor.u32 %v6087_v47, %v4821_v50  ;;  %v6079_v47 = vld [vmem:[#allocation9 + $0x104] sm:$0xf]  ;;  %v4789_v50 = vld [vmem:[#allocation9 + $0x108] sm:$0xf0] }
  0x53   : > { %868 = vmatpush.bf16.msrb.mxu2 %v4731_v58 }
  0x55   : > { %855 = vmatpush.bf16.msra.mxu1 %v4667_v57  ;;  %v6761_v57 = vor.u32 %v6106_v52, %v4891_v51  ;;  %v6061_v52 = vld [vmem:[#allocation9 + $0x74] sm:$0xf] }
  0x57   : > { %869 = vmatpush.bf16.msrb.mxu2 %v4723_v0  ;;  %v4813_v0 = vld [vmem:[#allocation9 + $0x138] sm:$0xf0] }
  0x59   : > { %856 = vmatpush.bf16.msra.mxu1 %v4659_v63  ;;  %v6085_v63 = vld [vmem:[#allocation9 + $0x134] sm:$0xf] }
  0xa9   : > { %v534_v2 = vpop.f32.mrf.mxu1 }
  0xaa   : > { %v537_v3 = vpack.c.bf16 %v534_v2, %v534_v2  ;;  %v6084_v2 = vld [vmem:[#allocation9 + $0x124] sm:$0xf0] }
  0xac   : > { %4650 = vmatmul.msk.bf16.vlgmr.msrb.gmra.mxu1 %vm592_vm1, %v537_v3  ;;  %4651 = vmatmul.msk.bf16.vlgmr.msra.gmra.mxu2 %vm592_vm1, %v537_v3  ;;  %v6770_v3 = vor.u32 %v6104_v61, %v4883_v60  ;;  %v6103_v60 = vld [vmem:[#allocation9 + $0x1c4] sm:$0xf]  ;;  %v6816_v61 = vor.u32 %v6079_v47, %v4789_v50  ;;  %v4949_v47 = vld [vmem:[#allocation9 + $0x48] sm:$0xf0]  ;;  %v4939_v50 = vld [vmem:[#allocation9 + $0x30] sm:$0xf] }
  0xad   : > { %1206 = vmatpush.bf16.msrb.mxu1 %v6723_v21  ;;  %1219 = vmatpush.bf16.msra.mxu2 %v6742_v40 }
  0xae   : > { %8425 = vst [vmem:[#allocation23_spill] sm:$0xff] %v6816_v61 }
  0xb4   : > { %v550_v9 = vpop.permute.xlu0 %549 }
  0xbc   : > { %857 = vmatmul.bf16.vlgmr.msra.gmra.mxu1 %v629_v27  ;;  %870 = vmatmul.bf16.vlgmr.msrb.gmra.mxu2 %v630_v45  ;;  %v6731_v27 = vor.u32 %v6092_v26, %v4835_v23  ;;  %v6108_v45 = vld [vmem:[#allocation9 + $0x1e4] sm:$0xf0]  ;;  %v4901_v26 = vld [vmem:[#allocation9 + $0x1e8] sm:$0xf0] }
  0xbd   : > { %v6753_v48 = vor.u32 %v6108_v45, %v4899_v43  ;;  %v6100_v23 = vld [vmem:[#allocation9 + $0x1a4] sm:$0xf0]  ;;  %v4893_v43 = vld [vmem:[#allocation9 + $0x1d8] sm:$0xf0]  ;;  %v6805_v45 = vor.u32 %v6080_v32, %v4787_v31  ;;  %v4947_v31 = vld [vmem:[#allocation9 + $0x40] sm:$0xf] }
  0xbe   : > { %1207 = vmatpush.bf16.msrb.mxu1 %v6731_v27  ;;  %v6796_v36 = vor.u32 %v6100_v23, %v4867_v22  ;;  %v4877_v22 = vld [vmem:[#allocation9 + $0x1b8] sm:$0xf0]  ;;  %v6056_v32 = vld [vmem:[#allocation9 + $0x44] sm:$0xf0] }
  0xbf   : > { %1220 = vmatpush.bf16.msra.mxu2 %v6753_v48  ;;  %8422 = vst [vmem:[#allocation20_spill] sm:$0xff] %v6805_v45 }
  0xc0   : > { %8420 = vst [vmem:[#allocation18_spill] sm:$0xff] %v6796_v36 }
  0xc2   : > { %1208 = vmatpush.bf16.msrb.mxu1 %v6740_v37 }
  0xc3   : > { %1221 = vmatpush.bf16.msra.mxu2 %v6761_v57 }
  0xc5   : > { %v845_v5 = vpop.f32.mrf.mxu0 }
  0xc6   : > { %1209 = vmatpush.bf16.msrb.mxu1 %v6756_v49 }
  0xc7   : > { %1222 = vmatpush.bf16.msra.mxu2 %v6770_v3 }
  0xca   : > { %v832_v4 = vpop.f32.mrf.mxu3  ;;  %1210 = vmatpush.bf16.msrb.mxu1 %v6767_v62 }
  0xcb   : > { %v846_v6 = vadd.f32 %v845_v5, %v832_v4  ;;  %v6109_v4 = vld [vmem:[#allocation9 + $0x1f4] sm:$0xf]  ;;  %v6773_v5 = vor.u32 %v6085_v63, %v4813_v0  ;;  %v4851_v63 = vld [vmem:[#allocation9 + $0x180] sm:$0xf]  ;;  %v6096_v0 = vld [vmem:[#allocation9 + $0x184] sm:$0xf0] }
  0xcd   : > { %875 = vst [vmem:[#allocation2] sm:$0xf] %v846_v6  ;;  %v847_v8 = vpop.f32.mrf.mxu0  ;;  %v4875_v6 = vld [vmem:[#allocation9 + $0x1b0] sm:$0xf] }
  0xce   : > { %v4909_v8 = vld [vmem:[#allocation9 + $0x1f8] sm:$0xf0] }
  0xcf   : > { %v6783_v19 = vor.u32 %v6109_v4, %v4909_v8  ;;  %v5035_v4 = vld [vmem:[#allocation9 + $0xf0] sm:$0xf]  ;;  %v6059_v8 = vld [vmem:[#allocation9 + $0x64] sm:$0xf] }
  0xd2   : > { %v834_v7 = vpop.f32.mrf.mxu3 }
  0xd3   : > { %v6102_v7 = vld [vmem:[#allocation9 + $0x1b4] sm:$0xf0] }
 0x129   : > { %v605_v10 = vpop.f32.mrf.mxu1 }
 0x12a   : > { %v606_v11 = vadd.f32 %v605_v10, %v550_v9  ;;  %v6083_v10 = vld [vmem:[#allocation9 + $0x124] sm:$0xf] }
 0x12c   : > { %v879_v12 = vrot.slane %v606_v11, 4  ;;  %v4805_v11 = vld [vmem:[#allocation9 + $0x128] sm:$0xf0] }
 0x12d   : > { %v6786_v20 = vor.u32 %v6083_v10, %v4805_v11  ;;  %v4965_v10 = vld [vmem:[#allocation9 + $0x68] sm:$0xf0]  ;;  %v4955_v11 = vld [vmem:[#allocation9 + $0x50] sm:$0xf] }
 0x12e   : > { %883 = vst [vmem:[#allocation2] sm:$0xf0] %v879_v12  ;;  %v6836_v23 = vor.u32 %v6059_v8, %v4965_v10  ;;  %v4853_v8 = vld [vmem:[#allocation9 + $0x188] sm:$0xf0] }
 0x12f   : > { %v618_v13 = vpop.f32.mrf.mxu2 }
 0x130   : > { %v619_v14 = vadd.f32 %v618_v13, %v550_v9  ;;  %v6776_v9 = vor.u32 %v6084_v2, %v4803_v1  ;;  %v4795_v13 = vld [vmem:[#allocation9 + $0x110] sm:$0xf]  ;;  %v4885_v1 = vld [vmem:[#allocation9 + $0x1c8] sm:$0xf0]  ;;  %8430 = vst [vmem:[#allocation28_spill] sm:$0xff] %v6836_v23 }
 0x131   : > { %v607_v15 = vpop.f32.mrf.mxu1 }
 0x132   : > { %v880_v16 = vrot.slane %v619_v14, 4  ;;  %v6082_v14 = vld [vmem:[#allocation9 + $0x114] sm:$0xf0]  ;;  %v6107_v15 = vld [vmem:[#allocation9 + $0x1e4] sm:$0xf]  ;;  %1211 = vmatpush.bf16.msrb.mxu1 %v6776_v9 }
 0x133   : > { %v6790_v28 = vor.u32 %v6082_v14, %v4795_v13  ;;  %v6799_v38 = vor.u32 %v6107_v15, %v4901_v26  ;;  %v6827_v13 = vor.u32 %v6096_v0, %v4851_v63  ;;  %v6830_v14 = vor.u32 %v6103_v60, %v4885_v1  ;;  %v6053_v0 = vld [vmem:[#allocation9 + $0x34] sm:$0xf]  ;;  %v4941_v1 = vld [vmem:[#allocation9 + $0x38] sm:$0xf0] }
 0x134   : > { %884 = vst [vmem:[#allocation2 + $0x8] sm:$0xf0] %v880_v16  ;;  %v6779_v16 = vor.u32 %v6102_v7, %v4875_v6  ;;  %v6078_v6 = vld [vmem:[#allocation9 + $0xf4] sm:$0xf0]  ;;  %v6824_v7 = vor.u32 %v6060_v55, %v4963_v54  ;;  %v6097_v54 = vld [vmem:[#allocation9 + $0x194] sm:$0xf]  ;;  %v6865_v10 = vor.u32 %v6053_v0, %v4941_v1 }
 0x135   : > { %v6725_v24 = vld [vmem:[#allocation2] sm:$0xff]  ;;  %8419 = vst [vmem:[#allocation17_spill] sm:$0xff] %v6790_v28  ;;  %v6833_v15 = vor.u32 %v6078_v6, %v5035_v4  ;;  %v4861_v55 = vld [vmem:[#allocation9 + $0x198] sm:$0xf0]  ;;  %v6095_v6 = vld [vmem:[#allocation9 + $0x184] sm:$0xf] }
 0x136   : > { %907 = vmatpush.msrb.mxu3 %v6725_v24  ;;  %8418 = vst [vmem:[#allocation16_spill] sm:$0xff] %v6779_v16  ;;  %1223 = vmatpush.bf16.msra.mxu2 %v6779_v16  ;;  %v6862_v4 = vor.u32 %v6097_v54, %v4861_v55  ;;  %v4933_v54 = vld [vmem:[#allocation9 + $0x28] sm:$0xf0]  ;;  %v5019_v55 = vld [vmem:[#allocation9 + $0xd0] sm:$0xf] }
 0x137   : > { %v620_v30 = vpop.f32.mrf.mxu2  ;;  %4780 = vmatmul.msk.f32.vlgmr.msrb.gmra.mxu3 %vm513_vm0, %v6721_v17  ;;  %1212 = vmatpush.bf16.msrb.mxu1 %v6790_v28  ;;  %8427 = vst [vmem:[#allocation25_spill] sm:$0xff] %v6824_v7  ;;  %v6074_v0 = vld [vmem:[#allocation9 + $0xd4] sm:$0xf0] }
 0x138   : > { %986 = vmatpush.msra.mxu3 %v6725_v24  ;;  %v4797_v30 = vld [vmem:[#allocation9 + $0x118] sm:$0xf0]  ;;  %8428 = vst [vmem:[#allocation26_spill] sm:$0xff] %v6827_v13  ;;  %v6334_v28 = vld [vmem:[#allocation9 + $0x8f4] sm:$0xf0] }
 0x139   : > { %v858_v33 = vpop.f32.mrf.mxu1  ;;  %v6802_v41 = vor.u32 %v6081_v29, %v4797_v30  ;;  %8429 = vst [vmem:[#allocation27_spill] sm:$0xff] %v6833_v15  ;;  %v6057_v29 = vld [vmem:[#allocation9 + $0x54] sm:$0xf]  ;;  %v4957_v30 = vld [vmem:[#allocation9 + $0x58] sm:$0xf0] }
 0x13a   : > { %1232 = vmatpush.bf16.msrb.mxu3 %v6727_v25  ;;  %1224 = vmatpush.bf16.msra.mxu2 %v6796_v36  ;;  %8438 = vst [vmem:[#allocation36_spill] sm:$0xff] %v6862_v4  ;;  %v6316_v36 = vld [vmem:[#allocation9 + $0x864] sm:$0xf0] }
 0x13b   : > { %8421 = vst [vmem:[#allocation19_spill] sm:$0xff] %v6802_v41  ;;  %1213 = vmatpush.bf16.msrb.mxu1 %v6805_v45  ;;  %v5684_v45 = vld [vmem:[#allocation9 + $0x6e8] sm:$0xf0] }
 0x13c   : > { %8439 = vst [vmem:[#allocation37_spill] sm:$0xff] %v6865_v10 }
 0x13e   : > { %1233 = vmatpush.bf16.msrb.mxu3 %v6737_v34 }
 0x13f   : > { %v871_v53 = vpop.f32.mrf.mxu2  ;;  %4783 = vmatmul.msk.f32.vlgmr.msra.gmra.mxu3 %vm513_vm0, %v6747_v44 }
 0x140   : > { %v872_v56 = vadd.f32 %v871_v53, %v858_v33  ;;  %v4971_v33 = vld [vmem:[#allocation9 + $0x70] sm:$0xf]  ;;  %v4973_v53 = vld [vmem:[#allocation9 + $0x78] sm:$0xf0] }
 0x141   : > { %v860_v58 = vpop.f32.mrf.mxu1  ;;  %v6807_v51 = vor.u32 %v6062_v35, %v4971_v33  ;;  %v6819_v2 = vor.u32 %v6061_v52, %v4973_v53  ;;  %v6099_v35 = vld [vmem:[#allocation9 + $0x1a4] sm:$0xf]  ;;  %v6054_v52 = vld [vmem:[#allocation9 + $0x34] sm:$0xf0] }
 0x142   : > { %1234 = vmatpush.bf16.msrb.mxu3 %v6751_v46  ;;  %876 = vst [vmem:[#allocation2 + $0x8] sm:$0xf] %v872_v56  ;;  %v6813_v58 = vor.u32 %v6105_v39, %v4893_v43  ;;  %v4869_v39 = vld [vmem:[#allocation9 + $0x1a8] sm:$0xf0]  ;;  %v6055_v43 = vld [vmem:[#allocation9 + $0x44] sm:$0xf]  ;;  %v6859_v63 = vor.u32 %v6054_v52, %v4939_v50 }
 0x143   : > { %8423 = vst [vmem:[#allocation21_spill] sm:$0xff] %v6807_v51  ;;  %1418 = vmatpush.bf16.msra.mxu1 %v6807_v51  ;;  %v6853_v53 = vor.u32 %v6099_v35, %v4869_v39  ;;  %v6856_v60 = vor.u32 %v6055_v43, %v4949_v47  ;;  %v5029_v35 = vld [vmem:[#allocation9 + $0xe8] sm:$0xf0]  ;;  %v4931_v43 = vld [vmem:[#allocation9 + $0x20] sm:$0xf] }
 0x144   : > { %8426 = vst [vmem:[#allocation24_spill] sm:$0xff] %v6819_v2  ;;  %v6052_v47 = vld [vmem:[#allocation9 + $0x24] sm:$0xf0]  ;;  %v6051_v50 = vld [vmem:[#allocation9 + $0x24] sm:$0xf] }
 0x145   : > { %8435 = vst [vmem:[#allocation33_spill] sm:$0xff] %v6853_v53  ;;  %v6881_v52 = vor.u32 %v6052_v47, %v4931_v43  ;;  %v6884_v1 = vor.u32 %v6051_v50, %v4933_v54  ;;  %v5011_v50 = vld [vmem:[#allocation9 + $0xc0] sm:$0xf]  ;;  %v6072_v54 = vld [vmem:[#allocation9 + $0xc4] sm:$0xf0] }
 0x146   : > { %1235 = vmatpush.bf16.msrb.mxu3 %v6764_v59  ;;  %8436 = vst [vmem:[#allocation34_spill] sm:$0xff] %v6856_v60  ;;  %v6245_v51 = vld [vmem:[#allocation9 + $0x634] sm:$0xf] }
 0x147   : > { %v873_v12 = vpop.f32.mrf.mxu2  ;;  %1419 = vmatpush.bf16.msra.mxu1 %v6824_v7  ;;  %8437 = vst [vmem:[#allocation35_spill] sm:$0xff] %v6859_v63 }
 0x148   : > { %v6058_v12 = vld [vmem:[#allocation9 + $0x54] sm:$0xf0]  ;;  %8444 = vst [vmem:[#allocation42_spill] sm:$0xff] %v6881_v52 }
 0x149   : > { %v6781_v18 = vld [vmem:[#allocation2 + $0x8] sm:$0xff]  ;;  %v6839_v26 = vor.u32 %v6058_v12, %v4955_v11  ;;  %v5037_v12 = vld [vmem:[#allocation9 + $0xf8] sm:$0xf0]  ;;  %8445 = vst [vmem:[#allocation43_spill] sm:$0xff] %v6884_v1 }
 0x14a   : > { %1236 = vmatpush.bf16.msrb.mxu3 %v6773_v5  ;;  %927 = vmatpush.msrb.mxu0 %v6781_v18  ;;  %v6077_v11 = vld [vmem:[#allocation9 + $0xf4] sm:$0xf] }
 0x14b   : > { %4781 = vmatmul.msk.f32.vlgmr.msrb.gmra.mxu0 %vm513_vm0, %v6721_v17  ;;  %v4859_v17 = vld [vmem:[#allocation9 + $0x190] sm:$0xf]  ;;  %8431 = vst [vmem:[#allocation29_spill] sm:$0xff] %v6839_v26  ;;  %1420 = vmatpush.bf16.msra.mxu1 %v6839_v26 }
 0x14c   : > { %1006 = vmatpush.msra.mxu0 %v6781_v18  ;;  %v6810_v56 = vor.u32 %v6098_v42, %v4859_v17  ;;  %v6847_v17 = vor.u32 %v6057_v29, %v4957_v30  ;;  %v6850_v42 = vor.u32 %v6056_v32, %v4947_v31  ;;  %v5027_v29 = vld [vmem:[#allocation9 + $0xe0] sm:$0xf]  ;;  %v6076_v30 = vld [vmem:[#allocation9 + $0xe4] sm:$0xf0]  ;;  %v6075_v31 = vld [vmem:[#allocation9 + $0xe4] sm:$0xf] }
 0x14d   : > { %v6876_v32 = vor.u32 %v6076_v30, %v5027_v29  ;;  %v6878_v39 = vor.u32 %v6075_v31, %v5029_v35  ;;  %v6050_v30 = vld [vmem:[#allocation9 + $0x14] sm:$0xf0]  ;;  %v6049_v31 = vld [vmem:[#allocation9 + $0x14] sm:$0xf]  ;;  %v4925_v35 = vld [vmem:[#allocation9 + $0x18] sm:$0xf0] }
 0x14e   : > { %1245 = vmatpush.bf16.msrb.mxu0 %v6783_v19  ;;  %1237 = vmatpush.bf16.msrb.mxu3 %v6786_v20  ;;  %8424 = vst [vmem:[#allocation22_spill] sm:$0xff] %v6810_v56  ;;  %v6894_v47 = vor.u32 %v6049_v31, %v4925_v35  ;;  %v6047_v31 = vld [vmem:[#allocation9 + $0x4] sm:$0xf] }
 0x14f   : > { %1225 = vmatpush.bf16.msra.mxu2 %v6810_v56  ;;  %8433 = vst [vmem:[#allocation31_spill] sm:$0xff] %v6847_v17  ;;  %1421 = vmatpush.bf16.msra.mxu1 %v6850_v42 }
 0x150   : > { %8434 = vst [vmem:[#allocation32_spill] sm:$0xff] %v6850_v42  ;;  %v6114_v42 = vld [vmem:[#allocation9 + $0x214] sm:$0xf0] }
 0x151   : > { %8442 = vst [vmem:[#allocation40_spill] sm:$0xff] %v6876_v32 }
 0x152   : > { %1246 = vmatpush.bf16.msrb.mxu0 %v6799_v38  ;;  %1238 = vmatpush.bf16.msrb.mxu3 %v6802_v41  ;;  %8443 = vst [vmem:[#allocation41_spill] sm:$0xff] %v6878_v39  ;;  %v5952_v41 = vld [vmem:[#allocation9 + $0x8f0] sm:$0xf] }
 0x153   : > { %4784 = vmatmul.msk.f32.vlgmr.msra.gmra.mxu0 %vm513_vm0, %v6747_v44  ;;  %v6101_v44 = vld [vmem:[#allocation9 + $0x1b4] sm:$0xf]  ;;  %1226 = vmatpush.bf16.msra.mxu2 %v6827_v13  ;;  %8449 = vst [vmem:[#allocation47_spill] sm:$0xff] %v6894_v47  ;;  %v5495_v13 = vld [vmem:[#allocation9 + $0x570] sm:$0xf] }
 0x154   : > { %v6843_v33 = vor.u32 %v6101_v44, %v4877_v22  ;;  %1422 = vmatpush.bf16.msra.mxu1 %v6859_v63  ;;  %v6869_v44 = vor.u32 %v6095_v6, %v4853_v8  ;;  %v6871_v22 = vor.u32 %v6077_v11, %v5037_v12  ;;  %v6886_v6 = vor.u32 %v6074_v0, %v5019_v55  ;;  %v6073_v8 = vld [vmem:[#allocation9 + $0xd4] sm:$0xf]  ;;  %v5021_v11 = vld [vmem:[#allocation9 + $0xd8] sm:$0xf0]  ;;  %v4923_v12 = vld [vmem:[#allocation9 + $0x10] sm:$0xf] }
 0x155   : > { %v6889_v29 = vor.u32 %v6073_v8, %v5021_v11  ;;  %v6892_v43 = vor.u32 %v6050_v30, %v4923_v12  ;;  %v6071_v55 = vld [vmem:[#allocation9 + $0xc4] sm:$0xf]  ;;  %v6899_v0 = vor.u32 %v6072_v54, %v5011_v50  ;;  %v5013_v8 = vld [vmem:[#allocation9 + $0xc8] sm:$0xf0]  ;;  %v4915_v12 = vld [vmem:[#allocation9] sm:$0xf] }
 0x156   : > { %1247 = vmatpush.bf16.msrb.mxu0 %v6813_v58  ;;  %1239 = vmatpush.bf16.msrb.mxu3 %v6816_v61  ;;  %8432 = vst [vmem:[#allocation30_spill] sm:$0xff] %v6843_v33  ;;  %v6902_v11 = vor.u32 %v6071_v55, %v5013_v8  ;;  %v6048_v30 = vld [vmem:[#allocation9 + $0x4] sm:$0xf0]  ;;  %v6070_v50 = vld [vmem:[#allocation9 + $0xb4] sm:$0xf0] }
 0x157   : > { %1431 = vmatpush.bf16.msrb.mxu2 %v6833_v15  ;;  %8440 = vst [vmem:[#allocation38_spill] sm:$0xff] %v6869_v44  ;;  %v6905_v35 = vor.u32 %v6048_v30, %v4915_v12  ;;  %v6069_v54 = vld [vmem:[#allocation9 + $0xb4] sm:$0xf]  ;;  %v5005_v55 = vld [vmem:[#allocation9 + $0xb8] sm:$0xf0] }
 0x158   : > { %8441 = vst [vmem:[#allocation39_spill] sm:$0xff] %v6871_v22  ;;  %1423 = vmatpush.bf16.msra.mxu1 %v6881_v52  ;;  %v6914_v8 = vor.u32 %v6069_v54, %v5005_v55  ;;  %v4995_v12 = vld [vmem:[#allocation9 + $0xa0] sm:$0xf]  ;;  %v6068_v30 = vld [vmem:[#allocation9 + $0xa4] sm:$0xf0] }
 0x159   : > { %8446 = vst [vmem:[#allocation44_spill] sm:$0xff] %v6886_v6  ;;  %v6065_v54 = vld [vmem:[#allocation9 + $0x94] sm:$0xf] }
 0x15a   : > { %1444 = vmatpush.bf16.msra.mxu3 %v6819_v2  ;;  %1248 = vmatpush.bf16.msrb.mxu0 %v6830_v14  ;;  %8447 = vst [vmem:[#allocation45_spill] sm:$0xff] %v6889_v29  ;;  %v5529_v2 = vld [vmem:[#allocation9 + $0x5b8] sm:$0xf0] }
 0x15b   : > { %1432 = vmatpush.bf16.msrb.mxu2 %v6876_v32  ;;  %8448 = vst [vmem:[#allocation46_spill] sm:$0xff] %v6892_v43  ;;  %v6147_v32 = vld [vmem:[#allocation9 + $0x324] sm:$0xf] }
 0x15c   : > { %1424 = vmatpush.bf16.msra.mxu1 %v6892_v43  ;;  %8450 = vst [vmem:[#allocation48_spill] sm:$0xff] %v6899_v0  ;;  %v5003_v43 = vld [vmem:[#allocation9 + $0xb0] sm:$0xf] }
 0x15d   : > { %8451 = vst [vmem:[#allocation49_spill] sm:$0xff] %v6902_v11 }
 0x15e   : > { %1445 = vmatpush.bf16.msra.mxu3 %v6836_v23  ;;  %1249 = vmatpush.bf16.msrb.mxu0 %v6843_v33  ;;  %8452 = vst [vmem:[#allocation50_spill] sm:$0xff] %v6905_v35  ;;  %v5398_v23 = vld [vmem:[#allocation9 + $0x4b8] sm:$0xf0] }
 0x15f   : > { %1433 = vmatpush.bf16.msrb.mxu2 %v6886_v6  ;;  %8455 = vst [vmem:[#allocation53_spill] sm:$0xff] %v6914_v8  ;;  %v6140_v6 = vld [vmem:[#allocation9 + $0x2e4] sm:$0xf0] }
 0x160   : > { %1425 = vmatpush.bf16.msra.mxu1 %v6905_v35 }
 0x162   : > { %1446 = vmatpush.bf16.msra.mxu3 %v6847_v17  ;;  %1250 = vmatpush.bf16.msrb.mxu0 %v6853_v53  ;;  %v5267_v17 = vld [vmem:[#allocation9 + $0x3b8] sm:$0xf0] }
 0x163   : > { %1434 = vmatpush.bf16.msrb.mxu2 %v6899_v0  ;;  %v5660_v53 = vld [vmem:[#allocation9 + $0x6b8] sm:$0xf0] }
 0x166   : > { %1447 = vmatpush.bf16.msra.mxu3 %v6856_v60  ;;  %1251 = vmatpush.bf16.msrb.mxu0 %v6862_v4  ;;  %v6211_v4 = vld [vmem:[#allocation9 + $0x524] sm:$0xf] }
 0x16a   : > { %1448 = vmatpush.bf16.msra.mxu3 %v6865_v10  ;;  %1252 = vmatpush.bf16.msrb.mxu0 %v6869_v44  ;;  %v5070_v10 = vld [vmem:[#allocation9 + $0x230] sm:$0xf]  ;;  %v5422_v44 = vld [vmem:[#allocation9 + $0x4e8] sm:$0xf0] }
 0x16e   : > { %1457 = vmatpush.bf16.msra.mxu0 %v6871_v22  ;;  %1449 = vmatpush.bf16.msra.mxu3 %v6884_v1  ;;  %v4917_v1 = vld [vmem:[#allocation9 + $0x8] sm:$0xf0]  ;;  %v6181_v22 = vld [vmem:[#allocation9 + $0x434] sm:$0xf] }
 0x16f   : > { %v6908_v52 = vor.u32 %v6047_v31, %v4917_v1  ;;  %v6067_v1 = vld [vmem:[#allocation9 + $0xa4] sm:$0xf]  ;;  %v6918_v31 = vor.u32 %v6068_v30, %v4995_v12  ;;  %v4979_v12 = vld [vmem:[#allocation9 + $0x80] sm:$0xf]  ;;  %v6064_v30 = vld [vmem:[#allocation9 + $0x84] sm:$0xf0] }
 0x171   : > { %8453 = vst [vmem:[#allocation51_spill] sm:$0xff] %v6908_v52 }
 0x172   : > { %1458 = vmatpush.bf16.msra.mxu0 %v6878_v39  ;;  %1450 = vmatpush.bf16.msra.mxu3 %v6894_v47  ;;  %v6911_v47 = vor.u32 %v6070_v50, %v5003_v43  ;;  %8456 = vst [vmem:[#allocation54_spill] sm:$0xff] %v6918_v31  ;;  %v4987_v43 = vld [vmem:[#allocation9 + $0x90] sm:$0xf]  ;;  %v6066_v50 = vld [vmem:[#allocation9 + $0x94] sm:$0xf0] }
 0x173   : > { %v6924_v55 = vor.u32 %v6066_v50, %v4987_v43  ;;  %v5102_v50 = vld [vmem:[#allocation9 + $0x270] sm:$0xf] }
 0x174   : > { %8454 = vst [vmem:[#allocation52_spill] sm:$0xff] %v6911_v47  ;;  %1435 = vmatpush.bf16.msrb.mxu2 %v6911_v47  ;;  %v6124_v47 = vld [vmem:[#allocation9 + $0x264] sm:$0xf0] }
 0x175   : > { %8458 = vst [vmem:[#allocation56_spill] sm:$0xff] %v6924_v55 }
 0x176   : > { %1459 = vmatpush.bf16.msra.mxu0 %v6889_v29  ;;  %1451 = vmatpush.bf16.msra.mxu3 %v6908_v52  ;;  %v4989_v52 = vld [vmem:[#allocation9 + $0x98] sm:$0xf0]  ;;  %v5158_v29 = vld [vmem:[#allocation9 + $0x2e0] sm:$0xf] }
 0x177   : > { %v6926_v35 = vor.u32 %v6065_v54, %v4989_v52  ;;  %v6126_v52 = vld [vmem:[#allocation9 + $0x274] sm:$0xf0] }
 0x178   : > { %1436 = vmatpush.bf16.msrb.mxu2 %v6918_v31  ;;  %v4981_v31 = vld [vmem:[#allocation9 + $0x88] sm:$0xf0] }
 0x179   : > { %8459 = vst [vmem:[#allocation57_spill] sm:$0xff] %v6926_v35 }
 0x17a   : > { %1460 = vmatpush.bf16.msra.mxu0 %v6902_v11  ;;  %v4997_v11 = vld [vmem:[#allocation9 + $0xa8] sm:$0xf0] }
 0x17b   : > { %v6920_v0 = vor.u32 %v6067_v1, %v4997_v11  ;;  %v6063_v11 = vld [vmem:[#allocation9 + $0x84] sm:$0xf]  ;;  %v6930_v1 = vor.u32 %v6064_v30, %v4979_v12  ;;  %v5086_v12 = vld [vmem:[#allocation9 + $0x250] sm:$0xf]  ;;  %v6122_v30 = vld [vmem:[#allocation9 + $0x254] sm:$0xf0] }
 0x17c   : > { %1437 = vmatpush.bf16.msrb.mxu2 %v6924_v55 }
 0x17d   : > { %8457 = vst [vmem:[#allocation55_spill] sm:$0xff] %v6920_v0 }
 0x17e   : > { %1461 = vmatpush.bf16.msra.mxu0 %v6914_v8  ;;  %8460 = vst [vmem:[#allocation58_spill] sm:$0xff] %v6930_v1  ;;  %v6932_v8 = vor.u32 %v6063_v11, %v4981_v31 }
 0x180   : > { %8461 = vst [vmem:[#allocation59_spill] sm:$0xff] %v6932_v8  ;;  %1438 = vmatpush.bf16.msrb.mxu2 %v6930_v1  ;;  %v6142_v1 = vld [vmem:[#allocation9 + $0x2f4] sm:$0xf0] }
 0x182   : > { %1462 = vmatpush.bf16.msra.mxu0 %v6920_v0  ;;  %v6936_v0 = vor.u32 %v6126_v52, %v5102_v50  ;;  %v5078_v50 = vld [vmem:[#allocation9 + $0x240] sm:$0xf]  ;;  %v6120_v52 = vld [vmem:[#allocation9 + $0x244] sm:$0xf0] }
 0x184   : > { %8462 = vst [vmem:[#allocation60_spill] sm:$0xff] %v6936_v0 }
 0x186   : > { %1463 = vmatpush.bf16.msra.mxu0 %v6926_v35  ;;  %v5094_v35 = vld [vmem:[#allocation9 + $0x260] sm:$0xf] }
 0x187   : > { %v6940_v31 = vor.u32 %v6124_v47, %v5094_v35 }
 0x189   : > { %8463 = vst [vmem:[#allocation61_spill] sm:$0xff] %v6940_v31 }
 0x18a   : > { %1464 = vmatpush.bf16.msra.mxu0 %v6932_v8  ;;  %v6945_v8 = vor.u32 %v6122_v30, %v5086_v12  ;;  %v5062_v30 = vld [vmem:[#allocation9 + $0x220] sm:$0xf] }
 0x18c   : > { %8464 = vst [vmem:[#allocation62_spill] sm:$0xff] %v6945_v8 }
 0x1ba   : > { %v909_v43 = vpop.f32.mrf.mxu3 }
 0x1bb   : > { %v932_v60 = vpack.c.bf16 %v909_v43, %v909_v43 }
 0x1c2   : > { %v988_v54 = vpop.f32.mrf.mxu3 }
 0x1c3   : > { %v1011_v55 = vpack.c.bf16 %v988_v54, %v988_v54  ;;  %v5166_v54 = vld [vmem:[#allocation9 + $0x2f0] sm:$0xf] }
 0x1c4   : > { %v6950_v35 = vor.u32 %v6142_v1, %v5166_v54  ;;  %v6957_v1 = vor.u32 %v6140_v6, %v5158_v29  ;;  %v5088_v6 = vld [vmem:[#allocation9 + $0x258] sm:$0xf0] }
 0x1c5   : > { %1214 = vmatmul.bf16.vlgmr.msrb.gmra.mxu1 %v1011_v55  ;;  %1240 = vmatmul.bf16.vlgmr.msrb.gmra.mxu3 %v1011_v55  ;;  %v6948_v55 = vor.u32 %v6120_v52, %v5078_v50  ;;  %v5104_v50 = vld [vmem:[#allocation9 + $0x278] sm:$0xf0]  ;;  %v6123_v52 = vld [vmem:[#allocation9 + $0x264] sm:$0xf] }
 0x1c6   : > { %1490 = vmatpush.msrb.mxu1 %v6725_v24  ;;  %1710 = vmatpush.bf16.msrb.mxu3 %v6936_v0  ;;  %v6118_v0 = vld [vmem:[#allocation9 + $0x234] sm:$0xf0]  ;;  %8466 = vst [vmem:[#allocation64_spill] sm:$0xff] %v6950_v35 }
 0x1c7   : > { %8465 = vst [vmem:[#allocation63_spill] sm:$0xff] %v6948_v55  ;;  %v6953_v12 = vor.u32 %v6118_v0, %v5070_v10  ;;  %v5150_v10 = vld [vmem:[#allocation9 + $0x2d0] sm:$0xf]  ;;  %v6138_v0 = vld [vmem:[#allocation9 + $0x2d4] sm:$0xf0] }
 0x1c8   : > { %v6942_v11 = vpop.f32.mrf.mxu0  ;;  %8468 = vst [vmem:[#allocation66_spill] sm:$0xff] %v6957_v1  ;;  %v6968_v29 = vor.u32 %v6138_v0, %v5150_v10  ;;  %v6141_v10 = vld [vmem:[#allocation9 + $0x2f4] sm:$0xf]  ;;  %v5168_v0 = vld [vmem:[#allocation9 + $0x2f8] sm:$0xf0] }
 0x1c9   : > { %8467 = vst [vmem:[#allocation65_spill] sm:$0xff] %v6953_v12 }
 0x1ca   : > { %1711 = vmatpush.bf16.msrb.mxu3 %v6940_v31  ;;  %v6116_v31 = vld [vmem:[#allocation9 + $0x224] sm:$0xf0]  ;;  %8472 = vst [vmem:[#allocation70_spill] sm:$0xff] %v6968_v29 }
 0x1cb   : > { %v6962_v43 = vor.u32 %v6116_v31, %v5062_v30  ;;  %v5046_v31 = vld [vmem:[#allocation9 + $0x200] sm:$0xf] }
 0x1cd   : > { %8470 = vst [vmem:[#allocation68_spill] sm:$0xff] %v6962_v43 }
 0x1ce   : > { %1712 = vmatpush.bf16.msrb.mxu3 %v6945_v8  ;;  %v6125_v8 = vld [vmem:[#allocation9 + $0x274] sm:$0xf] }
 0x1cf   : > { %v6959_v54 = vor.u32 %v6125_v8, %v5104_v50  ;;  %v5142_v8 = vld [vmem:[#allocation9 + $0x2c0] sm:$0xf] }
 0x1d0   : > { %v1008_v47 = vpop.f32.mrf.mxu0 }
 0x1d1   : > { %v1012_v63 = vpack.c.bf16 %v1008_v47, %v1008_v47  ;;  %8469 = vst [vmem:[#allocation67_spill] sm:$0xff] %v6959_v54  ;;  %v5096_v47 = vld [vmem:[#allocation9 + $0x268] sm:$0xf0] }
 0x1d2   : > { %1713 = vmatpush.bf16.msrb.mxu3 %v6948_v55  ;;  %v6965_v55 = vor.u32 %v6123_v52, %v5096_v47  ;;  %v6112_v52 = vld [vmem:[#allocation9 + $0x204] sm:$0xf0]  ;;  %v6119_v47 = vld [vmem:[#allocation9 + $0x244] sm:$0xf] }
 0x1d3   : > { %1227 = vmatmul.bf16.vlgmr.msra.gmra.mxu2 %v1012_v63  ;;  %1253 = vmatmul.bf16.vlgmr.msrb.gmra.mxu0 %v1012_v63  ;;  %v5054_v63 = vld [vmem:[#allocation9 + $0x210] sm:$0xf] }
 0x1d4   : > { %1510 = vmatpush.msra.mxu2 %v6781_v18  ;;  %1723 = vmatpush.bf16.msrb.mxu0 %v6950_v35  ;;  %8471 = vst [vmem:[#allocation69_spill] sm:$0xff] %v6965_v55  ;;  %v6121_v35 = vld [vmem:[#allocation9 + $0x254] sm:$0xf]  ;;  %v6971_v50 = vor.u32 %v6114_v42, %v5054_v63  ;;  %v5134_v42 = vld [vmem:[#allocation9 + $0x2b0] sm:$0xf] }
 0x1d5   : > { %1426 = vmatmul.bf16.vlgmr.msra.gmra.mxu1 %v932_v60  ;;  %1452 = vmatmul.bf16.vlgmr.msra.gmra.mxu3 %v932_v60  ;;  %v6136_v60 = vld [vmem:[#allocation9 + $0x2c4] sm:$0xf0]  ;;  %v6974_v30 = vor.u32 %v6121_v35, %v5088_v6  ;;  %v6134_v63 = vld [vmem:[#allocation9 + $0x2b4] sm:$0xf0]  ;;  %v6117_v35 = vld [vmem:[#allocation9 + $0x234] sm:$0xf] }
 0x1d6   : > { %1714 = vmatpush.bf16.msrb.mxu3 %v6953_v12  ;;  %1736 = vmatpush.bf16.msra.mxu1 %v6959_v54  ;;  %8473 = vst [vmem:[#allocation71_spill] sm:$0xff] %v6971_v50  ;;  %v5080_v54 = vld [vmem:[#allocation9 + $0x248] sm:$0xf0]  ;;  %v6977_v12 = vor.u32 %v6136_v60, %v5142_v8  ;;  %v5072_v6 = vld [vmem:[#allocation9 + $0x238] sm:$0xf0]  ;;  %v933_v8 = vpack.c.bf16 %v6942_v11, %v6942_v11 }
 0x1d7   : > { %8474 = vst [vmem:[#allocation72_spill] sm:$0xff] %v6974_v30  ;;  %v6990_v60 = vor.u32 %v6134_v63, %v5134_v42  ;;  %v5118_v42 = vld [vmem:[#allocation9 + $0x290] sm:$0xf]  ;;  %v6130_v63 = vld [vmem:[#allocation9 + $0x294] sm:$0xf0] }
 0x1d8   : > { %1724 = vmatpush.bf16.msrb.mxu0 %v6957_v1  ;;  %8475 = vst [vmem:[#allocation73_spill] sm:$0xff] %v6977_v12  ;;  %v6980_v1 = vor.u32 %v6112_v52, %v5046_v31  ;;  %v5041_v31 = vld [vmem:[%s8139_s6 + $0x8] sm:$0xf]  ;;  %v5126_v52 = vld [vmem:[#allocation9 + $0x2a0] sm:$0xf] }
 0x1d9   : > { %8479 = vst [vmem:[#allocation77_spill] sm:$0xff] %v6990_v60 }
 0x1da   : > { %1715 = vmatpush.bf16.msrb.mxu3 %v6962_v43  ;;  %1737 = vmatpush.bf16.msra.mxu1 %v6965_v55  ;;  %8476 = vst [vmem:[#allocation74_spill] sm:$0xff] %v6980_v1  ;;  %v6983_v55 = vor.u32 %v6119_v47, %v5080_v54  ;;  %v6986_v43 = vor.u32 %v6141_v10, %v5168_v0  ;;  %v6132_v54 = vld [vmem:[#allocation9 + $0x2a4] sm:$0xf0]  ;;  %v6115_v10 = vld [vmem:[#allocation9 + $0x224] sm:$0xf] }
 0x1db   : > { %v6997_v47 = vor.u32 %v6117_v35, %v5072_v6  ;;  %v5064_v0 = vld [vmem:[#allocation9 + $0x228] sm:$0xf0]  ;;  %v7003_v11 = vor.u32 %v6132_v54, %v5126_v52  ;;  %v7009_v6 = vor.u32 %v6130_v63, %v5118_v42  ;;  %v6113_v52 = vld [vmem:[#allocation9 + $0x214] sm:$0xf]  ;;  %v5056_v54 = vld [vmem:[#allocation9 + $0x218] sm:$0xf0] }
 0x1dc   : > { %1725 = vmatpush.bf16.msrb.mxu0 %v6968_v29  ;;  %8477 = vst [vmem:[#allocation75_spill] sm:$0xff] %v6983_v55  ;;  %v7006_v35 = vor.u32 %v6115_v10, %v5064_v0  ;;  %v6139_v10 = vld [vmem:[#allocation9 + $0x2e4] sm:$0xf]  ;;  %v7018_v0 = vor.u32 %v6113_v52, %v5056_v54  ;;  %v5160_v42 = vld [vmem:[#allocation9 + $0x2e8] sm:$0xf0] }
 0x1dd   : > { %8478 = vst [vmem:[#allocation76_spill] sm:$0xff] %v6986_v43  ;;  %v6111_v63 = vld [vmem:[#allocation9 + $0x204] sm:$0xf]  ;;  %v5144_v54 = vld [vmem:[#allocation9 + $0x2c8] sm:$0xf0] }
 0x1de   : > { %1716 = vmatpush.bf16.msrb.mxu3 %v6971_v50  ;;  %1738 = vmatpush.bf16.msra.mxu1 %v6974_v30  ;;  %8480 = vst [vmem:[#allocation78_spill] sm:$0xff] %v6997_v47  ;;  %v6135_v52 = vld [vmem:[#allocation9 + $0x2c4] sm:$0xf]  ;;  %v5235_v30 = vld [vmem:[#allocation9 + $0x378] sm:$0xf0] }
 0x1df   : > { %8481 = vst [vmem:[#allocation79_spill] sm:$0xff] %v7003_v11  ;;  %v5211_v50 = vld [vmem:[#allocation9 + $0x348] sm:$0xf0] }
 0x1e0   : > { %1726 = vmatpush.bf16.msrb.mxu0 %v6977_v12  ;;  %8482 = vst [vmem:[#allocation80_spill] sm:$0xff] %v7006_v35  ;;  %v5291_v29 = vld [vmem:[#allocation9 + $0x3e8] sm:$0xf0] }
 0x1e1   : > { %8483 = vst [vmem:[#allocation81_spill] sm:$0xff] %v7009_v6 }
 0x1e2   : > { %1717 = vmatpush.bf16.msrb.mxu3 %v6980_v1  ;;  %1739 = vmatpush.bf16.msra.mxu1 %v6983_v55  ;;  %v5110_v55 = vld [vmem:[#allocation9 + $0x280] sm:$0xf]  ;;  %8485 = vst [vmem:[#allocation83_spill] sm:$0xff] %v7018_v0  ;;  %v6162_v1 = vld [vmem:[#allocation9 + $0x394] sm:$0xf0] }
 0x1e3   : > { %1439 = vmatmul.bf16.vlgmr.msrb.gmra.mxu2 %v933_v8  ;;  %1465 = vmatmul.bf16.vlgmr.msra.gmra.mxu0 %v933_v8  ;;  %v6128_v8 = vld [vmem:[#allocation9 + $0x284] sm:$0xf0] }
 0x1e4   : > { %1749 = vmatpush.bf16.msrb.mxu2 %v6986_v43  ;;  %1727 = vmatpush.bf16.msrb.mxu0 %v6990_v60  ;;  %v7013_v60 = vor.u32 %v6128_v8, %v5110_v55 }
 0x1e5   : > { %5042 = vmatmul.msk.f32.vlgmr.msrb.gmra.mxu1 %vm513_vm0, %v5041_v31 }
 0x1e6   : > { %1784 = vmatpush.msra.mxu3 %v6725_v24  ;;  %1740 = vmatpush.bf16.msra.mxu1 %v6997_v47  ;;  %8484 = vst [vmem:[#allocation82_spill] sm:$0xff] %v7013_v60  ;;  %v5048_v47 = vld [vmem:[#allocation9 + $0x208] sm:$0xf0] }
 0x1e7   : > { %v7023_v55 = vor.u32 %v6111_v63, %v5048_v47  ;;  %v6156_v47 = vld [vmem:[#allocation9 + $0x364] sm:$0xf0]  ;;  %v6133_v63 = vld [vmem:[#allocation9 + $0x2b4] sm:$0xf] }
 0x1e8   : > { %1728 = vmatpush.bf16.msrb.mxu0 %v7003_v11  ;;  %v7020_v11 = vor.u32 %v6139_v10, %v5160_v42  ;;  %v5225_v10 = vld [vmem:[#allocation9 + $0x360] sm:$0xf]  ;;  %v7033_v42 = vor.u32 %v6135_v52, %v5144_v54  ;;  %v6131_v52 = vld [vmem:[#allocation9 + $0x2a4] sm:$0xf]  ;;  %v5128_v54 = vld [vmem:[#allocation9 + $0x2a8] sm:$0xf0] }
 0x1e9   : > { %8487 = vst [vmem:[#allocation85_spill] sm:$0xff] %v7023_v55 }
 0x1ea   : > { %1741 = vmatpush.bf16.msra.mxu1 %v7006_v35  ;;  %8486 = vst [vmem:[#allocation84_spill] sm:$0xff] %v7020_v11  ;;  %v6137_v35 = vld [vmem:[#allocation9 + $0x2d4] sm:$0xf]  ;;  %1750 = vmatpush.bf16.msrb.mxu2 %v7020_v11 }
 0x1eb   : > { %8490 = vst [vmem:[#allocation88_spill] sm:$0xff] %v7033_v42 }
 0x1ec   : > { %1729 = vmatpush.bf16.msrb.mxu0 %v7009_v6  ;;  %v5152_v6 = vld [vmem:[#allocation9 + $0x2d8] sm:$0xf0] }
 0x1ed   : > { %v7026_v8 = vor.u32 %v6137_v35, %v5152_v6  ;;  %v7035_v35 = vor.u32 %v6156_v47, %v5225_v10  ;;  %v5217_v6 = vld [vmem:[#allocation9 + $0x350] sm:$0xf]  ;;  %v6152_v10 = vld [vmem:[#allocation9 + $0x344] sm:$0xf0] }
 0x1ee   : > { %1742 = vmatpush.bf16.msra.mxu1 %v7018_v0  ;;  %v5136_v0 = vld [vmem:[#allocation9 + $0x2b8] sm:$0xf0] }
 0x1ef   : > { %8488 = vst [vmem:[#allocation86_spill] sm:$0xff] %v7026_v8  ;;  %1751 = vmatpush.bf16.msrb.mxu2 %v7026_v8  ;;  %v7045_v8 = vor.u32 %v6131_v52, %v5128_v54  ;;  %v6127_v52 = vld [vmem:[#allocation9 + $0x284] sm:$0xf]  ;;  %v5112_v54 = vld [vmem:[#allocation9 + $0x288] sm:$0xf0] }
 0x1f0   : > { %1730 = vmatpush.bf16.msrb.mxu0 %v7013_v60  ;;  %v6158_v60 = vld [vmem:[#allocation9 + $0x374] sm:$0xf0]  ;;  %8491 = vst [vmem:[#allocation89_spill] sm:$0xff] %v7035_v35 }
 0x1f1   : > { %8494 = vst [vmem:[#allocation92_spill] sm:$0xff] %v7045_v8 }
 0x1f2   : > { %1743 = vmatpush.bf16.msra.mxu1 %v7023_v55 }
 0x1f3   : > { %5043 = vmatmul.msk.f32.vlgmr.msra.gmra.mxu2 %vm513_vm0, %v5041_v31  ;;  %v5233_v31 = vld [vmem:[#allocation9 + $0x370] sm:$0xf] }
 0x1f4   : > { %1804 = vmatpush.msra.mxu0 %v6781_v18  ;;  %v7028_v43 = vor.u32 %v6158_v60, %v5233_v31  ;;  %1752 = vmatpush.bf16.msrb.mxu2 %v7033_v42  ;;  %v7039_v60 = vor.u32 %v6133_v63, %v5136_v0  ;;  %v6154_v31 = vld [vmem:[#allocation9 + $0x354] sm:$0xf0]  ;;  %v6129_v0 = vld [vmem:[#allocation9 + $0x294] sm:$0xf]  ;;  %v5120_v63 = vld [vmem:[#allocation9 + $0x298] sm:$0xf0] }
 0x1f5   : > { %v7041_v55 = vor.u32 %v6154_v31, %v5217_v6  ;;  %v7051_v6 = vor.u32 %v6129_v0, %v5120_v63  ;;  %v5201_v31 = vld [vmem:[#allocation9 + $0x330] sm:$0xf]  ;;  %v6146_v63 = vld [vmem:[#allocation9 + $0x314] sm:$0xf0] }
 0x1f6   : > { %8489 = vst [vmem:[#allocation87_spill] sm:$0xff] %v7028_v43  ;;  %2004 = vmatpush.bf16.msrb.mxu1 %v7028_v43  ;;  %v5209_v43 = vld [vmem:[#allocation9 + $0x340] sm:$0xf] }
 0x1f7   : > { %8492 = vst [vmem:[#allocation90_spill] sm:$0xff] %v7039_v60  ;;  %v7047_v47 = vor.u32 %v6152_v10, %v5209_v43  ;;  %v5193_v43 = vld [vmem:[#allocation9 + $0x320] sm:$0xf]  ;;  %v7057_v10 = vor.u32 %v6127_v52, %v5112_v54  ;;  %v6172_v52 = vld [vmem:[#allocation9 + $0x3e4] sm:$0xf0] }
 0x1f8   : > { %8493 = vst [vmem:[#allocation91_spill] sm:$0xff] %v7041_v55  ;;  %1753 = vmatpush.bf16.msrb.mxu2 %v7039_v60 }
 0x1f9   : > { %8495 = vst [vmem:[#allocation93_spill] sm:$0xff] %v7047_v47 }
 0x1fa   : > { %2005 = vmatpush.bf16.msrb.mxu1 %v7035_v35  ;;  %8496 = vst [vmem:[#allocation94_spill] sm:$0xff] %v7051_v6  ;;  %v6150_v35 = vld [vmem:[#allocation9 + $0x334] sm:$0xf0] }
 0x1fb   : > { %v7053_v60 = vor.u32 %v6150_v35, %v5201_v31  ;;  %8498 = vst [vmem:[#allocation96_spill] sm:$0xff] %v7057_v10  ;;  %v5185_v35 = vld [vmem:[#allocation9 + $0x310] sm:$0xf]  ;;  %v5289_v31 = vld [vmem:[#allocation9 + $0x3e0] sm:$0xf] }
 0x1fc   : > { %1754 = vmatpush.bf16.msrb.mxu2 %v7045_v8  ;;  %v5297_v8 = vld [vmem:[#allocation9 + $0x3f0] sm:$0xf]  ;;  %v7068_v54 = vor.u32 %v6172_v52, %v5289_v31 }
 0x1fd   : > { %8497 = vst [vmem:[#allocation95_spill] sm:$0xff] %v7053_v60 }
 0x1fe   : > { %2006 = vmatpush.bf16.msrb.mxu1 %v7041_v55  ;;  %v6148_v55 = vld [vmem:[#allocation9 + $0x324] sm:$0xf0]  ;;  %8502 = vst [vmem:[#allocation100_spill] sm:$0xff] %v7068_v54 }
 0x1ff   : > { %v7059_v42 = vor.u32 %v6148_v55, %v5193_v43  ;;  %v5177_v55 = vld [vmem:[#allocation9 + $0x300] sm:$0xf] }
 0x200   : > { %1755 = vmatpush.bf16.msrb.mxu2 %v7051_v6 }
 0x201   : > { %8499 = vst [vmem:[#allocation97_spill] sm:$0xff] %v7059_v42 }
 0x202   : > { %2007 = vmatpush.bf16.msrb.mxu1 %v7047_v47  ;;  %v6174_v47 = vld [vmem:[#allocation9 + $0x3f4] sm:$0xf0] }
 0x203   : > { %v7061_v0 = vor.u32 %v6174_v47, %v5297_v8  ;;  %v6144_v8 = vld [vmem:[#allocation9 + $0x304] sm:$0xf0]  ;;  %v5281_v47 = vld [vmem:[#allocation9 + $0x3d0] sm:$0xf] }
 0x204   : > { %1756 = vmatpush.bf16.msrb.mxu2 %v7057_v10  ;;  %v7074_v43 = vor.u32 %v6144_v8, %v5177_v55  ;;  %v6166_v10 = vld [vmem:[#allocation9 + $0x3b4] sm:$0xf0]  ;;  %v5257_v55 = vld [vmem:[#allocation9 + $0x3a0] sm:$0xf]  ;;  %v6164_v8 = vld [vmem:[#allocation9 + $0x3a4] sm:$0xf0] }
 0x205   : > { %8500 = vst [vmem:[#allocation98_spill] sm:$0xff] %v7061_v0 }
 0x206   : > { %2008 = vmatpush.bf16.msrb.mxu1 %v7053_v60  ;;  %v7066_v60 = vor.u32 %v6146_v63, %v5185_v35  ;;  %8503 = vst [vmem:[#allocation101_spill] sm:$0xff] %v7074_v43  ;;  %v5273_v35 = vld [vmem:[#allocation9 + $0x3c0] sm:$0xf]  ;;  %v6168_v63 = vld [vmem:[#allocation9 + $0x3c4] sm:$0xf0] }
 0x207   : > { %v7080_v52 = vor.u32 %v6168_v63, %v5273_v35  ;;  %v6160_v63 = vld [vmem:[#allocation9 + $0x384] sm:$0xf0] }
 0x208   : > { %2017 = vmatpush.bf16.msra.mxu2 %v7061_v0  ;;  %8501 = vst [vmem:[#allocation99_spill] sm:$0xff] %v7066_v60 }
 0x209   : > { %8505 = vst [vmem:[#allocation103_spill] sm:$0xff] %v7080_v52 }
 0x20a   : > { %2009 = vmatpush.bf16.msrb.mxu1 %v7059_v42  ;;  %v6170_v42 = vld [vmem:[#allocation9 + $0x3d4] sm:$0xf0] }
 0x20b   : > { %v7076_v0 = vor.u32 %v6170_v42, %v5281_v47  ;;  %v7086_v42 = vor.u32 %v6164_v8, %v5257_v55 }
 0x20c   : > { %2018 = vmatpush.bf16.msra.mxu2 %v7068_v54 }
 0x20d   : > { %8504 = vst [vmem:[#allocation102_spill] sm:$0xff] %v7076_v0 }
 0x20e   : > { %2010 = vmatpush.bf16.msrb.mxu1 %v7066_v60  ;;  %v5265_v60 = vld [vmem:[#allocation9 + $0x3b0] sm:$0xf]  ;;  %8507 = vst [vmem:[#allocation105_spill] sm:$0xff] %v7086_v42 }
 0x20f   : > { %v7083_v11 = vor.u32 %v6166_v10, %v5265_v60  ;;  %v5241_v10 = vld [vmem:[#allocation9 + $0x380] sm:$0xf] }
 0x210   : > { %2019 = vmatpush.bf16.msra.mxu2 %v7076_v0  ;;  %v5249_v0 = vld [vmem:[#allocation9 + $0x390] sm:$0xf] }
 0x211   : > { %8506 = vst [vmem:[#allocation104_spill] sm:$0xff] %v7083_v11 }
 0x212   : > { %2011 = vmatpush.bf16.msrb.mxu1 %v7074_v43 }
 0x214   : > { %2020 = vmatpush.bf16.msra.mxu2 %v7080_v52 }
 0x218   : > { %2021 = vmatpush.bf16.msra.mxu2 %v7083_v11 }
 0x21c   : > { %2022 = vmatpush.bf16.msra.mxu2 %v7086_v42  ;;  %v6157_v42 = vld [vmem:[#allocation9 + $0x374] sm:$0xf] }
 0x242   : > { %v7070_v6 = vpop.f32.mrf.mxu1 }
 0x248   : > { %v1241_v31 = vpop.f32.mrf.mxu3 }
 0x24a   : > { %v1217_v54 = vpop.f32.mrf.mxu1 }
 0x24b   : > { %v7093_v54 = vor.u32 %v6162_v1, %v5249_v0 }
 0x24d   : > { %8508 = vst [vmem:[#allocation106_spill] sm:$0xff] %v7093_v54  ;;  %2023 = vmatpush.bf16.msra.mxu2 %v7093_v54 }
 0x250   : > { %v1243_v47 = vpop.f32.mrf.mxu3  ;;  %v1254_v43 = vpop.f32.mrf.mxu0 }
 0x251   : > { %v7088_v12 = vadd.f32 %v1254_v43, %v1241_v31  ;;  %v7100_v47 = vor.u32 %v6160_v63, %v5241_v10  ;;  %v6155_v10 = vld [vmem:[#allocation9 + $0x364] sm:$0xf]  ;;  %v7108_v63 = vor.u32 %v6157_v42, %v5235_v30  ;;  %v6173_v30 = vld [vmem:[#allocation9 + $0x3f4] sm:$0xf]  ;;  %v5299_v42 = vld [vmem:[#allocation9 + $0x3f8] sm:$0xf0] }
 0x252   : > { %v7090_v35 = vpop.f32.mrf.mxu1 }
 0x253   : > { %8509 = vst [vmem:[#allocation107_spill] sm:$0xff] %v7100_v47  ;;  %2024 = vmatpush.bf16.msra.mxu2 %v7100_v47  ;;  %v5219_v47 = vld [vmem:[#allocation9 + $0x358] sm:$0xf0] }
 0x254   : > { %8510 = vst [vmem:[#allocation108_spill] sm:$0xff] %v7108_v63 }
 0x256   : > { %v7095_v60 = vpop.f32.mrf.mxu2 }
 0x258   : > { %v1256_v55 = vpop.f32.mrf.mxu0  ;;  %v7098_v8 = vpop.f32.mrf.mxu3 }
 0x25a   : > { %v1429_v11 = vpop.f32.mrf.mxu1 }
 0x25b   : > { %v5227_v11 = vld [vmem:[#allocation9 + $0x368] sm:$0xf0] }
 0x25e   : > { %v1230_v43 = vpop.f32.mrf.mxu2 }
 0x25f   : > { %v7111_v43 = vor.u32 %v6155_v10, %v5227_v11  ;;  %v6149_v10 = vld [vmem:[#allocation9 + $0x334] sm:$0xf]  ;;  %v5203_v11 = vld [vmem:[#allocation9 + $0x338] sm:$0xf0] }
 0x260   : > { %v1455_v31 = vpop.f32.mrf.mxu3  ;;  %v7103_v52 = vpop.f32.mrf.mxu0  ;;  %v7126_v39 = vor.u32 %v6149_v10, %v5203_v11  ;;  %v6167_v11 = vld [vmem:[#allocation9 + $0x3c4] sm:$0xf] }
 0x261   : > { %8511 = vst [vmem:[#allocation109_spill] sm:$0xff] %v7111_v43  ;;  %v6153_v31 = vld [vmem:[#allocation9 + $0x354] sm:$0xf] }
 0x262   : > { %v1492_v1 = vpop.f32.mrf.mxu1  ;;  %8515 = vst [vmem:[#allocation113_spill] sm:$0xff] %v7126_v39 }
 0x263   : > { %v1515_v0 = vpack.c.bf16 %v1492_v1, %v1492_v1 }
 0x265   : > { %1718 = vmatmul.bf16.vlgmr.msrb.gmra.mxu3 %v1515_v0  ;;  %1744 = vmatmul.bf16.vlgmr.msra.gmra.mxu1 %v1515_v0  ;;  %v7114_v0 = vor.u32 %v6153_v31, %v5219_v47  ;;  %v6171_v31 = vld [vmem:[#allocation9 + $0x3e4] sm:$0xf] }
 0x266   : > { %2078 = vmatpush.msra.mxu1 %v6725_v24  ;;  %v7106_v54 = vpop.f32.mrf.mxu2  ;;  %2030 = vmatpush.bf16.msrb.mxu3 %v7108_v63  ;;  %v6151_v24 = vld [vmem:[#allocation9 + $0x344] sm:$0xf] }
 0x267   : > { %8512 = vst [vmem:[#allocation110_spill] sm:$0xff] %v7114_v0  ;;  %v7120_v63 = vor.u32 %v6151_v24, %v5211_v50  ;;  %v7130_v50 = vor.u32 %v6171_v31, %v5291_v29  ;;  %v6169_v24 = vld [vmem:[#allocation9 + $0x3d4] sm:$0xf]  ;;  %v6143_v29 = vld [vmem:[#allocation9 + $0x304] sm:$0xf] }
 0x268   : > { %v1468_v55 = vpop.f32.mrf.mxu0  ;;  %v5179_v31 = vld [vmem:[#allocation9 + $0x308] sm:$0xf0] }
 0x269   : > { %v5172_v55 = vld [vmem:[%s8139_s6 + $0xc] sm:$0xf]  ;;  %8513 = vst [vmem:[#allocation111_spill] sm:$0xff] %v7120_v63 }
 0x26a   : > { %2031 = vmatpush.bf16.msrb.mxu3 %v7111_v43  ;;  %v7123_v43 = vor.u32 %v6173_v30, %v5299_v42  ;;  %8516 = vst [vmem:[#allocation114_spill] sm:$0xff] %v7130_v50  ;;  %v5283_v30 = vld [vmem:[#allocation9 + $0x3d8] sm:$0xf0] }
 0x26b   : > { %v7136_v10 = vor.u32 %v6169_v24, %v5283_v30  ;;  %v7145_v24 = vor.u32 %v6143_v29, %v5179_v31  ;;  %v5348_v29 = vld [vmem:[#allocation9 + $0x450] sm:$0xf]  ;;  %v6186_v31 = vld [vmem:[#allocation9 + $0x454] sm:$0xf0] }
 0x26c   : > { %8514 = vst [vmem:[#allocation112_spill] sm:$0xff] %v7123_v43 }
 0x26d   : > { %8518 = vst [vmem:[#allocation116_spill] sm:$0xff] %v7136_v10 }
 0x26e   : > { %v1442_v1 = vpop.f32.mrf.mxu2  ;;  %2032 = vmatpush.bf16.msrb.mxu3 %v7114_v0  ;;  %v5195_v0 = vld [vmem:[#allocation9 + $0x328] sm:$0xf0]  ;;  %8521 = vst [vmem:[#allocation119_spill] sm:$0xff] %v7145_v24 }
 0x26f   : > { %v7133_v42 = vor.u32 %v6147_v32, %v5195_v0  ;;  %v5364_v32 = vld [vmem:[#allocation9 + $0x470] sm:$0xf]  ;;  %v6190_v0 = vld [vmem:[#allocation9 + $0x474] sm:$0xf0] }
 0x270   : > { %v7147_v30 = vor.u32 %v6190_v0, %v5364_v32  ;;  %v7161_v32 = vor.u32 %v6186_v31, %v5348_v29  ;;  %v5332_v31 = vld [vmem:[#allocation9 + $0x430] sm:$0xf] }
 0x271   : > { %8517 = vst [vmem:[#allocation115_spill] sm:$0xff] %v7133_v42 }
 0x272   : > { %2033 = vmatpush.bf16.msrb.mxu3 %v7120_v63  ;;  %v5187_v63 = vld [vmem:[#allocation9 + $0x318] sm:$0xf0]  ;;  %8522 = vst [vmem:[#allocation120_spill] sm:$0xff] %v7147_v30 }
 0x273   : > { %8526 = vst [vmem:[#allocation124_spill] sm:$0xff] %v7161_v32 }
 0x275   : > { %5173 = vmatmul.msk.f32.vlgmr.msra.gmra.mxu3 %vm513_vm0, %v5172_v55 }
 0x276   : > { %v1512_v1 = vpop.f32.mrf.mxu2  ;;  %2034 = vmatpush.bf16.msrb.mxu3 %v7126_v39  ;;  %v6165_v39 = vld [vmem:[#allocation9 + $0x3b4] sm:$0xf] }
 0x277   : > { %v1516_v47 = vpack.c.bf16 %v1512_v1, %v1512_v1  ;;  %v6145_v1 = vld [vmem:[#allocation9 + $0x314] sm:$0xf] }
 0x279   : > { %1731 = vmatmul.bf16.vlgmr.msrb.gmra.mxu0 %v1516_v47  ;;  %1757 = vmatmul.bf16.vlgmr.msrb.gmra.mxu2 %v1516_v47  ;;  %v5275_v47 = vld [vmem:[#allocation9 + $0x3c8] sm:$0xf0] }
 0x27a   : > { %2098 = vmatpush.msrb.mxu2 %v6781_v18  ;;  %2043 = vmatpush.bf16.msrb.mxu0 %v7123_v43  ;;  %v7139_v18 = vor.u32 %v6145_v1, %v5187_v63  ;;  %v7142_v43 = vor.u32 %v6167_v11, %v5275_v47  ;;  %v7150_v63 = vor.u32 %v6165_v39, %v5267_v17  ;;  %v5356_v1 = vld [vmem:[#allocation9 + $0x460] sm:$0xf]  ;;  %v6161_v17 = vld [vmem:[#allocation9 + $0x394] sm:$0xf]  ;;  %v5251_v39 = vld [vmem:[#allocation9 + $0x398] sm:$0xf0] }
 0x27b   : > { %2035 = vmatpush.bf16.msrb.mxu3 %v7133_v42  ;;  %v6188_v42 = vld [vmem:[#allocation9 + $0x464] sm:$0xf0]  ;;  %v7164_v0 = vor.u32 %v6161_v17, %v5251_v39  ;;  %v5420_v39 = vld [vmem:[#allocation9 + $0x4e0] sm:$0xf] }
 0x27c   : > { %8519 = vst [vmem:[#allocation117_spill] sm:$0xff] %v7139_v18  ;;  %v7155_v11 = vor.u32 %v6188_v42, %v5356_v1  ;;  %v6184_v42 = vld [vmem:[#allocation9 + $0x444] sm:$0xf0]  ;;  %v5243_v1 = vld [vmem:[#allocation9 + $0x388] sm:$0xf0] }
 0x27d   : > { %8520 = vst [vmem:[#allocation118_spill] sm:$0xff] %v7142_v43 }
 0x27e   : > { %2044 = vmatpush.bf16.msrb.mxu0 %v7130_v50  ;;  %8523 = vst [vmem:[#allocation121_spill] sm:$0xff] %v7150_v63  ;;  %v6163_v50 = vld [vmem:[#allocation9 + $0x3a4] sm:$0xf] }
 0x27f   : > { %2036 = vmatpush.bf16.msrb.mxu3 %v7139_v18  ;;  %8524 = vst [vmem:[#allocation122_spill] sm:$0xff] %v7155_v11 }
 0x280   : > { %8527 = vst [vmem:[#allocation125_spill] sm:$0xff] %v7164_v0 }
 0x282   : > { %2045 = vmatpush.bf16.msrb.mxu0 %v7136_v10  ;;  %v5259_v10 = vld [vmem:[#allocation9 + $0x3a8] sm:$0xf0] }
 0x283   : > { %2037 = vmatpush.bf16.msrb.mxu3 %v7145_v24  ;;  %v7158_v47 = vor.u32 %v6163_v50, %v5259_v10  ;;  %v6159_v50 = vld [vmem:[#allocation9 + $0x384] sm:$0xf]  ;;  %v6206_v24 = vld [vmem:[#allocation9 + $0x4f4] sm:$0xf0] }
 0x284   : > { %v7170_v18 = vor.u32 %v6159_v50, %v5243_v1  ;;  %v5324_v50 = vld [vmem:[#allocation9 + $0x420] sm:$0xf]  ;;  %v6180_v1 = vld [vmem:[#allocation9 + $0x424] sm:$0xf0] }
 0x285   : > { %8525 = vst [vmem:[#allocation123_spill] sm:$0xff] %v7158_v47 }
 0x286   : > { %2046 = vmatpush.bf16.msrb.mxu0 %v7142_v43  ;;  %8529 = vst [vmem:[#allocation127_spill] sm:$0xff] %v7170_v18 }
 0x287   : > { %2298 = vmatpush.bf16.msra.mxu3 %v7147_v30  ;;  %v5428_v30 = vld [vmem:[#allocation9 + $0x4f0] sm:$0xf] }
 0x288   : > { %v7172_v29 = vor.u32 %v6206_v24, %v5428_v30  ;;  %v5412_v24 = vld [vmem:[#allocation9 + $0x4d0] sm:$0xf]  ;;  %v7182_v30 = vor.u32 %v6180_v1, %v5324_v50  ;;  %v5308_v50 = vld [vmem:[#allocation9 + $0x400] sm:$0xf]  ;;  %v6176_v1 = vld [vmem:[#allocation9 + $0x404] sm:$0xf0] }
 0x289   : > { %5174 = vmatmul.msk.f32.vlgmr.msra.gmra.mxu0 %vm513_vm0, %v5172_v55  ;;  %v5340_v55 = vld [vmem:[#allocation9 + $0x440] sm:$0xf] }
 0x28a   : > { %2047 = vmatpush.bf16.msrb.mxu0 %v7150_v63  ;;  %v7168_v10 = vor.u32 %v6184_v42, %v5340_v55  ;;  %8530 = vst [vmem:[#allocation128_spill] sm:$0xff] %v7172_v29  ;;  %v6204_v55 = vld [vmem:[#allocation9 + $0x4e4] sm:$0xf0]  ;;  %v5430_v63 = vld [vmem:[#allocation9 + $0x4f8] sm:$0xf0] }
 0x28b   : > { %2299 = vmatpush.bf16.msra.mxu3 %v7155_v11  ;;  %v6182_v11 = vld [vmem:[#allocation9 + $0x434] sm:$0xf0]  ;;  %v7180_v42 = vor.u32 %v6204_v55, %v5420_v39  ;;  %8533 = vst [vmem:[#allocation131_spill] sm:$0xff] %v7182_v30  ;;  %v5404_v39 = vld [vmem:[#allocation9 + $0x4c0] sm:$0xf] }
 0x28c   : > { %8528 = vst [vmem:[#allocation126_spill] sm:$0xff] %v7168_v10  ;;  %v7175_v17 = vor.u32 %v6182_v11, %v5332_v31  ;;  %v5316_v31 = vld [vmem:[#allocation9 + $0x410] sm:$0xf]  ;;  %v6200_v55 = vld [vmem:[#allocation9 + $0x4c4] sm:$0xf0] }
 0x28d   : > { %8532 = vst [vmem:[#allocation130_spill] sm:$0xff] %v7180_v42 }
 0x28e   : > { %2048 = vmatpush.bf16.msrb.mxu0 %v7158_v47  ;;  %8531 = vst [vmem:[#allocation129_spill] sm:$0xff] %v7175_v17  ;;  %v7218_v47 = vld [vmem:[#allocation2] sm:$0xff] }
 0x28f   : > { %2300 = vmatpush.bf16.msra.mxu3 %v7161_v32  ;;  %v6202_v32 = vld [vmem:[#allocation9 + $0x4d4] sm:$0xf0] }
 0x290   : > { %v7185_v11 = vor.u32 %v6202_v32, %v5412_v24  ;;  %v7195_v32 = vor.u32 %v6176_v1, %v5308_v50  ;;  %v5396_v24 = vld [vmem:[#allocation9 + $0x4b0] sm:$0xf]  ;;  %v5372_v1 = vld [vmem:[#allocation9 + $0x480] sm:$0xf] }
 0x292   : > { %2049 = vmatpush.bf16.msrb.mxu0 %v7164_v0  ;;  %8534 = vst [vmem:[#allocation132_spill] sm:$0xff] %v7185_v11  ;;  %v5366_v0 = vld [vmem:[#allocation9 + $0x478] sm:$0xf0] }
 0x293   : > { %2301 = vmatpush.bf16.msra.mxu3 %v7168_v10  ;;  %v6178_v10 = vld [vmem:[#allocation9 + $0x414] sm:$0xf0]  ;;  %8537 = vst [vmem:[#allocation135_spill] sm:$0xff] %v7195_v32 }
 0x296   : > { %2050 = vmatpush.bf16.msrb.mxu0 %v7170_v18  ;;  %v6189_v18 = vld [vmem:[#allocation9 + $0x474] sm:$0xf] }
 0x297   : > { %2302 = vmatpush.bf16.msra.mxu3 %v7175_v17  ;;  %v7189_v17 = vor.u32 %v6178_v10, %v5316_v31  ;;  %v5388_v10 = vld [vmem:[#allocation9 + $0x4a0] sm:$0xf]  ;;  %v6196_v31 = vld [vmem:[#allocation9 + $0x4a4] sm:$0xf0] }
 0x299   : > { %8535 = vst [vmem:[#allocation133_spill] sm:$0xff] %v7189_v17 }
 0x29a   : > { %2311 = vmatpush.bf16.msra.mxu0 %v7172_v29  ;;  %v7192_v29 = vor.u32 %v6200_v55, %v5404_v39  ;;  %v5380_v55 = vld [vmem:[#allocation9 + $0x490] sm:$0xf] }
 0x29b   : > { %2303 = vmatpush.bf16.msra.mxu3 %v7182_v30  ;;  %v6198_v30 = vld [vmem:[#allocation9 + $0x4b4] sm:$0xf0] }
 0x29c   : > { %8536 = vst [vmem:[#allocation134_spill] sm:$0xff] %v7192_v29 }
 0x29e   : > { %2312 = vmatpush.bf16.msra.mxu0 %v7180_v42  ;;  %v7198_v42 = vor.u32 %v6198_v30, %v5396_v24 }
 0x29f   : > { %2304 = vmatpush.bf16.msra.mxu3 %v7189_v17  ;;  %v6194_v17 = vld [vmem:[#allocation9 + $0x494] sm:$0xf0] }
 0x2a0   : > { %8538 = vst [vmem:[#allocation136_spill] sm:$0xff] %v7198_v42  ;;  %v7206_v50 = vor.u32 %v6194_v17, %v5380_v55  ;;  %v6187_v17 = vld [vmem:[#allocation9 + $0x464] sm:$0xf]  ;;  %v7216_v55 = vor.u32 %v6189_v18, %v5366_v0 }
 0x2a1   : > { %v6183_v0 = vld [vmem:[#allocation9 + $0x444] sm:$0xf] }
 0x2a2   : > { %2313 = vmatpush.bf16.msra.mxu0 %v7185_v11  ;;  %v7201_v11 = vor.u32 %v6196_v31, %v5388_v10  ;;  %8540 = vst [vmem:[#allocation138_spill] sm:$0xff] %v7206_v50 }
 0x2a3   : > { %2305 = vmatpush.bf16.msra.mxu3 %v7195_v32  ;;  %v6192_v32 = vld [vmem:[#allocation9 + $0x484] sm:$0xf0]  ;;  %8542 = vst [vmem:[#allocation140_spill] sm:$0xff] %v7216_v55 }
 0x2a4   : > { %8539 = vst [vmem:[#allocation137_spill] sm:$0xff] %v7201_v11  ;;  %v7211_v24 = vor.u32 %v6192_v32, %v5372_v1  ;;  %v6185_v1 = vld [vmem:[#allocation9 + $0x454] sm:$0xf] }
 0x2a6   : > { %2314 = vmatpush.bf16.msra.mxu0 %v7192_v29  ;;  %8541 = vst [vmem:[#allocation139_spill] sm:$0xff] %v7211_v24 }
 0x2aa   : > { %2315 = vmatpush.bf16.msra.mxu0 %v7198_v42 }
 0x2ae   : > { %2316 = vmatpush.bf16.msra.mxu0 %v7201_v11 }
 0x2b2   : > { %2317 = vmatpush.bf16.msra.mxu0 %v7206_v50  ;;  %v5358_v50 = vld [vmem:[#allocation9 + $0x468] sm:$0xf0] }
 0x2b3   : > { %v7224_v32 = vor.u32 %v6187_v17, %v5358_v50 }
 0x2b5   : > { %8543 = vst [vmem:[#allocation141_spill] sm:$0xff] %v7224_v32 }
 0x2b6   : > { %2318 = vmatpush.bf16.msra.mxu0 %v7211_v24  ;;  %v5342_v24 = vld [vmem:[#allocation9 + $0x448] sm:$0xf0] }
 0x2b7   : > { %v7230_v26 = vor.u32 %v6183_v0, %v5342_v24  ;;  %v5326_v24 = vld [vmem:[#allocation9 + $0x428] sm:$0xf0]  ;;  %v7240_v0 = vld [vmem:[#allocation2 + $0x8] sm:$0xff] }
 0x2b9   : > { %8545 = vst [vmem:[#allocation143_spill] sm:$0xff] %v7230_v26 }
 0x2e2   : > { %v7203_v39 = vpop.f32.mrf.mxu1 }
 0x2e8   : > { %v7209_v30 = vpop.f32.mrf.mxu3 }
 0x2ea   : > { %v1747_v42 = vpop.f32.mrf.mxu1 }
 0x2f0   : > { %v1721_v10 = vpop.f32.mrf.mxu3 }
 0x2f6   : > { %v7214_v31 = vpop.f32.mrf.mxu0 }
 0x2f8   : > { %v1786_v29 = vpop.f32.mrf.mxu3 }
 0x2f9   : > { %v1809_v11 = vpack.c.bf16 %v1786_v29, %v1786_v29  ;;  %v5350_v29 = vld [vmem:[#allocation9 + $0x458] sm:$0xf0] }
 0x2fa   : > { %v7227_v18 = vor.u32 %v6185_v1, %v5350_v29  ;;  %v5303_v1 = vld [vmem:[%s8139_s6 + $0x10] sm:$0xf] }
 0x2fb   : > { %2012 = vmatmul.bf16.vlgmr.msrb.gmra.mxu1 %v1809_v11  ;;  %2038 = vmatmul.bf16.vlgmr.msrb.gmra.mxu3 %v1809_v11  ;;  %v6205_v11 = vld [vmem:[#allocation9 + $0x4f4] sm:$0xf] }
 0x2fc   : > { %2372 = vmatpush.msrb.mxu3 %v7218_v47  ;;  %v7221_v42 = vpop.f32.mrf.mxu2  ;;  %2324 = vmatpush.bf16.msrb.mxu1 %v7216_v55  ;;  %8544 = vst [vmem:[#allocation142_spill] sm:$0xff] %v7227_v18  ;;  %v5334_v55 = vld [vmem:[#allocation9 + $0x438] sm:$0xf0]  ;;  %v7232_v17 = vor.u32 %v6205_v11, %v5430_v63  ;;  %v6201_v11 = vld [vmem:[#allocation9 + $0x4d4] sm:$0xf] }
 0x2fd   : > { %v7238_v29 = vor.u32 %v6181_v22, %v5334_v55  ;;  %v6177_v55 = vld [vmem:[#allocation9 + $0x414] sm:$0xf] }
 0x2fe   : > { %v1734_v10 = vpop.f32.mrf.mxu0  ;;  %8546 = vst [vmem:[#allocation144_spill] sm:$0xff] %v7232_v17 }
 0x2ff   : > { %v6203_v10 = vld [vmem:[#allocation9 + $0x4e4] sm:$0xf]  ;;  %8547 = vst [vmem:[#allocation145_spill] sm:$0xff] %v7238_v29 }
 0x300   : > { %2325 = vmatpush.bf16.msrb.mxu1 %v7224_v32  ;;  %v7244_v63 = vor.u32 %v6203_v10, %v5422_v44  ;;  %v5406_v32 = vld [vmem:[#allocation9 + $0x4c8] sm:$0xf0]  ;;  %v6175_v10 = vld [vmem:[#allocation9 + $0x404] sm:$0xf] }
 0x302   : > { %8548 = vst [vmem:[#allocation146_spill] sm:$0xff] %v7244_v63 }
 0x304   : > { %v1760_v43 = vpop.f32.mrf.mxu2  ;;  %2326 = vmatpush.bf16.msrb.mxu1 %v7227_v18  ;;  %v6199_v18 = vld [vmem:[#allocation9 + $0x4c4] sm:$0xf] }
 0x305   : > { %v6179_v43 = vld [vmem:[#allocation9 + $0x424] sm:$0xf] }
 0x306   : > { %v1806_v50 = vpop.f32.mrf.mxu0  ;;  %v7248_v22 = vor.u32 %v6179_v43, %v5326_v24  ;;  %v7257_v43 = vor.u32 %v6199_v18, %v5406_v32  ;;  %v6197_v24 = vld [vmem:[#allocation9 + $0x4b4] sm:$0xf]  ;;  %v5479_v18 = vld [vmem:[#allocation9 + $0x550] sm:$0xf] }
 0x307   : > { %v1810_v15 = vpack.c.bf16 %v1806_v50, %v1806_v50  ;;  %v5414_v50 = vld [vmem:[#allocation9 + $0x4d8] sm:$0xf0] }
 0x308   : > { %2327 = vmatpush.bf16.msrb.mxu1 %v7230_v26  ;;  %8549 = vst [vmem:[#allocation147_spill] sm:$0xff] %v7248_v22  ;;  %v7251_v26 = vor.u32 %v6201_v11, %v5414_v50 }
 0x309   : > { %2025 = vmatmul.bf16.vlgmr.msra.gmra.mxu2 %v1810_v15  ;;  %2051 = vmatmul.bf16.vlgmr.msrb.gmra.mxu0 %v1810_v15  ;;  %v5318_v15 = vld [vmem:[#allocation9 + $0x418] sm:$0xf0]  ;;  %8552 = vst [vmem:[#allocation150_spill] sm:$0xff] %v7257_v43 }
 0x30a   : > { %2392 = vmatpush.msrb.mxu0 %v7240_v0  ;;  %2337 = vmatpush.bf16.msra.mxu2 %v7232_v17  ;;  %8550 = vst [vmem:[#allocation148_spill] sm:$0xff] %v7251_v26  ;;  %v7254_v44 = vor.u32 %v6177_v55, %v5318_v15  ;;  %v5310_v17 = vld [vmem:[#allocation9 + $0x408] sm:$0xf0]  ;;  %v5487_v55 = vld [vmem:[#allocation9 + $0x560] sm:$0xf] }
 0x30b   : > { %5304 = vmatmul.msk.f32.vlgmr.msra.gmra.mxu1 %vm513_vm0, %v5303_v1  ;;  %v7260_v11 = vor.u32 %v6175_v10, %v5310_v17  ;;  %v6220_v15 = vld [vmem:[#allocation9 + $0x564] sm:$0xf0]  ;;  %v6218_v17 = vld [vmem:[#allocation9 + $0x554] sm:$0xf0]  ;;  %v5471_v10 = vld [vmem:[#allocation9 + $0x540] sm:$0xf] }
 0x30c   : > { %2328 = vmatpush.bf16.msrb.mxu1 %v7238_v29  ;;  %8551 = vst [vmem:[#allocation149_spill] sm:$0xff] %v7254_v44  ;;  %v6222_v29 = vld [vmem:[#allocation9 + $0x574] sm:$0xf0]  ;;  %v7270_v32 = vor.u32 %v6220_v15, %v5487_v55  ;;  %v5463_v15 = vld [vmem:[#allocation9 + $0x530] sm:$0xf] }
 0x30d   : > { %8553 = vst [vmem:[#allocation151_spill] sm:$0xff] %v7260_v11  ;;  %v7262_v50 = vor.u32 %v6222_v29, %v5495_v13  ;;  %v7274_v13 = vor.u32 %v6218_v17, %v5479_v18  ;;  %v5390_v29 = vld [vmem:[#allocation9 + $0x4a8] sm:$0xf0]  ;;  %v6191_v17 = vld [vmem:[#allocation9 + $0x484] sm:$0xf] }
 0x30e   : > { %2338 = vmatpush.bf16.msra.mxu2 %v7244_v63  ;;  %8556 = vst [vmem:[#allocation154_spill] sm:$0xff] %v7270_v32  ;;  %v5553_v63 = vld [vmem:[#allocation9 + $0x5e8] sm:$0xf0] }
 0x30f   : > { %8554 = vst [vmem:[#allocation152_spill] sm:$0xff] %v7262_v50 }
 0x310   : > { %2329 = vmatpush.bf16.msrb.mxu1 %v7248_v22  ;;  %v7265_v22 = vor.u32 %v6197_v24, %v5398_v23  ;;  %8557 = vst [vmem:[#allocation155_spill] sm:$0xff] %v7274_v13  ;;  %v6195_v23 = vld [vmem:[#allocation9 + $0x4a4] sm:$0xf] }
 0x311   : > { %v7277_v24 = vor.u32 %v6195_v23, %v5390_v29  ;;  %v5374_v23 = vld [vmem:[#allocation9 + $0x488] sm:$0xf0]  ;;  %v5455_v29 = vld [vmem:[#allocation9 + $0x520] sm:$0xf] }
 0x312   : > { %2339 = vmatpush.bf16.msra.mxu2 %v7251_v26  ;;  %8555 = vst [vmem:[#allocation153_spill] sm:$0xff] %v7265_v22  ;;  %v5473_v26 = vld [vmem:[#allocation9 + $0x548] sm:$0xf0] }
 0x313   : > { %8558 = vst [vmem:[#allocation156_spill] sm:$0xff] %v7277_v24 }
 0x314   : > { %2330 = vmatpush.bf16.msrb.mxu1 %v7254_v44 }
 0x316   : > { %2340 = vmatpush.bf16.msra.mxu2 %v7257_v43 }
 0x318   : > { %2331 = vmatpush.bf16.msrb.mxu1 %v7260_v11  ;;  %v6193_v11 = vld [vmem:[#allocation9 + $0x494] sm:$0xf] }
 0x319   : > { %5305 = vmatmul.msk.f32.vlgmr.msrb.gmra.mxu2 %vm513_vm0, %v5303_v1  ;;  %v6216_v1 = vld [vmem:[#allocation9 + $0x544] sm:$0xf0] }
 0x31a   : > { %2341 = vmatpush.bf16.msra.mxu2 %v7265_v22  ;;  %v7279_v55 = vor.u32 %v6216_v1, %v5471_v10  ;;  %v6214_v22 = vld [vmem:[#allocation9 + $0x534] sm:$0xf0]  ;;  %v6212_v10 = vld [vmem:[#allocation9 + $0x524] sm:$0xf0]  ;;  %v5559_v1 = vld [vmem:[#allocation9 + $0x5f0] sm:$0xf] }
 0x31b   : > { %v7285_v18 = vor.u32 %v6214_v22, %v5463_v15  ;;  %v7291_v43 = vor.u32 %v6212_v10, %v5455_v29  ;;  %v5447_v22 = vld [vmem:[#allocation9 + $0x510] sm:$0xf]  ;;  %v5551_v15 = vld [vmem:[#allocation9 + $0x5e0] sm:$0xf]  ;;  %v6208_v29 = vld [vmem:[#allocation9 + $0x504] sm:$0xf0] }
 0x31c   : > { %2592 = vmatpush.bf16.msra.mxu1 %v7262_v50  ;;  %v5382_v50 = vld [vmem:[#allocation9 + $0x498] sm:$0xf0]  ;;  %8559 = vst [vmem:[#allocation157_spill] sm:$0xff] %v7279_v55  ;;  %v5543_v10 = vld [vmem:[#allocation9 + $0x5d0] sm:$0xf] }
 0x31d   : > { %v7282_v44 = vor.u32 %v6193_v11, %v5382_v50  ;;  %8561 = vst [vmem:[#allocation159_spill] sm:$0xff] %v7285_v18  ;;  %v6210_v50 = vld [vmem:[#allocation9 + $0x514] sm:$0xf0] }
 0x31e   : > { %2342 = vmatpush.bf16.msra.mxu2 %v7277_v24  ;;  %8563 = vst [vmem:[#allocation161_spill] sm:$0xff] %v7291_v43  ;;  %v6215_v24 = vld [vmem:[#allocation9 + $0x544] sm:$0xf] }
 0x31f   : > { %8560 = vst [vmem:[#allocation158_spill] sm:$0xff] %v7282_v44 }
 0x320   : > { %2593 = vmatpush.bf16.msra.mxu1 %v7270_v32  ;;  %v6238_v32 = vld [vmem:[#allocation9 + $0x5f4] sm:$0xf0] }
 0x321   : > { %v7293_v11 = vor.u32 %v6238_v32, %v5559_v1  ;;  %v5439_v32 = vld [vmem:[#allocation9 + $0x500] sm:$0xf] }
 0x322   : > { %2343 = vmatpush.bf16.msra.mxu2 %v7282_v44  ;;  %v7304_v1 = vor.u32 %v6208_v29, %v5439_v32  ;;  %v6228_v32 = vld [vmem:[#allocation9 + $0x5a4] sm:$0xf0]  ;;  %v5511_v29 = vld [vmem:[#allocation9 + $0x590] sm:$0xf]  ;;  %v6219_v44 = vld [vmem:[#allocation9 + $0x564] sm:$0xf] }
 0x323   : > { %8564 = vst [vmem:[#allocation162_spill] sm:$0xff] %v7293_v11 }
 0x324   : > { %2594 = vmatpush.bf16.msra.mxu1 %v7274_v13  ;;  %v7289_v13 = vor.u32 %v6191_v17, %v5374_v23  ;;  %v6236_v17 = vld [vmem:[#allocation9 + $0x5e4] sm:$0xf0]  ;;  %8567 = vst [vmem:[#allocation165_spill] sm:$0xff] %v7304_v1 }
 0x325   : > { %v7300_v23 = vor.u32 %v6236_v17, %v5551_v15  ;;  %v5527_v17 = vld [vmem:[#allocation9 + $0x5b0] sm:$0xf] }
 0x326   : > { %8562 = vst [vmem:[#allocation160_spill] sm:$0xff] %v7289_v13  ;;  %2344 = vmatpush.bf16.msra.mxu2 %v7289_v13 }
 0x327   : > { %8566 = vst [vmem:[#allocation164_spill] sm:$0xff] %v7300_v23 }
 0x328   : > { %2595 = vmatpush.bf16.msra.mxu1 %v7279_v55 }
 0x32a   : > { %2605 = vmatpush.bf16.msrb.mxu2 %v7293_v11  ;;  %v5519_v11 = vld [vmem:[#allocation9 + $0x5a0] sm:$0xf] }
 0x32c   : > { %2596 = vmatpush.bf16.msra.mxu1 %v7285_v18  ;;  %v7298_v18 = vor.u32 %v6210_v50, %v5447_v22  ;;  %v5535_v22 = vld [vmem:[#allocation9 + $0x5c0] sm:$0xf]  ;;  %v6232_v50 = vld [vmem:[#allocation9 + $0x5c4] sm:$0xf0] }
 0x32d   : > { %v7310_v15 = vor.u32 %v6232_v50, %v5535_v22  ;;  %v5503_v50 = vld [vmem:[#allocation9 + $0x580] sm:$0xf] }
 0x32e   : > { %8565 = vst [vmem:[#allocation163_spill] sm:$0xff] %v7298_v18  ;;  %2606 = vmatpush.bf16.msrb.mxu2 %v7300_v23 }
 0x32f   : > { %8569 = vst [vmem:[#allocation167_spill] sm:$0xff] %v7310_v15 }
 0x330   : > { %2597 = vmatpush.bf16.msra.mxu1 %v7291_v43  ;;  %v6234_v43 = vld [vmem:[#allocation9 + $0x5d4] sm:$0xf0] }
 0x331   : > { %v7306_v55 = vor.u32 %v6234_v43, %v5543_v10  ;;  %v7316_v43 = vor.u32 %v6228_v32, %v5519_v11  ;;  %v6226_v10 = vld [vmem:[#allocation9 + $0x594] sm:$0xf0] }
 0x332   : > { %v7321_v22 = vor.u32 %v6226_v10, %v5511_v29 }
 0x333   : > { %8568 = vst [vmem:[#allocation166_spill] sm:$0xff] %v7306_v55  ;;  %2607 = vmatpush.bf16.msrb.mxu2 %v7306_v55 }
 0x334   : > { %2598 = vmatpush.bf16.msra.mxu1 %v7298_v18  ;;  %v6230_v18 = vld [vmem:[#allocation9 + $0x5b4] sm:$0xf0]  ;;  %8571 = vst [vmem:[#allocation169_spill] sm:$0xff] %v7316_v43 }
 0x335   : > { %v7313_v23 = vor.u32 %v6230_v18, %v5527_v17  ;;  %8572 = vst [vmem:[#allocation170_spill] sm:$0xff] %v7321_v22 }
 0x337   : > { %2608 = vmatpush.bf16.msrb.mxu2 %v7310_v15  ;;  %8570 = vst [vmem:[#allocation168_spill] sm:$0xff] %v7313_v23  ;;  %v6224_v15 = vld [vmem:[#allocation9 + $0x584] sm:$0xf0] }
 0x338   : > { %2599 = vmatpush.bf16.msra.mxu1 %v7304_v1  ;;  %v7326_v17 = vor.u32 %v6224_v15, %v5503_v50 }
 0x33a   : > { %8573 = vst [vmem:[#allocation171_spill] sm:$0xff] %v7326_v17 }
 0x33b   : > { %2609 = vmatpush.bf16.msrb.mxu2 %v7313_v23 }
 0x33f   : > { %2610 = vmatpush.bf16.msrb.mxu2 %v7316_v43  ;;  %v5497_v43 = vld [vmem:[#allocation9 + $0x578] sm:$0xf0] }
 0x343   : > { %2611 = vmatpush.bf16.msrb.mxu2 %v7321_v22  ;;  %v6221_v22 = vld [vmem:[#allocation9 + $0x574] sm:$0xf] }
 0x344   : > { %v7334_v15 = vor.u32 %v6221_v22, %v5497_v43  ;;  %v6237_v43 = vld [vmem:[#allocation9 + $0x5f4] sm:$0xf]  ;;  %v5561_v22 = vld [vmem:[#allocation9 + $0x5f8] sm:$0xf0] }
 0x346   : > { %8574 = vst [vmem:[#allocation172_spill] sm:$0xff] %v7334_v15 }
 0x347   : > { %2612 = vmatpush.bf16.msrb.mxu2 %v7326_v17  ;;  %v5481_v17 = vld [vmem:[#allocation9 + $0x558] sm:$0xf0] }
 0x378   : > { %v7318_v1 = vpop.f32.mrf.mxu1 }
 0x37e   : > { %v7324_v18 = vpop.f32.mrf.mxu3 }
 0x380   : > { %v2015_v55 = vpop.f32.mrf.mxu1 }
 0x381   : > { %v5489_v55 = vld [vmem:[#allocation9 + $0x568] sm:$0xf0] }
 0x382   : > { %v7337_v50 = vor.u32 %v6219_v44, %v5489_v55  ;;  %v6213_v44 = vld [vmem:[#allocation9 + $0x534] sm:$0xf]  ;;  %v5465_v55 = vld [vmem:[#allocation9 + $0x538] sm:$0xf0] }
 0x383   : > { %v7352_v7 = vor.u32 %v6213_v44, %v5465_v55  ;;  %v6231_v55 = vld [vmem:[#allocation9 + $0x5c4] sm:$0xf] }
 0x384   : > { %8575 = vst [vmem:[#allocation173_spill] sm:$0xff] %v7337_v50 }
 0x385   : > { %8579 = vst [vmem:[#allocation177_spill] sm:$0xff] %v7352_v7 }
 0x386   : > { %v7329_v11 = vpop.f32.mrf.mxu0  ;;  %v2041_v32 = vpop.f32.mrf.mxu3 }
 0x387   : > { %v6217_v32 = vld [vmem:[#allocation9 + $0x554] sm:$0xf] }
 0x388   : > { %v2080_v23 = vpop.f32.mrf.mxu1 }
 0x389   : > { %v2103_v13 = vpack.c.bf16 %v2080_v23, %v2080_v23 }
 0x38b   : > { %2306 = vmatmul.bf16.vlgmr.msra.gmra.mxu3 %v2103_v13  ;;  %2332 = vmatmul.bf16.vlgmr.msrb.gmra.mxu1 %v2103_v13  ;;  %v7340_v13 = vor.u32 %v6217_v32, %v5481_v17  ;;  %v6235_v32 = vld [vmem:[#allocation9 + $0x5e4] sm:$0xf] }
 0x38c   : > { %2666 = vmatpush.msrb.mxu1 %v7218_v47  ;;  %v7332_v29 = vpop.f32.mrf.mxu2  ;;  %2618 = vmatpush.bf16.msra.mxu3 %v7334_v15  ;;  %v7346_v15 = vor.u32 %v6215_v24, %v5473_v26  ;;  %v7356_v26 = vor.u32 %v6235_v32, %v5553_v63  ;;  %v6233_v24 = vld [vmem:[#allocation9 + $0x5d4] sm:$0xf]  ;;  %v6207_v63 = vld [vmem:[#allocation9 + $0x504] sm:$0xf]  ;;  %v5441_v32 = vld [vmem:[#allocation9 + $0x508] sm:$0xf0] }
 0x38d   : > { %8576 = vst [vmem:[#allocation174_spill] sm:$0xff] %v7340_v13 }
 0x38e   : > { %v2054_v10 = vpop.f32.mrf.mxu0  ;;  %8577 = vst [vmem:[#allocation175_spill] sm:$0xff] %v7346_v15 }
 0x38f   : > { %v5434_v10 = vld [vmem:[%s8139_s6 + $0x14] sm:$0xf]  ;;  %8580 = vst [vmem:[#allocation178_spill] sm:$0xff] %v7356_v26 }
 0x390   : > { %2619 = vmatpush.bf16.msra.mxu3 %v7337_v50  ;;  %v7349_v50 = vor.u32 %v6237_v43, %v5561_v22  ;;  %v5545_v43 = vld [vmem:[#allocation9 + $0x5d8] sm:$0xf0] }
 0x391   : > { %v7362_v44 = vor.u32 %v6233_v24, %v5545_v43  ;;  %v7371_v24 = vor.u32 %v6207_v63, %v5441_v32  ;;  %v5610_v63 = vld [vmem:[#allocation9 + $0x650] sm:$0xf]  ;;  %v6250_v32 = vld [vmem:[#allocation9 + $0x654] sm:$0xf0] }
 0x392   : > { %8578 = vst [vmem:[#allocation176_spill] sm:$0xff] %v7349_v50 }
 0x393   : > { %8582 = vst [vmem:[#allocation180_spill] sm:$0xff] %v7362_v44 }
 0x394   : > { %v2028_v23 = vpop.f32.mrf.mxu2  ;;  %2620 = vmatpush.bf16.msra.mxu3 %v7340_v13  ;;  %v5457_v13 = vld [vmem:[#allocation9 + $0x528] sm:$0xf0]  ;;  %8585 = vst [vmem:[#allocation183_spill] sm:$0xff] %v7371_v24 }
 0x395   : > { %v7359_v22 = vor.u32 %v6211_v4, %v5457_v13  ;;  %v5626_v4 = vld [vmem:[#allocation9 + $0x670] sm:$0xf]  ;;  %v6254_v13 = vld [vmem:[#allocation9 + $0x674] sm:$0xf0] }
 0x396   : > { %v7373_v43 = vor.u32 %v6254_v13, %v5626_v4  ;;  %v7387_v4 = vor.u32 %v6250_v32, %v5610_v63  ;;  %v5594_v32 = vld [vmem:[#allocation9 + $0x630] sm:$0xf] }
 0x397   : > { %8581 = vst [vmem:[#allocation179_spill] sm:$0xff] %v7359_v22 }
 0x398   : > { %2621 = vmatpush.bf16.msra.mxu3 %v7346_v15  ;;  %v5449_v15 = vld [vmem:[#allocation9 + $0x518] sm:$0xf0]  ;;  %8586 = vst [vmem:[#allocation184_spill] sm:$0xff] %v7373_v43 }
 0x399   : > { %8590 = vst [vmem:[#allocation188_spill] sm:$0xff] %v7387_v4 }
 0x39b   : > { %5435 = vmatmul.msk.f32.vlgmr.msrb.gmra.mxu3 %vm513_vm0, %v5434_v10 }
 0x39c   : > { %v2100_v23 = vpop.f32.mrf.mxu2  ;;  %2622 = vmatpush.bf16.msra.mxu3 %v7352_v7  ;;  %v6229_v7 = vld [vmem:[#allocation9 + $0x5b4] sm:$0xf] }
 0x39d   : > { %v2104_v17 = vpack.c.bf16 %v2100_v23, %v2100_v23  ;;  %v6209_v23 = vld [vmem:[#allocation9 + $0x514] sm:$0xf] }
 0x39e   : > { %v7365_v56 = vor.u32 %v6209_v23, %v5449_v15  ;;  %v7376_v15 = vor.u32 %v6229_v7, %v5529_v2  ;;  %v5618_v23 = vld [vmem:[#allocation9 + $0x660] sm:$0xf]  ;;  %v6225_v2 = vld [vmem:[#allocation9 + $0x594] sm:$0xf]  ;;  %v5513_v7 = vld [vmem:[#allocation9 + $0x598] sm:$0xf0] }
 0x39f   : > { %2319 = vmatmul.bf16.vlgmr.msra.gmra.mxu0 %v2104_v17  ;;  %2345 = vmatmul.bf16.vlgmr.msra.gmra.mxu2 %v2104_v17  ;;  %v5537_v17 = vld [vmem:[#allocation9 + $0x5c8] sm:$0xf0]  ;;  %v7390_v13 = vor.u32 %v6225_v2, %v5513_v7  ;;  %v5682_v7 = vld [vmem:[#allocation9 + $0x6e0] sm:$0xf] }
 0x3a0   : > { %2686 = vmatpush.msra.mxu2 %v7240_v0  ;;  %2631 = vmatpush.bf16.msra.mxu0 %v7349_v50  ;;  %8583 = vst [vmem:[#allocation181_spill] sm:$0xff] %v7365_v56  ;;  %v7368_v50 = vor.u32 %v6231_v55, %v5537_v17 }
 0x3a1   : > { %2623 = vmatpush.bf16.msra.mxu3 %v7359_v22  ;;  %8587 = vst [vmem:[#allocation185_spill] sm:$0xff] %v7376_v15  ;;  %v6252_v22 = vld [vmem:[#allocation9 + $0x664] sm:$0xf0] }
 0x3a2   : > { %8584 = vst [vmem:[#allocation182_spill] sm:$0xff] %v7368_v50  ;;  %v7381_v55 = vor.u32 %v6252_v22, %v5618_v23  ;;  %v6248_v22 = vld [vmem:[#allocation9 + $0x644] sm:$0xf0]  ;;  %v5505_v23 = vld [vmem:[#allocation9 + $0x588] sm:$0xf0] }
 0x3a3   : > { %8591 = vst [vmem:[#allocation189_spill] sm:$0xff] %v7390_v13 }
 0x3a4   : > { %2632 = vmatpush.bf16.msra.mxu0 %v7356_v26  ;;  %v6227_v26 = vld [vmem:[#allocation9 + $0x5a4] sm:$0xf]  ;;  %8588 = vst [vmem:[#allocation186_spill] sm:$0xff] %v7381_v55 }
 0x3a5   : > { %2624 = vmatpush.bf16.msra.mxu3 %v7365_v56 }
 0x3a8   : > { %2633 = vmatpush.bf16.msra.mxu0 %v7362_v44  ;;  %v5521_v44 = vld [vmem:[#allocation9 + $0x5a8] sm:$0xf0] }
 0x3a9   : > { %2625 = vmatpush.bf16.msra.mxu3 %v7371_v24  ;;  %v7384_v17 = vor.u32 %v6227_v26, %v5521_v44  ;;  %v6223_v26 = vld [vmem:[#allocation9 + $0x584] sm:$0xf]  ;;  %v6270_v24 = vld [vmem:[#allocation9 + $0x6f4] sm:$0xf0] }
 0x3aa   : > { %v7396_v56 = vor.u32 %v6223_v26, %v5505_v23  ;;  %v5586_v26 = vld [vmem:[#allocation9 + $0x620] sm:$0xf]  ;;  %v6244_v23 = vld [vmem:[#allocation9 + $0x624] sm:$0xf0] }
 0x3ab   : > { %8589 = vst [vmem:[#allocation187_spill] sm:$0xff] %v7384_v17 }
 0x3ac   : > { %2634 = vmatpush.bf16.msra.mxu0 %v7368_v50  ;;  %8593 = vst [vmem:[#allocation191_spill] sm:$0xff] %v7396_v56 }
 0x3ad   : > { %2886 = vmatpush.bf16.msrb.mxu3 %v7373_v43  ;;  %v5690_v43 = vld [vmem:[#allocation9 + $0x6f0] sm:$0xf] }
 0x3ae   : > { %v7398_v63 = vor.u32 %v6270_v24, %v5690_v43  ;;  %v5674_v24 = vld [vmem:[#allocation9 + $0x6d0] sm:$0xf]  ;;  %v7408_v43 = vor.u32 %v6244_v23, %v5586_v26  ;;  %v5570_v26 = vld [vmem:[#allocation9 + $0x600] sm:$0xf]  ;;  %v6240_v23 = vld [vmem:[#allocation9 + $0x604] sm:$0xf0] }
 0x3af   : > { %5436 = vmatmul.msk.f32.vlgmr.msrb.gmra.mxu0 %vm513_vm0, %v5434_v10  ;;  %v5602_v10 = vld [vmem:[#allocation9 + $0x640] sm:$0xf] }
 0x3b0   : > { %2635 = vmatpush.bf16.msra.mxu0 %v7376_v15  ;;  %v7394_v44 = vor.u32 %v6248_v22, %v5602_v10  ;;  %8594 = vst [vmem:[#allocation192_spill] sm:$0xff] %v7398_v63  ;;  %v6268_v10 = vld [vmem:[#allocation9 + $0x6e4] sm:$0xf0]  ;;  %v5692_v15 = vld [vmem:[#allocation9 + $0x6f8] sm:$0xf0] }
 0x3b1   : > { %2887 = vmatpush.bf16.msrb.mxu3 %v7381_v55  ;;  %v6246_v55 = vld [vmem:[#allocation9 + $0x634] sm:$0xf0]  ;;  %v7406_v22 = vor.u32 %v6268_v10, %v5682_v7  ;;  %8597 = vst [vmem:[#allocation195_spill] sm:$0xff] %v7408_v43  ;;  %v5666_v7 = vld [vmem:[#allocation9 + $0x6c0] sm:$0xf] }
 0x3b2   : > { %8592 = vst [vmem:[#allocation190_spill] sm:$0xff] %v7394_v44  ;;  %v7401_v2 = vor.u32 %v6246_v55, %v5594_v32  ;;  %v5578_v32 = vld [vmem:[#allocation9 + $0x610] sm:$0xf]  ;;  %v6264_v10 = vld [vmem:[#allocation9 + $0x6c4] sm:$0xf0] }
 0x3b3   : > { %8596 = vst [vmem:[#allocation194_spill] sm:$0xff] %v7406_v22 }
 0x3b4   : > { %2636 = vmatpush.bf16.msra.mxu0 %v7384_v17  ;;  %8595 = vst [vmem:[#allocation193_spill] sm:$0xff] %v7401_v2  ;;  %v6269_v17 = vld [vmem:[#allocation9 + $0x6f4] sm:$0xf] }
 0x3b5   : > { %2888 = vmatpush.bf16.msrb.mxu3 %v7387_v4  ;;  %v6266_v4 = vld [vmem:[#allocation9 + $0x6d4] sm:$0xf0] }
 0x3b6   : > { %v7411_v55 = vor.u32 %v6266_v4, %v5674_v24  ;;  %v7421_v4 = vor.u32 %v6240_v23, %v5570_v26  ;;  %v5658_v24 = vld [vmem:[#allocation9 + $0x6b0] sm:$0xf]  ;;  %v5634_v23 = vld [vmem:[#allocation9 + $0x680] sm:$0xf] }
 0x3b8   : > { %2637 = vmatpush.bf16.msra.mxu0 %v7390_v13  ;;  %8598 = vst [vmem:[#allocation196_spill] sm:$0xff] %v7411_v55  ;;  %v5628_v13 = vld [vmem:[#allocation9 + $0x678] sm:$0xf0] }
 0x3b9   : > { %2889 = vmatpush.bf16.msrb.mxu3 %v7394_v44  ;;  %v6242_v44 = vld [vmem:[#allocation9 + $0x614] sm:$0xf0]  ;;  %8601 = vst [vmem:[#allocation199_spill] sm:$0xff] %v7421_v4 }
 0x3bc   : > { %2638 = vmatpush.bf16.msra.mxu0 %v7396_v56  ;;  %v6253_v56 = vld [vmem:[#allocation9 + $0x674] sm:$0xf] }
 0x3bd   : > { %2890 = vmatpush.bf16.msrb.mxu3 %v7401_v2  ;;  %v7415_v2 = vor.u32 %v6242_v44, %v5578_v32  ;;  %v5650_v44 = vld [vmem:[#allocation9 + $0x6a0] sm:$0xf]  ;;  %v6260_v32 = vld [vmem:[#allocation9 + $0x6a4] sm:$0xf0] }
 0x3bf   : > { %8599 = vst [vmem:[#allocation197_spill] sm:$0xff] %v7415_v2 }
 0x3c0   : > { %2899 = vmatpush.bf16.msrb.mxu0 %v7398_v63  ;;  %v7418_v63 = vor.u32 %v6264_v10, %v5666_v7  ;;  %v5642_v10 = vld [vmem:[#allocation9 + $0x690] sm:$0xf] }
 0x3c1   : > { %2891 = vmatpush.bf16.msrb.mxu3 %v7408_v43  ;;  %v6262_v43 = vld [vmem:[#allocation9 + $0x6b4] sm:$0xf0] }
 0x3c2   : > { %8600 = vst [vmem:[#allocation198_spill] sm:$0xff] %v7418_v63 }
 0x3c4   : > { %2900 = vmatpush.bf16.msrb.mxu0 %v7406_v22  ;;  %v7424_v22 = vor.u32 %v6262_v43, %v5658_v24 }
 0x3c5   : > { %2892 = vmatpush.bf16.msrb.mxu3 %v7415_v2  ;;  %v6258_v2 = vld [vmem:[#allocation9 + $0x694] sm:$0xf0] }
 0x3c6   : > { %8602 = vst [vmem:[#allocation200_spill] sm:$0xff] %v7424_v22  ;;  %v7432_v26 = vor.u32 %v6258_v2, %v5642_v10  ;;  %v6251_v2 = vld [vmem:[#allocation9 + $0x664] sm:$0xf]  ;;  %v7442_v10 = vor.u32 %v6253_v56, %v5628_v13  ;;  %v5604_v13 = vld [vmem:[#allocation9 + $0x648] sm:$0xf0] }
 0x3c7   : > { %v6247_v56 = vld [vmem:[#allocation9 + $0x644] sm:$0xf] }
 0x3c8   : > { %2901 = vmatpush.bf16.msrb.mxu0 %v7411_v55  ;;  %v7427_v55 = vor.u32 %v6260_v32, %v5650_v44  ;;  %8604 = vst [vmem:[#allocation202_spill] sm:$0xff] %v7432_v26  ;;  %v7454_v50 = vor.u32 %v6247_v56, %v5604_v13  ;;  %v6243_v56 = vld [vmem:[#allocation9 + $0x624] sm:$0xf]  ;;  %v5588_v13 = vld [vmem:[#allocation9 + $0x628] sm:$0xf0] }
 0x3c9   : > { %2893 = vmatpush.bf16.msrb.mxu3 %v7421_v4  ;;  %v6256_v4 = vld [vmem:[#allocation9 + $0x684] sm:$0xf0]  ;;  %8606 = vst [vmem:[#allocation204_spill] sm:$0xff] %v7442_v10 }
 0x3ca   : > { %8603 = vst [vmem:[#allocation201_spill] sm:$0xff] %v7427_v55  ;;  %v7437_v24 = vor.u32 %v6256_v4, %v5634_v23  ;;  %v6249_v23 = vld [vmem:[#allocation9 + $0x654] sm:$0xf] }
 0x3cb   : > { %8609 = vst [vmem:[#allocation207_spill] sm:$0xff] %v7454_v50 }
 0x3cc   : > { %2902 = vmatpush.bf16.msrb.mxu0 %v7418_v63  ;;  %8605 = vst [vmem:[#allocation203_spill] sm:$0xff] %v7437_v24 }
 0x3d0   : > { %2903 = vmatpush.bf16.msrb.mxu0 %v7424_v22 }
 0x3d4   : > { %2904 = vmatpush.bf16.msrb.mxu0 %v7427_v55 }
 0x3d8   : > { %2905 = vmatpush.bf16.msrb.mxu0 %v7432_v26  ;;  %v5620_v26 = vld [vmem:[#allocation9 + $0x668] sm:$0xf0] }
 0x3dc   : > { %2906 = vmatpush.bf16.msrb.mxu0 %v7437_v24 }
 0x408   : > { %v7429_v7 = vpop.f32.mrf.mxu1 }
 0x40e   : > { %v7435_v43 = vpop.f32.mrf.mxu3 }
 0x410   : > { %v2335_v22 = vpop.f32.mrf.mxu1 }
 0x411   : > { %v7448_v22 = vor.u32 %v6251_v2, %v5620_v26  ;;  %v7456_v2 = vor.u32 %v6269_v17, %v5692_v15  ;;  %v6265_v17 = vld [vmem:[#allocation9 + $0x6d4] sm:$0xf] }
 0x413   : > { %8607 = vst [vmem:[#allocation205_spill] sm:$0xff] %v7448_v22 }
 0x414   : > { %8610 = vst [vmem:[#allocation208_spill] sm:$0xff] %v7456_v2 }
 0x416   : > { %v2309_v44 = vpop.f32.mrf.mxu3 }
 0x417   : > { %v5612_v44 = vld [vmem:[#allocation9 + $0x658] sm:$0xf0] }
 0x41c   : > { %v7440_v32 = vpop.f32.mrf.mxu0 }
 0x41e   : > { %v2374_v63 = vpop.f32.mrf.mxu3 }
 0x41f   : > { %v2397_v55 = vpack.c.bf16 %v2374_v63, %v2374_v63  ;;  %v7451_v63 = vor.u32 %v6249_v23, %v5612_v44  ;;  %v5565_v23 = vld [vmem:[%s8139_s6 + $0x18] sm:$0xf] }
 0x421   : > { %2600 = vmatmul.bf16.vlgmr.msra.gmra.mxu1 %v2397_v55  ;;  %2626 = vmatmul.bf16.vlgmr.msra.gmra.mxu3 %v2397_v55  ;;  %8608 = vst [vmem:[#allocation206_spill] sm:$0xff] %v7451_v63 }
 0x422   : > { %2960 = vmatpush.msra.mxu3 %v7218_v47  ;;  %v7445_v4 = vpop.f32.mrf.mxu2  ;;  %2912 = vmatpush.bf16.msra.mxu1 %v7442_v10  ;;  %v5596_v10 = vld [vmem:[#allocation9 + $0x638] sm:$0xf0] }
 0x423   : > { %v7462_v44 = vor.u32 %v6245_v51, %v5596_v10  ;;  %v6241_v51 = vld [vmem:[#allocation9 + $0x614] sm:$0xf]  ;;  %v5580_v10 = vld [vmem:[#allocation9 + $0x618] sm:$0xf0] }
 0x424   : > { %v2322_v24 = vpop.f32.mrf.mxu0 }
 0x425   : > { %v6267_v24 = vld [vmem:[#allocation9 + $0x6e4] sm:$0xf]  ;;  %8611 = vst [vmem:[#allocation209_spill] sm:$0xff] %v7462_v44 }
 0x426   : > { %2913 = vmatpush.bf16.msra.mxu1 %v7448_v22  ;;  %v7466_v15 = vor.u32 %v6267_v24, %v5684_v45  ;;  %v7476_v45 = vor.u32 %v6241_v51, %v5580_v10  ;;  %v6239_v24 = vld [vmem:[#allocation9 + $0x604] sm:$0xf]  ;;  %v5757_v22 = vld [vmem:[#allocation9 + $0x770] sm:$0xf]  ;;  %v5749_v51 = vld [vmem:[#allocation9 + $0x760] sm:$0xf] }
 0x427   : > { %v6284_v10 = vld [vmem:[#allocation9 + $0x764] sm:$0xf0] }
 0x428   : > { %8612 = vst [vmem:[#allocation210_spill] sm:$0xff] %v7466_v15 }
 0x429   : > { %8615 = vst [vmem:[#allocation213_spill] sm:$0xff] %v7476_v45 }
 0x42a   : > { %v2348_v55 = vpop.f32.mrf.mxu2  ;;  %2914 = vmatpush.bf16.msra.mxu1 %v7451_v63  ;;  %v5668_v63 = vld [vmem:[#allocation9 + $0x6c8] sm:$0xf0] }
 0x42b   : > { %v5676_v55 = vld [vmem:[#allocation9 + $0x6d8] sm:$0xf0] }
 0x42c   : > { %v2394_v26 = vpop.f32.mrf.mxu0 }
 0x42d   : > { %v2398_v61 = vpack.c.bf16 %v2394_v26, %v2394_v26  ;;  %v7470_v26 = vor.u32 %v6243_v56, %v5588_v13  ;;  %v6261_v13 = vld [vmem:[#allocation9 + $0x6b4] sm:$0xf] }
 0x42e   : > { %2915 = vmatpush.bf16.msra.mxu1 %v7454_v50  ;;  %v6263_v50 = vld [vmem:[#allocation9 + $0x6c4] sm:$0xf] }
 0x42f   : > { %2613 = vmatmul.bf16.vlgmr.msrb.gmra.mxu2 %v2398_v61  ;;  %2639 = vmatmul.bf16.vlgmr.msra.gmra.mxu0 %v2398_v61  ;;  %8613 = vst [vmem:[#allocation211_spill] sm:$0xff] %v7470_v26  ;;  %v7473_v61 = vor.u32 %v6265_v17, %v5676_v55  ;;  %v7479_v56 = vor.u32 %v6263_v50, %v5668_v63  ;;  %v5741_v63 = vld [vmem:[#allocation9 + $0x750] sm:$0xf] }
 0x430   : > { %2980 = vmatpush.msra.mxu0 %v7240_v0  ;;  %2925 = vmatpush.bf16.msrb.mxu2 %v7456_v2  ;;  %v5572_v2 = vld [vmem:[#allocation9 + $0x608] sm:$0xf0]  ;;  %v7492_v50 = vor.u32 %v6284_v10, %v5749_v51  ;;  %v5725_v10 = vld [vmem:[#allocation9 + $0x730] sm:$0xf] }
 0x431   : > { %5566 = vmatmul.msk.f32.vlgmr.msrb.gmra.mxu1 %vm513_vm0, %v5565_v23  ;;  %8614 = vst [vmem:[#allocation212_spill] sm:$0xff] %v7473_v61  ;;  %v7482_v17 = vor.u32 %v6239_v24, %v5572_v2  ;;  %v6282_v2 = vld [vmem:[#allocation9 + $0x754] sm:$0xf0]  ;;  %v5733_v24 = vld [vmem:[#allocation9 + $0x740] sm:$0xf] }
 0x432   : > { %2916 = vmatpush.bf16.msra.mxu1 %v7462_v44  ;;  %v6286_v44 = vld [vmem:[#allocation9 + $0x774] sm:$0xf0]  ;;  %8616 = vst [vmem:[#allocation214_spill] sm:$0xff] %v7479_v56 }
 0x433   : > { %8617 = vst [vmem:[#allocation215_spill] sm:$0xff] %v7482_v17  ;;  %v7484_v55 = vor.u32 %v6286_v44, %v5757_v22  ;;  %v7496_v22 = vor.u32 %v6282_v2, %v5741_v63  ;;  %v5652_v44 = vld [vmem:[#allocation9 + $0x6a8] sm:$0xf0]  ;;  %v6255_v2 = vld [vmem:[#allocation9 + $0x684] sm:$0xf] }
 0x434   : > { %2926 = vmatpush.bf16.msrb.mxu2 %v7466_v15  ;;  %8620 = vst [vmem:[#allocation218_spill] sm:$0xff] %v7492_v50  ;;  %v5880_v15 = vld [vmem:[#allocation9 + $0x860] sm:$0xf] }
 0x435   : > { %8618 = vst [vmem:[#allocation216_spill] sm:$0xff] %v7484_v55 }
 0x436   : > { %2917 = vmatpush.bf16.msra.mxu1 %v7470_v26  ;;  %v7487_v26 = vor.u32 %v6261_v13, %v5660_v53  ;;  %8621 = vst [vmem:[#allocation219_spill] sm:$0xff] %v7496_v22  ;;  %v6259_v53 = vld [vmem:[#allocation9 + $0x6a4] sm:$0xf] }
 0x437   : > { %v7499_v13 = vor.u32 %v6259_v53, %v5652_v44  ;;  %v5636_v53 = vld [vmem:[#allocation9 + $0x688] sm:$0xf0]  ;;  %v5717_v44 = vld [vmem:[#allocation9 + $0x720] sm:$0xf] }
 0x438   : > { %2927 = vmatpush.bf16.msrb.mxu2 %v7473_v61  ;;  %8619 = vst [vmem:[#allocation217_spill] sm:$0xff] %v7487_v26  ;;  %v6317_v61 = vld [vmem:[#allocation9 + $0x874] sm:$0xf] }
 0x439   : > { %8622 = vst [vmem:[#allocation220_spill] sm:$0xff] %v7499_v13 }
 0x43a   : > { %2918 = vmatpush.bf16.msra.mxu1 %v7476_v45 }
 0x43c   : > { %2928 = vmatpush.bf16.msrb.mxu2 %v7479_v56 }
 0x43e   : > { %2919 = vmatpush.bf16.msra.mxu1 %v7482_v17  ;;  %v6257_v17 = vld [vmem:[#allocation9 + $0x694] sm:$0xf] }
 0x43f   : > { %5567 = vmatmul.msk.f32.vlgmr.msra.gmra.mxu2 %vm513_vm0, %v5565_v23  ;;  %v6280_v23 = vld [vmem:[#allocation9 + $0x744] sm:$0xf0] }
 0x440   : > { %2929 = vmatpush.bf16.msrb.mxu2 %v7487_v26  ;;  %v7501_v51 = vor.u32 %v6280_v23, %v5733_v24  ;;  %v6278_v26 = vld [vmem:[#allocation9 + $0x734] sm:$0xf0]  ;;  %v6276_v24 = vld [vmem:[#allocation9 + $0x724] sm:$0xf0]  ;;  %v5821_v23 = vld [vmem:[#allocation9 + $0x7f0] sm:$0xf] }
 0x441   : > { %v7507_v63 = vor.u32 %v6278_v26, %v5725_v10  ;;  %v7513_v56 = vor.u32 %v6276_v24, %v5717_v44  ;;  %v5709_v26 = vld [vmem:[#allocation9 + $0x710] sm:$0xf]  ;;  %v5813_v10 = vld [vmem:[#allocation9 + $0x7e0] sm:$0xf]  ;;  %v6272_v44 = vld [vmem:[#allocation9 + $0x704] sm:$0xf0] }
 0x442   : > { %3180 = vmatpush.bf16.msrb.mxu1 %v7484_v55  ;;  %v5644_v55 = vld [vmem:[#allocation9 + $0x698] sm:$0xf0]  ;;  %8623 = vst [vmem:[#allocation221_spill] sm:$0xff] %v7501_v51  ;;  %v5805_v24 = vld [vmem:[#allocation9 + $0x7d0] sm:$0xf] }
 0x443   : > { %v7504_v45 = vor.u32 %v6257_v17, %v5644_v55  ;;  %8625 = vst [vmem:[#allocation223_spill] sm:$0xff] %v7507_v63  ;;  %v6274_v55 = vld [vmem:[#allocation9 + $0x714] sm:$0xf0] }
 0x444   : > { %2930 = vmatpush.bf16.msrb.mxu2 %v7499_v13  ;;  %8627 = vst [vmem:[#allocation225_spill] sm:$0xff] %v7513_v56  ;;  %v5727_v13 = vld [vmem:[#allocation9 + $0x738] sm:$0xf0] }
 0x445   : > { %8624 = vst [vmem:[#allocation222_spill] sm:$0xff] %v7504_v45 }
 0x446   : > { %3181 = vmatpush.bf16.msrb.mxu1 %v7492_v50  ;;  %v6302_v50 = vld [vmem:[#allocation9 + $0x7f4] sm:$0xf0] }
 0x447   : > { %v7515_v17 = vor.u32 %v6302_v50, %v5821_v23  ;;  %v5701_v50 = vld [vmem:[#allocation9 + $0x700] sm:$0xf] }
 0x448   : > { %2931 = vmatpush.bf16.msrb.mxu2 %v7504_v45  ;;  %v7526_v23 = vor.u32 %v6272_v44, %v5701_v50  ;;  %v6292_v50 = vld [vmem:[#allocation9 + $0x7a4] sm:$0xf0]  ;;  %v5773_v44 = vld [vmem:[#allocation9 + $0x790] sm:$0xf]  ;;  %v6283_v45 = vld [vmem:[#allocation9 + $0x764] sm:$0xf] }
 0x449   : > { %8628 = vst [vmem:[#allocation226_spill] sm:$0xff] %v7515_v17 }
 0x44a   : > { %3182 = vmatpush.bf16.msrb.mxu1 %v7496_v22  ;;  %v7511_v22 = vor.u32 %v6255_v2, %v5636_v53  ;;  %v6300_v2 = vld [vmem:[#allocation9 + $0x7e4] sm:$0xf0]  ;;  %8631 = vst [vmem:[#allocation229_spill] sm:$0xff] %v7526_v23 }
 0x44b   : > { %v7522_v53 = vor.u32 %v6300_v2, %v5813_v10  ;;  %v5789_v2 = vld [vmem:[#allocation9 + $0x7b0] sm:$0xf] }
 0x44c   : > { %8626 = vst [vmem:[#allocation224_spill] sm:$0xff] %v7511_v22  ;;  %2932 = vmatpush.bf16.msrb.mxu2 %v7511_v22 }
 0x44d   : > { %8630 = vst [vmem:[#allocation228_spill] sm:$0xff] %v7522_v53 }
 0x44e   : > { %3183 = vmatpush.bf16.msrb.mxu1 %v7501_v51 }
 0x450   : > { %3193 = vmatpush.bf16.msra.mxu2 %v7515_v17  ;;  %v5781_v17 = vld [vmem:[#allocation9 + $0x7a0] sm:$0xf] }
 0x452   : > { %3184 = vmatpush.bf16.msrb.mxu1 %v7507_v63  ;;  %v7520_v63 = vor.u32 %v6274_v55, %v5709_v26  ;;  %v5797_v26 = vld [vmem:[#allocation9 + $0x7c0] sm:$0xf]  ;;  %v6296_v55 = vld [vmem:[#allocation9 + $0x7c4] sm:$0xf0] }
 0x453   : > { %v7532_v10 = vor.u32 %v6296_v55, %v5797_v26  ;;  %v5765_v55 = vld [vmem:[#allocation9 + $0x780] sm:$0xf] }
 0x454   : > { %8629 = vst [vmem:[#allocation227_spill] sm:$0xff] %v7520_v63  ;;  %3194 = vmatpush.bf16.msra.mxu2 %v7522_v53 }
 0x455   : > { %8633 = vst [vmem:[#allocation231_spill] sm:$0xff] %v7532_v10 }
 0x456   : > { %3185 = vmatpush.bf16.msrb.mxu1 %v7513_v56  ;;  %v6298_v56 = vld [vmem:[#allocation9 + $0x7d4] sm:$0xf0] }
 0x457   : > { %v7528_v51 = vor.u32 %v6298_v56, %v5805_v24  ;;  %v7538_v56 = vor.u32 %v6292_v50, %v5781_v17  ;;  %v6290_v24 = vld [vmem:[#allocation9 + $0x794] sm:$0xf0] }
 0x458   : > { %v7543_v26 = vor.u32 %v6290_v24, %v5773_v44 }
 0x459   : > { %8632 = vst [vmem:[#allocation230_spill] sm:$0xff] %v7528_v51  ;;  %3195 = vmatpush.bf16.msra.mxu2 %v7528_v51 }
 0x45a   : > { %3186 = vmatpush.bf16.msrb.mxu1 %v7520_v63  ;;  %v6294_v63 = vld [vmem:[#allocation9 + $0x7b4] sm:$0xf0]  ;;  %8635 = vst [vmem:[#allocation233_spill] sm:$0xff] %v7538_v56 }
 0x45b   : > { %v7535_v53 = vor.u32 %v6294_v63, %v5789_v2  ;;  %8636 = vst [vmem:[#allocation234_spill] sm:$0xff] %v7543_v26 }
 0x45d   : > { %3196 = vmatpush.bf16.msra.mxu2 %v7532_v10  ;;  %8634 = vst [vmem:[#allocation232_spill] sm:$0xff] %v7535_v53  ;;  %v6288_v10 = vld [vmem:[#allocation9 + $0x784] sm:$0xf0] }
 0x45e   : > { %3187 = vmatpush.bf16.msrb.mxu1 %v7526_v23  ;;  %v7548_v2 = vor.u32 %v6288_v10, %v5765_v55 }
 0x460   : > { %8637 = vst [vmem:[#allocation235_spill] sm:$0xff] %v7548_v2 }
 0x461   : > { %3197 = vmatpush.bf16.msra.mxu2 %v7535_v53 }
 0x465   : > { %3198 = vmatpush.bf16.msra.mxu2 %v7538_v56  ;;  %v5759_v56 = vld [vmem:[#allocation9 + $0x778] sm:$0xf0] }
 0x469   : > { %3199 = vmatpush.bf16.msra.mxu2 %v7543_v26  ;;  %v6285_v26 = vld [vmem:[#allocation9 + $0x774] sm:$0xf] }
 0x46a   : > { %v7556_v10 = vor.u32 %v6285_v26, %v5759_v56  ;;  %v5743_v26 = vld [vmem:[#allocation9 + $0x758] sm:$0xf0] }
 0x46c   : > { %8638 = vst [vmem:[#allocation236_spill] sm:$0xff] %v7556_v10 }
 0x46d   : > { %3200 = vmatpush.bf16.msra.mxu2 %v7548_v2 }
 0x49e   : > { %v7540_v23 = vpop.f32.mrf.mxu1 }
 0x4a4   : > { %v7546_v63 = vpop.f32.mrf.mxu3 }
 0x4a6   : > { %v2603_v51 = vpop.f32.mrf.mxu1 }
 0x4a7   : > { %v5751_v51 = vld [vmem:[#allocation9 + $0x768] sm:$0xf0] }
 0x4a8   : > { %v7559_v55 = vor.u32 %v6283_v45, %v5751_v51  ;;  %v6281_v45 = vld [vmem:[#allocation9 + $0x754] sm:$0xf]  ;;  %v6299_v51 = vld [vmem:[#allocation9 + $0x7e4] sm:$0xf] }
 0x4aa   : > { %8639 = vst [vmem:[#allocation237_spill] sm:$0xff] %v7559_v55 }
 0x4ac   : > { %v7551_v17 = vpop.f32.mrf.mxu0  ;;  %v2629_v50 = vpop.f32.mrf.mxu3 }
 0x4ae   : > { %v2668_v53 = vpop.f32.mrf.mxu1 }
 0x4af   : > { %v2691_v22 = vpack.c.bf16 %v2668_v53, %v2668_v53  ;;  %v5823_v53 = vld [vmem:[#allocation9 + $0x7f8] sm:$0xf0] }
 0x4b1   : > { %2920 = vmatmul.bf16.vlgmr.msra.gmra.mxu1 %v2691_v22  ;;  %2894 = vmatmul.bf16.vlgmr.msrb.gmra.mxu3 %v2691_v22  ;;  %v6301_v22 = vld [vmem:[#allocation9 + $0x7f4] sm:$0xf] }
 0x4b2   : > { %3254 = vmatpush.msra.mxu1 %v7218_v47  ;;  %v7554_v44 = vpop.f32.mrf.mxu2  ;;  %3206 = vmatpush.bf16.msrb.mxu3 %v7556_v10  ;;  %v5696_v47 = vld [vmem:[%s8139_s6 + $0x1c] sm:$0xf]  ;;  %v7566_v2 = vor.u32 %v6301_v22, %v5823_v53  ;;  %v6279_v22 = vld [vmem:[#allocation9 + $0x744] sm:$0xf]  ;;  %v5735_v53 = vld [vmem:[#allocation9 + $0x748] sm:$0xf0] }
 0x4b4   : > { %v2642_v24 = vpop.f32.mrf.mxu0  ;;  %8640 = vst [vmem:[#allocation238_spill] sm:$0xff] %v7566_v2 }
 0x4b6   : > { %3207 = vmatpush.bf16.msrb.mxu3 %v7559_v55  ;;  %v5815_v55 = vld [vmem:[#allocation9 + $0x7e8] sm:$0xf0] }
 0x4b7   : > { %v7573_v10 = vor.u32 %v6299_v51, %v5815_v55  ;;  %v6295_v55 = vld [vmem:[#allocation9 + $0x7c4] sm:$0xf] }
 0x4b9   : > { %8642 = vst [vmem:[#allocation240_spill] sm:$0xff] %v7573_v10 }
 0x4ba   : > { %v2616_v50 = vpop.f32.mrf.mxu2 }
 0x4bb   : > { %v7571_v50 = vor.u32 %v6281_v45, %v5743_v26  ;;  %v5799_v26 = vld [vmem:[#allocation9 + $0x7c8] sm:$0xf0] }
 0x4bc   : > { %v7586_v51 = vor.u32 %v6295_v55, %v5799_v26  ;;  %v6291_v55 = vld [vmem:[#allocation9 + $0x7a4] sm:$0xf]  ;;  %v5783_v26 = vld [vmem:[#allocation9 + $0x7a8] sm:$0xf0] }
 0x4bd   : > { %8641 = vst [vmem:[#allocation239_spill] sm:$0xff] %v7571_v50  ;;  %3208 = vmatpush.bf16.msrb.mxu3 %v7571_v50 }
 0x4be   : > { %8646 = vst [vmem:[#allocation244_spill] sm:$0xff] %v7586_v51 }
 0x4c1   : > { %5697 = vmatmul.msk.f32.vlgmr.msra.gmra.mxu3 %vm513_vm0, %v5696_v47 }
 0x4c2   : > { %v2688_v24 = vpop.f32.mrf.mxu2 }
 0x4c3   : > { %v2692_v56 = vpack.c.bf16 %v2688_v24, %v2688_v24  ;;  %v6297_v24 = vld [vmem:[#allocation9 + $0x7d4] sm:$0xf] }
 0x4c5   : > { %2907 = vmatmul.bf16.vlgmr.msrb.gmra.mxu0 %v2692_v56  ;;  %2933 = vmatmul.bf16.vlgmr.msrb.gmra.mxu2 %v2692_v56  ;;  %v5807_v56 = vld [vmem:[#allocation9 + $0x7d8] sm:$0xf0] }
 0x4c6   : > { %3274 = vmatpush.msrb.mxu2 %v7240_v0  ;;  %3219 = vmatpush.bf16.msrb.mxu0 %v7566_v2  ;;  %v7577_v0 = vor.u32 %v6279_v22, %v5735_v53  ;;  %v7579_v2 = vor.u32 %v6297_v24, %v5807_v56  ;;  %v5719_v22 = vld [vmem:[#allocation9 + $0x728] sm:$0xf0]  ;;  %v6293_v24 = vld [vmem:[#allocation9 + $0x7b4] sm:$0xf]  ;;  %v5791_v56 = vld [vmem:[#allocation9 + $0x7b8] sm:$0xf0] }
 0x4c8   : > { %8643 = vst [vmem:[#allocation241_spill] sm:$0xff] %v7577_v0  ;;  %3209 = vmatpush.bf16.msrb.mxu3 %v7577_v0  ;;  %v7598_v0 = vor.u32 %v6291_v55, %v5783_v26 }
 0x4c9   : > { %8644 = vst [vmem:[#allocation242_spill] sm:$0xff] %v7579_v2 }
 0x4ca   : > { %3220 = vmatpush.bf16.msrb.mxu0 %v7573_v10  ;;  %v6275_v10 = vld [vmem:[#allocation9 + $0x724] sm:$0xf]  ;;  %8650 = vst [vmem:[#allocation248_spill] sm:$0xff] %v7598_v0 }
 0x4cb   : > { %v7589_v53 = vor.u32 %v6275_v10, %v5719_v22  ;;  %v6271_v10 = vld [vmem:[#allocation9 + $0x704] sm:$0xf]  ;;  %v5703_v22 = vld [vmem:[#allocation9 + $0x708] sm:$0xf0] }
 0x4cd   : > { %8647 = vst [vmem:[#allocation245_spill] sm:$0xff] %v7589_v53 }
 0x4ce   : > { %3221 = vmatpush.bf16.msrb.mxu0 %v7579_v2  ;;  %v5711_v2 = vld [vmem:[#allocation9 + $0x718] sm:$0xf0] }
 0x4d2   : > { %3222 = vmatpush.bf16.msrb.mxu0 %v7586_v51  ;;  %v6289_v51 = vld [vmem:[#allocation9 + $0x794] sm:$0xf] }
 0x4d5   : > { %5698 = vmatmul.msk.f32.vlgmr.msra.gmra.mxu0 %vm513_vm0, %v5696_v47  ;;  %v6277_v47 = vld [vmem:[#allocation9 + $0x734] sm:$0xf] }
 0x4d6   : > { %v7582_v45 = vor.u32 %v6277_v47, %v5727_v13  ;;  %v7592_v13 = vor.u32 %v6293_v24, %v5791_v56  ;;  %v6273_v47 = vld [vmem:[#allocation9 + $0x714] sm:$0xf]  ;;  %v5775_v24 = vld [vmem:[#allocation9 + $0x798] sm:$0xf0] }
 0x4d7   : > { %v7603_v56 = vor.u32 %v6289_v51, %v5775_v24 }
 0x4d8   : > { %8645 = vst [vmem:[#allocation243_spill] sm:$0xff] %v7582_v45  ;;  %3210 = vmatpush.bf16.msrb.mxu3 %v7582_v45  ;;  %3223 = vmatpush.bf16.msrb.mxu0 %v7592_v13  ;;  %v7595_v45 = vor.u32 %v6273_v47, %v5711_v2  ;;  %v6287_v2 = vld [vmem:[#allocation9 + $0x784] sm:$0xf]  ;;  %v5767_v47 = vld [vmem:[#allocation9 + $0x788] sm:$0xf0] }
 0x4d9   : > { %8648 = vst [vmem:[#allocation246_spill] sm:$0xff] %v7592_v13  ;;  %v7609_v55 = vor.u32 %v6287_v2, %v5767_v47  ;;  %v6318_v13 = vld [vmem:[#allocation9 + $0x874] sm:$0xf0]  ;;  %v6315_v47 = vld [vmem:[#allocation9 + $0x864] sm:$0xf] }
 0x4da   : > { %8649 = vst [vmem:[#allocation247_spill] sm:$0xff] %v7595_v45 }
 0x4db   : > { %8652 = vst [vmem:[#allocation250_spill] sm:$0xff] %v7603_v56 }
 0x4dc   : > { %3211 = vmatpush.bf16.msrb.mxu3 %v7589_v53  ;;  %3224 = vmatpush.bf16.msrb.mxu0 %v7598_v0  ;;  %v7601_v53 = vor.u32 %v6271_v10, %v5703_v22  ;;  %8653 = vst [vmem:[#allocation251_spill] sm:$0xff] %v7609_v55 }
 0x4de   : > { %8651 = vst [vmem:[#allocation249_spill] sm:$0xff] %v7601_v53 }
 0x4e0   : > { %3212 = vmatpush.bf16.msrb.mxu3 %v7595_v45  ;;  %3225 = vmatpush.bf16.msrb.mxu0 %v7603_v56  ;;  %v5888_v45 = vld [vmem:[#allocation9 + $0x870] sm:$0xf]  ;;  %v5890_v56 = vld [vmem:[#allocation9 + $0x878] sm:$0xf0] }
 0x4e1   : > { %v7618_v2 = vor.u32 %v6317_v61, %v5890_v56  ;;  %v5874_v61 = vld [vmem:[#allocation9 + $0x858] sm:$0xf0]  ;;  %v7628_v56 = vor.u32 %v6334_v28, %v5952_v41 }
 0x4e3   : > { %8654 = vst [vmem:[#allocation252_spill] sm:$0xff] %v7618_v2 }
 0x4e4   : > { %3213 = vmatpush.bf16.msrb.mxu3 %v7601_v53  ;;  %3226 = vmatpush.bf16.msrb.mxu0 %v7609_v55  ;;  %v7616_v53 = vor.u32 %v6318_v13, %v5888_v45  ;;  %v5882_v55 = vld [vmem:[#allocation9 + $0x868] sm:$0xf0]  ;;  %v6314_v13 = vld [vmem:[#allocation9 + $0x854] sm:$0xf0]  ;;  %8657 = vst [vmem:[#allocation255_spill] sm:$0xff] %v7628_v56 }
 0x4e5   : > { %v7626_v45 = vor.u32 %v6315_v47, %v5882_v55  ;;  %v5954_v55 = vld [vmem:[#allocation9 + $0x8f8] sm:$0xf0] }
 0x4e7   : > { %8656 = vst [vmem:[#allocation254_spill] sm:$0xff] %v7626_v45 }
 0x4e8   : > { %3474 = vmatpush.bf16.msra.mxu3 %v7616_v53  ;;  %3487 = vmatpush.bf16.msra.mxu0 %v7628_v56  ;;  %v6329_v56 = vld [vmem:[#allocation9 + $0x8d4] sm:$0xf] }
 0x52e   : > { %v7605_v50 = vpop.f32.mrf.mxu1 }
 0x534   : > { %v7611_v26 = vpop.f32.mrf.mxu3 }
 0x536   : > { %v2923_v0 = vpop.f32.mrf.mxu1 }
 0x53c   : > { %v2897_v10 = vpop.f32.mrf.mxu3 }
 0x53d   : > { %v7623_v10 = vor.u32 %v6316_v36, %v5880_v15  ;;  %v6333_v15 = vld [vmem:[#allocation9 + $0x8f4] sm:$0xf] }
 0x53e   : > { %v7639_v28 = vor.u32 %v6333_v15, %v5954_v55  ;;  %v5866_v15 = vld [vmem:[#allocation9 + $0x848] sm:$0xf0]  ;;  %v5944_v55 = vld [vmem:[#allocation9 + $0x8e0] sm:$0xf] }
 0x53f   : > { %8655 = vst [vmem:[#allocation253_spill] sm:$0xff] %v7623_v10  ;;  %3475 = vmatpush.bf16.msra.mxu3 %v7623_v10 }
 0x540   : > { %8660 = vst [vmem:[#allocation258_spill] sm:$0xff] %v7639_v28 }
 0x542   : > { %v7614_v22 = vpop.f32.mrf.mxu0 }
 0x544   : > { %v2962_v51 = vpop.f32.mrf.mxu3 }
 0x545   : > { %v2985_v24 = vpack.c.bf16 %v2962_v51, %v2962_v51  ;;  %v5872_v51 = vld [vmem:[#allocation9 + $0x850] sm:$0xf] }
 0x546   : > { %v7631_v16 = vor.u32 %v6314_v13, %v5872_v51  ;;  %v5827_v51 = vld [vmem:[%s8139_s6 + $0x20] sm:$0xf]  ;;  %v5864_v13 = vld [vmem:[#allocation9 + $0x840] sm:$0xf] }
 0x547   : > { %3214 = vmatmul.bf16.vlgmr.msrb.gmra.mxu3 %v2985_v24  ;;  %3188 = vmatmul.bf16.vlgmr.msrb.gmra.mxu1 %v2985_v24  ;;  %v6313_v24 = vld [vmem:[#allocation9 + $0x854] sm:$0xf] }
 0x548   : > { %v7620_v0 = vpop.f32.mrf.mxu2  ;;  %3500 = vmatpush.bf16.msrb.mxu1 %v7618_v2  ;;  %8658 = vst [vmem:[#allocation256_spill] sm:$0xff] %v7631_v16  ;;  %v7635_v36 = vor.u32 %v6313_v24, %v5874_v61  ;;  %3476 = vmatpush.bf16.msra.mxu3 %v7631_v16  ;;  %v6312_v24 = vld [vmem:[#allocation9 + $0x844] sm:$0xf0]  ;;  %v6311_v61 = vld [vmem:[#allocation9 + $0x844] sm:$0xf] }
 0x549   : > { %v6331_v2 = vld [vmem:[#allocation9 + $0x8e4] sm:$0xf] }
 0x54a   : > { %v2910_v33 = vpop.f32.mrf.mxu0  ;;  %8659 = vst [vmem:[#allocation257_spill] sm:$0xff] %v7635_v36 }
 0x54c   : > { %3501 = vmatpush.bf16.msrb.mxu1 %v7626_v45 }
 0x550   : > { %v2936_v47 = vpop.f32.mrf.mxu2  ;;  %3502 = vmatpush.bf16.msrb.mxu1 %v7635_v36  ;;  %v7649_v36 = vor.u32 %v6311_v61, %v5866_v15  ;;  %v5858_v61 = vld [vmem:[#allocation9 + $0x838] sm:$0xf0] }
 0x551   : > { %v7647_v47 = vor.u32 %v6312_v24, %v5864_v13  ;;  %v6310_v13 = vld [vmem:[#allocation9 + $0x834] sm:$0xf0]  ;;  %v6309_v24 = vld [vmem:[#allocation9 + $0x834] sm:$0xf] }
 0x552   : > { %v2982_v33 = vpop.f32.mrf.mxu0  ;;  %8662 = vst [vmem:[#allocation260_spill] sm:$0xff] %v7649_v36  ;;  %v7661_v15 = vor.u32 %v6309_v24, %v5858_v61  ;;  %v5928_v61 = vld [vmem:[#allocation9 + $0x8c0] sm:$0xf] }
 0x553   : > { %v2986_v41 = vpack.c.bf16 %v2982_v33, %v2982_v33  ;;  %8661 = vst [vmem:[#allocation259_spill] sm:$0xff] %v7647_v47  ;;  %v6332_v33 = vld [vmem:[#allocation9 + $0x8e4] sm:$0xf0]  ;;  %3477 = vmatpush.bf16.msra.mxu3 %v7647_v47 }
 0x554   : > { %v7651_v45 = vor.u32 %v6332_v33, %v5944_v55  ;;  %3503 = vmatpush.bf16.msrb.mxu1 %v7649_v36  ;;  %8666 = vst [vmem:[#allocation264_spill] sm:$0xff] %v7661_v15  ;;  %v5936_v55 = vld [vmem:[#allocation9 + $0x8d0] sm:$0xf]  ;;  %v6330_v33 = vld [vmem:[#allocation9 + $0x8d4] sm:$0xf0] }
 0x555   : > { %3201 = vmatmul.bf16.vlgmr.msra.gmra.mxu2 %v2986_v41  ;;  %3227 = vmatmul.bf16.vlgmr.msrb.gmra.mxu0 %v2986_v41  ;;  %v5946_v41 = vld [vmem:[#allocation9 + $0x8e8] sm:$0xf0]  ;;  %v6308_v47 = vld [vmem:[#allocation9 + $0x824] sm:$0xf0] }
 0x556   : > { %3513 = vmatpush.bf16.msra.mxu2 %v7639_v28  ;;  %8663 = vst [vmem:[#allocation261_spill] sm:$0xff] %v7651_v45  ;;  %v7654_v28 = vor.u32 %v6331_v2, %v5946_v41  ;;  %3488 = vmatpush.bf16.msra.mxu0 %v7651_v45  ;;  %v7664_v2 = vor.u32 %v6330_v33, %v5936_v55  ;;  %v5938_v41 = vld [vmem:[#allocation9 + $0x8d8] sm:$0xf0]  ;;  %v6307_v45 = vld [vmem:[#allocation9 + $0x824] sm:$0xf] }
 0x557   : > { %5828 = vmatmul.msk.f32.vlgmr.msra.gmra.mxu1 %vm513_vm0, %v5827_v51  ;;  %v7667_v36 = vor.u32 %v6329_v56, %v5938_v41  ;;  %v6328_v55 = vld [vmem:[#allocation9 + $0x8c4] sm:$0xf0]  ;;  %v6327_v33 = vld [vmem:[#allocation9 + $0x8c4] sm:$0xf]  ;;  %v5930_v56 = vld [vmem:[#allocation9 + $0x8c8] sm:$0xf0] }
 0x558   : > { %8664 = vst [vmem:[#allocation262_spill] sm:$0xff] %v7654_v28  ;;  %3504 = vmatpush.bf16.msrb.mxu1 %v7661_v15  ;;  %v7676_v15 = vor.u32 %v6328_v55, %v5928_v61  ;;  %v7679_v41 = vor.u32 %v6327_v33, %v5930_v56  ;;  %v6326_v61 = vld [vmem:[#allocation9 + $0x8b4] sm:$0xf0]  ;;  %v6325_v55 = vld [vmem:[#allocation9 + $0x8b4] sm:$0xf] }
 0x559   : > { %8667 = vst [vmem:[#allocation265_spill] sm:$0xff] %v7664_v2  ;;  %v5922_v33 = vld [vmem:[#allocation9 + $0x8b8] sm:$0xf0]  ;;  %v5832_v56 = vld [vmem:[#allocation9 + $0x800] sm:$0xf] }
 0x55a   : > { %3514 = vmatpush.bf16.msra.mxu2 %v7654_v28  ;;  %8668 = vst [vmem:[#allocation266_spill] sm:$0xff] %v7667_v36  ;;  %v5848_v28 = vld [vmem:[#allocation9 + $0x820] sm:$0xf]  ;;  %3489 = vmatpush.bf16.msra.mxu0 %v7664_v2  ;;  %v6304_v2 = vld [vmem:[#allocation9 + $0x804] sm:$0xf0] }
 0x55b   : > { %8671 = vst [vmem:[#allocation269_spill] sm:$0xff] %v7676_v15 }
 0x55c   : > { %8672 = vst [vmem:[#allocation270_spill] sm:$0xff] %v7679_v41 }
 0x55e   : > { %3515 = vmatpush.bf16.msra.mxu2 %v7667_v36  ;;  %3490 = vmatpush.bf16.msra.mxu0 %v7676_v15  ;;  %v7691_v15 = vor.u32 %v6325_v55, %v5922_v33  ;;  %v5904_v55 = vld [vmem:[#allocation9 + $0x890] sm:$0xf]  ;;  %v6322_v33 = vld [vmem:[#allocation9 + $0x894] sm:$0xf0] }
 0x560   : > { %8676 = vst [vmem:[#allocation274_spill] sm:$0xff] %v7691_v15 }
 0x562   : > { %3516 = vmatpush.bf16.msra.mxu2 %v7679_v41  ;;  %v5834_v41 = vld [vmem:[#allocation9 + $0x808] sm:$0xf0] }
 0x565   : > { %5829 = vmatmul.msk.f32.vlgmr.msrb.gmra.mxu2 %vm513_vm0, %v5827_v51  ;;  %v5856_v51 = vld [vmem:[#allocation9 + $0x830] sm:$0xf] }
 0x566   : > { %v7659_v16 = vor.u32 %v6310_v13, %v5856_v51  ;;  %v7670_v51 = vor.u32 %v6308_v47, %v5848_v28  ;;  %v5850_v13 = vld [vmem:[#allocation9 + $0x828] sm:$0xf0]  ;;  %v6306_v28 = vld [vmem:[#allocation9 + $0x814] sm:$0xf0]  ;;  %v6305_v47 = vld [vmem:[#allocation9 + $0x814] sm:$0xf]  ;;  %3517 = vmatpush.bf16.msra.mxu2 %v7691_v15 }
 0x567   : > { %v7673_v24 = vor.u32 %v6307_v45, %v5850_v13  ;;  %v5842_v45 = vld [vmem:[#allocation9 + $0x818] sm:$0xf0] }
 0x568   : > { %8665 = vst [vmem:[#allocation263_spill] sm:$0xff] %v7659_v16  ;;  %3478 = vmatpush.bf16.msra.mxu3 %v7659_v16  ;;  %v5840_v16 = vld [vmem:[#allocation9 + $0x810] sm:$0xf]  ;;  %v7685_v13 = vor.u32 %v6305_v47, %v5842_v45  ;;  %v5912_v45 = vld [vmem:[#allocation9 + $0x8a0] sm:$0xf] }
 0x569   : > { %8669 = vst [vmem:[#allocation267_spill] sm:$0xff] %v7670_v51  ;;  %3505 = vmatpush.bf16.msrb.mxu1 %v7673_v24  ;;  %v7682_v36 = vor.u32 %v6306_v28, %v5840_v16  ;;  %v7693_v16 = vor.u32 %v6304_v2, %v5832_v56  ;;  %v6303_v28 = vld [vmem:[#allocation9 + $0x804] sm:$0xf]  ;;  %v6321_v56 = vld [vmem:[#allocation9 + $0x894] sm:$0xf] }
 0x56a   : > { %8670 = vst [vmem:[#allocation268_spill] sm:$0xff] %v7673_v24  ;;  %v7696_v47 = vor.u32 %v6303_v28, %v5834_v41  ;;  %v7706_v41 = vor.u32 %v6322_v33, %v5904_v55 }
 0x56b   : > { %8673 = vst [vmem:[#allocation271_spill] sm:$0xff] %v7682_v36 }
 0x56c   : > { %3479 = vmatpush.bf16.msra.mxu3 %v7670_v51  ;;  %8674 = vst [vmem:[#allocation272_spill] sm:$0xff] %v7685_v13  ;;  %v5920_v51 = vld [vmem:[#allocation9 + $0x8b0] sm:$0xf] }
 0x56d   : > { %v7688_v24 = vor.u32 %v6326_v61, %v5920_v51  ;;  %3506 = vmatpush.bf16.msrb.mxu1 %v7685_v13  ;;  %8677 = vst [vmem:[#allocation275_spill] sm:$0xff] %v7693_v16  ;;  %v6324_v51 = vld [vmem:[#allocation9 + $0x8a4] sm:$0xf0]  ;;  %v6323_v61 = vld [vmem:[#allocation9 + $0x8a4] sm:$0xf] }
 0x56e   : > { %8678 = vst [vmem:[#allocation276_spill] sm:$0xff] %v7696_v47  ;;  %v5914_v13 = vld [vmem:[#allocation9 + $0x8a8] sm:$0xf0] }
 0x56f   : > { %8675 = vst [vmem:[#allocation273_spill] sm:$0xff] %v7688_v24  ;;  %3491 = vmatpush.bf16.msra.mxu0 %v7688_v24  ;;  %v7703_v2 = vor.u32 %v6323_v61, %v5914_v13  ;;  %v5906_v24 = vld [vmem:[#allocation9 + $0x898] sm:$0xf0]  ;;  %v5898_v61 = vld [vmem:[#allocation9 + $0x888] sm:$0xf0] }
 0x570   : > { %3480 = vmatpush.bf16.msra.mxu3 %v7682_v36  ;;  %v7700_v36 = vor.u32 %v6324_v51, %v5912_v45  ;;  %8681 = vst [vmem:[#allocation279_spill] sm:$0xff] %v7706_v41  ;;  %v7709_v28 = vor.u32 %v6321_v56, %v5906_v24  ;;  %v5896_v45 = vld [vmem:[#allocation9 + $0x880] sm:$0xf]  ;;  %v6320_v51 = vld [vmem:[#allocation9 + $0x884] sm:$0xf0] }
 0x571   : > { %3507 = vmatpush.bf16.msrb.mxu1 %v7696_v47  ;;  %8680 = vst [vmem:[#allocation278_spill] sm:$0xff] %v7703_v2  ;;  %3518 = vmatpush.bf16.msra.mxu2 %v7703_v2  ;;  %v6319_v47 = vld [vmem:[#allocation9 + $0x884] sm:$0xf]  ;;  %v7713_v13 = vor.u32 %v6320_v51, %v5896_v45 }
 0x572   : > { %8679 = vst [vmem:[#allocation277_spill] sm:$0xff] %v7700_v36 }
 0x573   : > { %3492 = vmatpush.bf16.msra.mxu0 %v7700_v36  ;;  %8682 = vst [vmem:[#allocation280_spill] sm:$0xff] %v7709_v28 }
 0x574   : > { %3481 = vmatpush.bf16.msra.mxu3 %v7693_v16  ;;  %8683 = vst [vmem:[#allocation281_spill] sm:$0xff] %v7713_v13  ;;  %v7715_v16 = vor.u32 %v6319_v47, %v5898_v61  ;;  %v1229_v61 = vadd.f32 %v7095_v60, %v7070_v6  ;;  %v1759_v6 = vadd.f32 %v7221_v42, %v7203_v39 }
 0x575   : > { %3519 = vmatpush.bf16.msra.mxu2 %v7709_v28  ;;  %v2615_v60 = vadd.f32 %v7554_v44, %v7540_v23 }
 0x577   : > { %3493 = vmatpush.bf16.msra.mxu0 %v7706_v41 }
 0x579   : > { %3520 = vmatpush.bf16.msra.mxu2 %v7715_v16 }
 0x57b   : > { %3494 = vmatpush.bf16.msra.mxu0 %v7713_v13 }
 0x5c4   : > { %v3189_v15 = vpop.f32.mrf.mxu1 }
 0x5ca   : > { %v3215_v36 = vpop.f32.mrf.mxu3 }
 0x5cc   : > { %v3191_v24 = vpop.f32.mrf.mxu1 }
 0x5cd   : > { %v1428_v24 = vadd.f32 %v7090_v35, %v1229_v61 }
 0x5d2   : > { %v3228_v55 = vpop.f32.mrf.mxu0  ;;  %v3217_v33 = vpop.f32.mrf.mxu3 }
 0x5d3   : > { %v1733_v33 = vadd.f32 %v7214_v31, %v7209_v30  ;;  %v3229_v61 = vadd.f32 %v3228_v55, %v3215_v36 }
 0x5d4   : > { %v3256_v56 = vpop.f32.mrf.mxu1 }
 0x5d5   : > { %v3279_v2 = vpack.c.bf16 %v3256_v56, %v3256_v56 }
 0x5d7   : > { %3482 = vmatmul.bf16.vlgmr.msra.gmra.mxu3 %v3279_v2  ;;  %3508 = vmatmul.bf16.vlgmr.msrb.gmra.mxu1 %v3279_v2  ;;  %v1441_v2 = vadd.f32 %v7106_v54, %v1428_v24  ;;  %v2053_v54 = vadd.f32 %v7329_v11, %v7324_v18  ;;  %v2935_v11 = vadd.f32 %v7620_v0, %v7605_v50  ;;  %v5963_v50 = vld [vmem:[%s8141_s8 + $0x4] sm:$0xf]  ;;  %v3544_v0 = vld [vmem:[%s8141_s8] sm:$0xf] }
 0x5d8   : > { %v3202_v28 = vpop.f32.mrf.mxu2 }
 0x5d9   : > { %v3203_v39 = vadd.f32 %v3202_v28, %v3189_v15 }
 0x5da   : > { %v3230_v41 = vpop.f32.mrf.mxu0 }
 0x5db   : > { %v1762_v41 = vadd.f32 %v1733_v33, %v1441_v2  ;;  %v3538_v33 = vstv %s7742_s27 }
 0x5e0   : > { %v3204_v10 = vpop.f32.mrf.mxu2 }
 0x5e1   : > { %v2027_v10 = vadd.f32 %v7332_v29, %v7318_v1  ;;  %v2909_v29 = vadd.f32 %v7614_v22, %v7611_v26 }
 0x5e3   : > { %v2056_v35 = vadd.f32 %v2027_v10, %v1762_v41 }
 0x5e8   : > { %v3276_v45 = vpop.f32.mrf.mxu2 }
 0x5e9   : > { %v3280_v51 = vpack.c.bf16 %v3276_v45, %v3276_v45  ;;  %v2321_v45 = vadd.f32 %v7440_v32, %v7435_v43 }
 0x5eb   : > { %3495 = vmatmul.bf16.vlgmr.msra.gmra.mxu0 %v3280_v51  ;;  %3521 = vmatmul.bf16.vlgmr.msra.gmra.mxu2 %v3280_v51  ;;  %v1454_v51 = vadd.f32 %v7098_v8, %v7088_v12  ;;  %v2350_v1 = vadd.f32 %v2321_v45, %v2056_v35  ;;  %v2347_v12 = vadd.f32 %v7445_v4, %v7429_v7  ;;  %v3532_v4 = vpop.permute.xlu0 %3531  ;;  %v8704_v45 = vld [vmem:[#allocation40_spill] sm:$0xff]  ;;  %v8707_v35 = vld [vmem:[#allocation34_spill] sm:$0xff] }
 0x5ed   : > { %v1467_v30 = vadd.f32 %v7103_v52, %v1454_v51  ;;  %v2644_v8 = vadd.f32 %v2615_v60, %v2350_v1  ;;  %v2641_v52 = vadd.f32 %v7551_v17, %v7546_v63  ;;  %v8705_v51 = vld [vmem:[#allocation41_spill] sm:$0xff]  ;;  %v8708_v60 = vld [vmem:[#allocation44_spill] sm:$0xff] }
 0x5ee   : > { %v8712_v1 = vld [vmem:[#allocation48_spill] sm:$0xff] }
 0x5ef   : > { %v1763_v43 = vadd.f32 %v1759_v6, %v1467_v30  ;;  %v2938_v32 = vadd.f32 %v2909_v29, %v2644_v8  ;;  %v8706_v6 = vld [vmem:[#allocation32_spill] sm:$0xff]  ;;  %v8709_v30 = vld [vmem:[#allocation45_spill] sm:$0xff] }
 0x5f0   : > { %v8713_v29 = vld [vmem:[#allocation49_spill] sm:$0xff]  ;;  %v8716_v8 = vld [vmem:[#allocation52_spill] sm:$0xff] }
 0x5f1   : > { %v2057_v42 = vadd.f32 %v2053_v54, %v1763_v43  ;;  %v3232_v44 = vadd.f32 %v3203_v39, %v2938_v32  ;;  %v8710_v54 = vld [vmem:[#allocation35_spill] sm:$0xff]  ;;  %v8714_v43 = vld [vmem:[#allocation42_spill] sm:$0xff]  ;;  %v8717_v39 = vld [vmem:[#allocation53_spill] sm:$0xff] }
 0x5f2   : > { %v8720_v32 = vld [vmem:[#allocation54_spill] sm:$0xff] }
 0x5f3   : > { %v2351_v18 = vadd.f32 %v2347_v12, %v2057_v42  ;;  %v8715_v12 = vld [vmem:[#allocation43_spill] sm:$0xff]  ;;  %v8718_v42 = vld [vmem:[#allocation46_spill] sm:$0xff] }
 0x5f5   : > { %v2645_v22 = vadd.f32 %v2641_v52, %v2351_v18  ;;  %v8719_v52 = vld [vmem:[#allocation47_spill] sm:$0xff] }
 0x5f6   : > { %v8721_v18 = vld [vmem:[#allocation55_spill] sm:$0xff] }
 0x5f7   : > { %v2939_v24 = vadd.f32 %v2935_v11, %v2645_v22  ;;  %v8722_v11 = vld [vmem:[#allocation50_spill] sm:$0xff] }
 0x5f8   : > { %v8726_v22 = vld [vmem:[#allocation58_spill] sm:$0xff] }
 0x5f9   : > { %v3233_v15 = vadd.f32 %v3229_v61, %v2939_v24  ;;  %v8727_v61 = vld [vmem:[#allocation59_spill] sm:$0xff]  ;;  %v8728_v24 = vld [vmem:[#allocation60_spill] sm:$0xff] }
 0x654   : > { %v3509_v47 = vpop.f32.mrf.mxu1 }
 0x65a   : > { %v3483_v13 = vpop.f32.mrf.mxu3 }
 0x65c   : > { %v3511_v56 = vpop.f32.mrf.mxu1 }
 0x662   : > { %v3485_v31 = vpop.f32.mrf.mxu3 }
 0x663   : > { %v8711_v31 = vld [vmem:[#allocation37_spill] sm:$0xff] }
 0x668   : > { %v3496_v23 = vpop.f32.mrf.mxu0 }
 0x669   : > { %v3497_v26 = vadd.f32 %v3496_v23, %v3483_v13  ;;  %v8723_v23 = vld [vmem:[#allocation51_spill] sm:$0xff] }
 0x66b   : > { %v3526_v7 = vadd.f32 %v3497_v26, %v3232_v44  ;;  %v8724_v44 = vld [vmem:[#allocation56_spill] sm:$0xff]  ;;  %v8725_v26 = vld [vmem:[#allocation57_spill] sm:$0xff] }
 0x66d   : > { %v3534_v56 = vadd.f32 %v3532_v4, %v3526_v7 }
 0x66e   : > { %v3522_v28 = vpop.f32.mrf.mxu2 }
 0x66f   : > { %vm3536_vm2 = vcmp.gt.f32.partialorder %v3534_v56, 0.0  ;;  %v3523_v2 = vadd.f32 %v3522_v28, %v3509_v47  ;;  %v3539_v63 = vmul.f32 %v3538_v33, %v3534_v56 }
 0x670   : > { %v3498_v17 = vpop.f32.mrf.mxu0 }
 0x671   : > { %v3527_v36 = vadd.f32 %v3523_v2, %v3233_v15  ;;  %v7755_v13 = vsel %vm3536_vm2, %v3534_v56, %v3539_v63  ;;  %v8730_v56 = vld [vmem:[#allocation62_spill] sm:$0xff]  ;;  %v8731_v17 = vld [vmem:[#allocation63_spill] sm:$0xff] }
 0x672   : > { %5959 = vmatpush.msk.msrb.mxu3 %vm3549_vm3, %v7755_v13  ;;  %5964 = vmatpush.msk.msra.mxu1 %vm3549_vm3, %v7755_v13 }
 0x673   : > { %v3535_v55 = vadd.f32 %v3532_v4, %v3527_v36  ;;  %5965 = vmatmul.msk.f32.vlgmr.msra.gmra.mxu1 %vm3545_vm4, %v5963_v50  ;;  %5960 = vmatmul.msk.f32.vlgmr.msrb.gmra.mxu3 %vm3545_vm4, %v3544_v0  ;;  %v8734_v36 = vld [vmem:[#allocation67_spill] sm:$0xff] }
 0x674   : > { %3645 = vmatpush.bf16.msra.mxu3 %v6723_v21  ;;  %3671 = vmatpush.bf16.msrb.mxu1 %v6727_v25  ;;  %v8684_v21 = vld [vmem:[#allocation16_spill] sm:$0xff]  ;;  %v8685_v25 = vld [vmem:[#allocation30_spill] sm:$0xff] }
 0x675   : > { %vm3537_vm5 = vcmp.gt.f32.partialorder %v3535_v55, 0.0  ;;  %v3540_v47 = vmul.f32 %v3538_v33, %v3535_v55  ;;  %v8729_v33 = vld [vmem:[#allocation61_spill] sm:$0xff] }
 0x676   : > { %v3524_v10 = vpop.f32.mrf.mxu2 }
 0x677   : > { %v7765_v41 = vsel %vm3537_vm5, %v3535_v55, %v3540_v47  ;;  %v8735_v55 = vld [vmem:[#allocation66_spill] sm:$0xff]  ;;  %v8736_v47 = vld [vmem:[#allocation68_spill] sm:$0xff] }
 0x678   : > { %5961 = vmatpush.msk.msrb.mxu0 %vm3549_vm3, %v7765_v41  ;;  %5966 = vmatpush.msk.msrb.mxu2 %vm3549_vm3, %v7765_v41 }
 0x679   : > { %5967 = vmatmul.msk.f32.vlgmr.msrb.gmra.mxu2 %vm3545_vm4, %v5963_v50  ;;  %5962 = vmatmul.msk.f32.vlgmr.msrb.gmra.mxu0 %vm3545_vm4, %v3544_v0  ;;  %v8732_v50 = vld [vmem:[#allocation64_spill] sm:$0xff]  ;;  %v8733_v0 = vld [vmem:[#allocation65_spill] sm:$0xff] }
 0x67a   : > { %3646 = vmatpush.bf16.msra.mxu3 %v6731_v27  ;;  %3672 = vmatpush.bf16.msrb.mxu1 %v6737_v34  ;;  %v8686_v27 = vld [vmem:[#allocation17_spill] sm:$0xff]  ;;  %v8687_v34 = vld [vmem:[#allocation19_spill] sm:$0xff] }
 0x67b   : > { %3658 = vmatpush.bf16.msra.mxu0 %v6742_v40  ;;  %3684 = vmatpush.bf16.msra.mxu2 %v6783_v19  ;;  %v8689_v40 = vld [vmem:[#allocation33_spill] sm:$0xff]  ;;  %v8699_v19 = vld [vmem:[#allocation38_spill] sm:$0xff] }
 0x67e   : > { %3647 = vmatpush.bf16.msra.mxu3 %v6740_v37  ;;  %3673 = vmatpush.bf16.msrb.mxu1 %v6751_v46  ;;  %v8688_v37 = vld [vmem:[#allocation18_spill] sm:$0xff]  ;;  %v8690_v46 = vld [vmem:[#allocation20_spill] sm:$0xff] }
 0x67f   : > { %3659 = vmatpush.bf16.msra.mxu0 %v6753_v48  ;;  %3685 = vmatpush.bf16.msra.mxu2 %v6799_v38  ;;  %v8691_v48 = vld [vmem:[#allocation23_spill] sm:$0xff] }
 0x680   : > { %v8701_v38 = vld [vmem:[#allocation39_spill] sm:$0xff] }
 0x682   : > { %3648 = vmatpush.bf16.msra.mxu3 %v6756_v49  ;;  %3674 = vmatpush.bf16.msrb.mxu1 %v6764_v59  ;;  %v8692_v49 = vld [vmem:[#allocation21_spill] sm:$0xff]  ;;  %v8694_v59 = vld [vmem:[#allocation22_spill] sm:$0xff] }
 0x683   : > { %3660 = vmatpush.bf16.msra.mxu0 %v6761_v57  ;;  %3686 = vmatpush.bf16.msra.mxu2 %v6813_v58  ;;  %v8693_v57 = vld [vmem:[#allocation24_spill] sm:$0xff]  ;;  %v8702_v58 = vld [vmem:[#allocation29_spill] sm:$0xff] }
 0x686   : > { %3649 = vmatpush.bf16.msra.mxu3 %v6767_v62  ;;  %3675 = vmatpush.bf16.msrb.mxu1 %v6773_v5  ;;  %v8695_v62 = vld [vmem:[#allocation36_spill] sm:$0xff] }
 0x687   : > { %3661 = vmatpush.bf16.msra.mxu0 %v6770_v3  ;;  %3687 = vmatpush.bf16.msra.mxu2 %v6830_v14  ;;  %v8696_v3 = vld [vmem:[#allocation25_spill] sm:$0xff]  ;;  %v8697_v5 = vld [vmem:[#allocation28_spill] sm:$0xff]  ;;  %v8703_v14 = vld [vmem:[#allocation31_spill] sm:$0xff] }
 0x68a   : > { %3650 = vmatpush.bf16.msra.mxu3 %v6776_v9  ;;  %3676 = vmatpush.bf16.msrb.mxu1 %v6786_v20  ;;  %v8698_v9 = vld [vmem:[#allocation26_spill] sm:$0xff]  ;;  %v8700_v20 = vld [vmem:[#allocation27_spill] sm:$0xff] }
 0x68b   : > { %3662 = vmatpush.bf16.msra.mxu0 %v8684_v21  ;;  %3688 = vmatpush.bf16.msra.mxu2 %v8685_v25  ;;  %v8737_v21 = vld [vmem:[#allocation69_spill] sm:$0xff]  ;;  %v8738_v25 = vld [vmem:[#allocation70_spill] sm:$0xff] }
 0x68e   : > { %3651 = vmatpush.bf16.msra.mxu3 %v8686_v27  ;;  %3677 = vmatpush.bf16.msrb.mxu1 %v8687_v34  ;;  %v8739_v34 = vld [vmem:[#allocation71_spill] sm:$0xff] }
 0x68f   : > { %3663 = vmatpush.bf16.msra.mxu0 %v8688_v37  ;;  %3689 = vmatpush.bf16.msra.mxu2 %v8689_v40  ;;  %v8740_v37 = vld [vmem:[#allocation72_spill] sm:$0xff]  ;;  %v8741_v40 = vld [vmem:[#allocation73_spill] sm:$0xff] }
 0x692   : > { %3652 = vmatpush.bf16.msra.mxu3 %v8690_v46  ;;  %3678 = vmatpush.bf16.msrb.mxu1 %v8691_v48  ;;  %v8742_v46 = vld [vmem:[#allocation74_spill] sm:$0xff]  ;;  %v5968_v48 = vld [vmem:[%s8141_s8 + $0x8] sm:$0xf] }
 0x693   : > { %3664 = vmatpush.bf16.msra.mxu0 %v8694_v59  ;;  %3690 = vmatpush.bf16.msra.mxu2 %v8695_v62  ;;  %v8745_v59 = vld [vmem:[#allocation75_spill] sm:$0xff]  ;;  %v8746_v62 = vld [vmem:[#allocation84_spill] sm:$0xff] }
 0x696   : > { %3697 = vmatpush.bf16.msrb.mxu3 %v8692_v49  ;;  %3723 = vmatpush.bf16.msra.mxu1 %v8693_v57  ;;  %v8743_v49 = vld [vmem:[#allocation76_spill] sm:$0xff]  ;;  %v8744_v57 = vld [vmem:[#allocation77_spill] sm:$0xff] }
 0x697   : > { %3665 = vmatpush.bf16.msra.mxu0 %v8698_v9  ;;  %3691 = vmatpush.bf16.msra.mxu2 %v8699_v19  ;;  %v8749_v9 = vld [vmem:[#allocation86_spill] sm:$0xff]  ;;  %v8750_v19 = vld [vmem:[#allocation81_spill] sm:$0xff] }
 0x69a   : > { %3698 = vmatpush.bf16.msrb.mxu3 %v8696_v3  ;;  %3724 = vmatpush.bf16.msra.mxu1 %v8697_v5  ;;  %v8747_v3 = vld [vmem:[#allocation79_spill] sm:$0xff]  ;;  %v8748_v5 = vld [vmem:[#allocation78_spill] sm:$0xff] }
 0x69b   : > { %3710 = vmatpush.bf16.msrb.mxu0 %v8700_v20  ;;  %3736 = vmatpush.bf16.msrb.mxu2 %v8701_v38  ;;  %v8751_v20 = vld [vmem:[#allocation80_spill] sm:$0xff] }
 0x69c   : > { %v8752_v38 = vld [vmem:[#allocation88_spill] sm:$0xff] }
 0x69e   : > { %3699 = vmatpush.bf16.msrb.mxu3 %v8702_v58  ;;  %3725 = vmatpush.bf16.msra.mxu1 %v8703_v14  ;;  %v8753_v58 = vld [vmem:[#allocation82_spill] sm:$0xff]  ;;  %v8754_v14 = vld [vmem:[#allocation83_spill] sm:$0xff] }
 0x69f   : > { %3711 = vmatpush.bf16.msrb.mxu0 %v8704_v45  ;;  %3737 = vmatpush.bf16.msrb.mxu2 %v8705_v51  ;;  %v8755_v45 = vld [vmem:[#allocation90_spill] sm:$0xff]  ;;  %v8756_v51 = vld [vmem:[#allocation85_spill] sm:$0xff] }
 0x6a2   : > { %3700 = vmatpush.bf16.msrb.mxu3 %v8706_v6  ;;  %3726 = vmatpush.bf16.msra.mxu1 %v8707_v35  ;;  %v8757_v6 = vld [vmem:[#allocation87_spill] sm:$0xff]  ;;  %v8758_v35 = vld [vmem:[#allocation92_spill] sm:$0xff] }
 0x6a3   : > { %3712 = vmatpush.bf16.msrb.mxu0 %v8708_v60  ;;  %3738 = vmatpush.bf16.msrb.mxu2 %v8709_v30  ;;  %v8759_v60 = vld [vmem:[#allocation89_spill] sm:$0xff]  ;;  %v8760_v30 = vld [vmem:[#allocation94_spill] sm:$0xff] }
 0x6a6   : > { %3701 = vmatpush.bf16.msrb.mxu3 %v8710_v54  ;;  %3727 = vmatpush.bf16.msra.mxu1 %v8711_v31  ;;  %v8761_v54 = vld [vmem:[#allocation91_spill] sm:$0xff]  ;;  %v8762_v31 = vld [vmem:[#allocation96_spill] sm:$0xff] }
 0x6a7   : > { %3713 = vmatpush.bf16.msrb.mxu0 %v8712_v1  ;;  %3739 = vmatpush.bf16.msrb.mxu2 %v8713_v29  ;;  %v8763_v1 = vld [vmem:[#allocation98_spill] sm:$0xff]  ;;  %v8764_v29 = vld [vmem:[#allocation93_spill] sm:$0xff] }
 0x6aa   : > { %3702 = vmatpush.bf16.msrb.mxu3 %v8714_v43  ;;  %3728 = vmatpush.bf16.msra.mxu1 %v8715_v12  ;;  %v8765_v43 = vld [vmem:[#allocation100_spill] sm:$0xff]  ;;  %v8766_v12 = vld [vmem:[#allocation95_spill] sm:$0xff] }
 0x6ab   : > { %3714 = vmatpush.bf16.msrb.mxu0 %v8716_v8  ;;  %3740 = vmatpush.bf16.msrb.mxu2 %v8717_v39  ;;  %v8767_v8 = vld [vmem:[#allocation102_spill] sm:$0xff]  ;;  %v8768_v39 = vld [vmem:[#allocation97_spill] sm:$0xff] }
 0x6ae   : > { %3703 = vmatpush.bf16.msrb.mxu3 %v8718_v42  ;;  %3729 = vmatpush.bf16.msra.mxu1 %v8719_v52  ;;  %v8769_v42 = vld [vmem:[#allocation103_spill] sm:$0xff] }
 0x6af   : > { %3715 = vmatpush.bf16.msrb.mxu0 %v8720_v32  ;;  %3741 = vmatpush.bf16.msrb.mxu2 %v8721_v18  ;;  %v8770_v52 = vld [vmem:[#allocation99_spill] sm:$0xff]  ;;  %v8771_v32 = vld [vmem:[#allocation104_spill] sm:$0xff]  ;;  %v8772_v18 = vld [vmem:[#allocation101_spill] sm:$0xff] }
 0x6b2   : > { %3704 = vmatpush.bf16.msrb.mxu3 %v8722_v11  ;;  %3730 = vmatpush.bf16.msra.mxu1 %v8723_v23  ;;  %v8773_v11 = vld [vmem:[#allocation105_spill] sm:$0xff]  ;;  %v8774_v23 = vld [vmem:[#allocation106_spill] sm:$0xff] }
 0x6b3   : > { %3716 = vmatpush.bf16.msrb.mxu0 %v8724_v44  ;;  %3742 = vmatpush.bf16.msrb.mxu2 %v8725_v26  ;;  %v8775_v44 = vld [vmem:[#allocation107_spill] sm:$0xff] }
 0x6b7   : > { %3717 = vmatpush.bf16.msrb.mxu0 %v8726_v22  ;;  %3743 = vmatpush.bf16.msrb.mxu2 %v8727_v61 }
 0x6f0   : > { %v3620_v7 = vpop.f32.mrf.mxu1 }
 0x6f1   : > { %v3643_v4 = vpack.c.bf16 %v3620_v7, %v3620_v7 }
 0x6f3   : > { %3653 = vmatmul.bf16.vlgmr.msra.gmra.mxu3 %v3643_v4  ;;  %3679 = vmatmul.bf16.vlgmr.msrb.gmra.mxu1 %v3643_v4 }
 0x6f4   : > { %5969 = vmatpush.msk.msra.mxu3 %vm3549_vm3, %v7755_v13  ;;  %3796 = vmatpush.bf16.msrb.mxu1 %v8728_v24 }
 0x6f6   : > { %v3573_v28 = vpop.f32.mrf.mxu3  ;;  %v3593_v10 = vpop.f32.mrf.mxu0 }
 0x6f7   : > { %v3596_v63 = vpack.c.bf16 %v3573_v28, %v3573_v28  ;;  %v3597_v27 = vpack.c.bf16 %v3593_v10, %v3593_v10 }
 0x6f8   : > { %3797 = vmatpush.bf16.msrb.mxu1 %v8729_v33 }
 0x6fc   : > { %3798 = vmatpush.bf16.msrb.mxu1 %v8730_v56  ;;  %v3640_v15 = vpop.f32.mrf.mxu2 }
 0x6fd   : > { %v3644_v2 = vpack.c.bf16 %v3640_v15, %v3640_v15 }
 0x6ff   : > { %3666 = vmatmul.bf16.vlgmr.msra.gmra.mxu0 %v3644_v2  ;;  %3692 = vmatmul.bf16.vlgmr.msra.gmra.mxu2 %v3644_v2 }
 0x700   : > { %5971 = vmatpush.msk.msra.mxu0 %vm3549_vm3, %v7765_v41  ;;  %3799 = vmatpush.bf16.msrb.mxu1 %v8731_v17 }
 0x701   : > { %3809 = vmatpush.bf16.msra.mxu2 %v8732_v50 }
 0x703   : > { %3705 = vmatmul.bf16.vlgmr.msrb.gmra.mxu3 %v3596_v63  ;;  %3731 = vmatmul.bf16.vlgmr.msra.gmra.mxu1 %v3596_v63 }
 0x704   : > { %3800 = vmatpush.bf16.msrb.mxu1 %v8733_v0  ;;  %3822 = vmatpush.bf16.msrb.mxu3 %v8734_v36 }
 0x705   : > { %3810 = vmatpush.bf16.msra.mxu2 %v8735_v55 }
 0x708   : > { %3801 = vmatpush.bf16.msrb.mxu1 %v8736_v47  ;;  %3823 = vmatpush.bf16.msrb.mxu3 %v8737_v21 }
 0x709   : > { %3811 = vmatpush.bf16.msra.mxu2 %v8738_v25 }
 0x70c   : > { %3802 = vmatpush.bf16.msrb.mxu1 %v8739_v34  ;;  %3824 = vmatpush.bf16.msrb.mxu3 %v8740_v37 }
 0x70d   : > { %3812 = vmatpush.bf16.msra.mxu2 %v8741_v40  ;;  %v8776_v40 = vld [vmem:[#allocation108_spill] sm:$0xff] }
 0x70f   : > { %3718 = vmatmul.bf16.vlgmr.msrb.gmra.mxu0 %v3597_v27  ;;  %3744 = vmatmul.bf16.vlgmr.msrb.gmra.mxu2 %v3597_v27 }
 0x710   : > { %3803 = vmatpush.bf16.msrb.mxu1 %v8742_v46  ;;  %3835 = vmatpush.bf16.msrb.mxu0 %v8743_v49  ;;  %v8777_v49 = vld [vmem:[#allocation109_spill] sm:$0xff] }
 0x711   : > { %3813 = vmatpush.bf16.msra.mxu2 %v8744_v57  ;;  %3825 = vmatpush.bf16.msrb.mxu3 %v8745_v59  ;;  %v8778_v57 = vld [vmem:[#allocation112_spill] sm:$0xff]  ;;  %v8779_v59 = vld [vmem:[#allocation110_spill] sm:$0xff] }
 0x713   : > { %5970 = vmatmul.msk.f32.vlgmr.msra.gmra.mxu3 %vm3545_vm4, %v5968_v48 }
 0x714   : > { %5974 = vmatpush.msk.msra.mxu1 %vm3549_vm3, %v7755_v13  ;;  %3836 = vmatpush.bf16.msrb.mxu0 %v8746_v62  ;;  %v8780_v62 = vld [vmem:[#allocation114_spill] sm:$0xff] }
 0x715   : > { %3814 = vmatpush.bf16.msra.mxu2 %v8747_v3  ;;  %3826 = vmatpush.bf16.msrb.mxu3 %v8748_v5  ;;  %v5973_v3 = vld [vmem:[%s8141_s8 + $0xc] sm:$0xf]  ;;  %v8781_v5 = vld [vmem:[#allocation111_spill] sm:$0xff] }
 0x718   : > { %3837 = vmatpush.bf16.msrb.mxu0 %v8749_v9  ;;  %v8782_v9 = vld [vmem:[#allocation116_spill] sm:$0xff] }
 0x719   : > { %3815 = vmatpush.bf16.msra.mxu2 %v8750_v19  ;;  %3827 = vmatpush.bf16.msrb.mxu3 %v8751_v20  ;;  %v8783_v19 = vld [vmem:[#allocation113_spill] sm:$0xff]  ;;  %v8784_v20 = vld [vmem:[#allocation118_spill] sm:$0xff] }
 0x71c   : > { %3838 = vmatpush.bf16.msrb.mxu0 %v8752_v38  ;;  %v8785_v38 = vld [vmem:[#allocation115_spill] sm:$0xff] }
 0x71d   : > { %3816 = vmatpush.bf16.msra.mxu2 %v8753_v58  ;;  %3828 = vmatpush.bf16.msrb.mxu3 %v8754_v14  ;;  %v8786_v58 = vld [vmem:[#allocation121_spill] sm:$0xff] }
 0x71e   : > { %v8787_v14 = vld [vmem:[#allocation117_spill] sm:$0xff] }
 0x71f   : > { %5972 = vmatmul.msk.f32.vlgmr.msra.gmra.mxu0 %vm3545_vm4, %v5968_v48 }
 0x720   : > { %3839 = vmatpush.bf16.msrb.mxu0 %v8755_v45  ;;  %v8788_v45 = vld [vmem:[#allocation123_spill] sm:$0xff] }
 0x721   : > { %5976 = vmatpush.msk.msrb.mxu2 %vm3549_vm3, %v7765_v41  ;;  %3829 = vmatpush.bf16.msrb.mxu3 %v8756_v51  ;;  %v8789_v51 = vld [vmem:[#allocation119_spill] sm:$0xff] }
 0x724   : > { %3840 = vmatpush.bf16.msrb.mxu0 %v8758_v35  ;;  %v8791_v35 = vld [vmem:[#allocation125_spill] sm:$0xff] }
 0x725   : > { %3897 = vmatpush.bf16.msra.mxu3 %v8757_v6  ;;  %v8790_v6 = vld [vmem:[#allocation120_spill] sm:$0xff] }
 0x728   : > { %3841 = vmatpush.bf16.msrb.mxu0 %v8760_v30  ;;  %v8793_v30 = vld [vmem:[#allocation127_spill] sm:$0xff] }
 0x729   : > { %3898 = vmatpush.bf16.msra.mxu3 %v8759_v60  ;;  %v8792_v60 = vld [vmem:[#allocation122_spill] sm:$0xff] }
 0x72c   : > { %3842 = vmatpush.bf16.msrb.mxu0 %v8762_v31  ;;  %v8795_v31 = vld [vmem:[#allocation124_spill] sm:$0xff] }
 0x72d   : > { %3899 = vmatpush.bf16.msra.mxu3 %v8761_v54  ;;  %v8794_v54 = vld [vmem:[#allocation128_spill] sm:$0xff] }
 0x730   : > { %3910 = vmatpush.bf16.msra.mxu0 %v8763_v1  ;;  %v8796_v1 = vld [vmem:[#allocation130_spill] sm:$0xff] }
 0x731   : > { %3900 = vmatpush.bf16.msra.mxu3 %v8764_v29  ;;  %v8797_v29 = vld [vmem:[#allocation126_spill] sm:$0xff] }
 0x734   : > { %3911 = vmatpush.bf16.msra.mxu0 %v8765_v43  ;;  %v8798_v43 = vld [vmem:[#allocation132_spill] sm:$0xff] }
 0x735   : > { %3901 = vmatpush.bf16.msra.mxu3 %v8766_v12  ;;  %v8799_v12 = vld [vmem:[#allocation129_spill] sm:$0xff] }
 0x738   : > { %3912 = vmatpush.bf16.msra.mxu0 %v8767_v8  ;;  %v8800_v8 = vld [vmem:[#allocation134_spill] sm:$0xff] }
 0x739   : > { %3902 = vmatpush.bf16.msra.mxu3 %v8768_v39  ;;  %v8801_v39 = vld [vmem:[#allocation131_spill] sm:$0xff] }
 0x73c   : > { %3913 = vmatpush.bf16.msra.mxu0 %v8769_v42  ;;  %v8802_v42 = vld [vmem:[#allocation136_spill] sm:$0xff] }
 0x73d   : > { %3903 = vmatpush.bf16.msra.mxu3 %v8770_v52  ;;  %v8803_v52 = vld [vmem:[#allocation133_spill] sm:$0xff] }
 0x740   : > { %3914 = vmatpush.bf16.msra.mxu0 %v8771_v32  ;;  %v8804_v32 = vld [vmem:[#allocation137_spill] sm:$0xff] }
 0x741   : > { %3904 = vmatpush.bf16.msra.mxu3 %v8772_v18  ;;  %v8805_v18 = vld [vmem:[#allocation135_spill] sm:$0xff] }
 0x744   : > { %3915 = vmatpush.bf16.msra.mxu0 %v8773_v11  ;;  %v8806_v11 = vld [vmem:[#allocation138_spill] sm:$0xff] }
 0x748   : > { %3916 = vmatpush.bf16.msra.mxu0 %v8774_v23  ;;  %v8807_v23 = vld [vmem:[#allocation139_spill] sm:$0xff] }
 0x74c   : > { %3917 = vmatpush.bf16.msra.mxu0 %v8775_v44 }
 0x770   : > { %v3680_v26 = vpop.f32.mrf.mxu1 }
 0x776   : > { %v3654_v22 = vpop.f32.mrf.mxu3 }
 0x778   : > { %v3682_v61 = vpop.f32.mrf.mxu1 }
 0x77c   : > { %v3667_v7 = vpop.f32.mrf.mxu0 }
 0x77d   : > { %v3668_v4 = vadd.f32 %v3667_v7, %v3654_v22 }
 0x77e   : > { %v3656_v24 = vpop.f32.mrf.mxu3 }
 0x780   : > { %v3732_v33 = vpop.f32.mrf.mxu1 }
 0x782   : > { %v3693_v56 = vpop.f32.mrf.mxu2 }
 0x783   : > { %v3694_v15 = vadd.f32 %v3693_v56, %v3680_v26 }
 0x784   : > { %v3669_v28 = vpop.f32.mrf.mxu0 }
 0x785   : > { %v3733_v2 = vadd.f32 %v3732_v33, %v3694_v15 }
 0x786   : > { %v3706_v63 = vpop.f32.mrf.mxu3 }
 0x787   : > { %v3707_v17 = vadd.f32 %v3706_v63, %v3668_v4 }
 0x788   : > { %v3734_v50 = vpop.f32.mrf.mxu1 }
 0x789   : > { %v8808_v50 = vld [vmem:[#allocation140_spill] sm:$0xff] }
 0x78a   : > { %v3695_v0 = vpop.f32.mrf.mxu2 }
 0x78b   : > { %v8809_v0 = vld [vmem:[#allocation141_spill] sm:$0xff] }
 0x78c   : > { %v3719_v36 = vpop.f32.mrf.mxu0 }
 0x78d   : > { %v3720_v55 = vadd.f32 %v3719_v36, %v3707_v17 }
 0x78e   : > { %v3708_v47 = vpop.f32.mrf.mxu3 }
 0x78f   : > { %v8810_v47 = vld [vmem:[#allocation142_spill] sm:$0xff] }
 0x792   : > { %v3745_v10 = vpop.f32.mrf.mxu2 }
 0x793   : > { %v3746_v21 = vadd.f32 %v3745_v10, %v3733_v2 }
 0x794   : > { %v3721_v25 = vpop.f32.mrf.mxu0 }
 0x795   : > { %v8812_v25 = vld [vmem:[#allocation143_spill] sm:$0xff] }
 0x796   : > { %v3771_v27 = vpop.f32.mrf.mxu3 }
 0x797   : > { %v3794_v34 = vpack.c.bf16 %v3771_v27, %v3771_v27  ;;  %v8813_v27 = vld [vmem:[#allocation146_spill] sm:$0xff] }
 0x799   : > { %3804 = vmatmul.bf16.vlgmr.msrb.gmra.mxu1 %v3794_v34  ;;  %3830 = vmatmul.bf16.vlgmr.msrb.gmra.mxu3 %v3794_v34  ;;  %v8814_v34 = vld [vmem:[#allocation145_spill] sm:$0xff] }
 0x79a   : > { %5979 = vmatpush.msk.msrb.mxu3 %vm3549_vm3, %v7755_v13  ;;  %v3747_v37 = vpop.f32.mrf.mxu2  ;;  %3923 = vmatpush.bf16.msrb.mxu1 %v8776_v40  ;;  %v8816_v40 = vld [vmem:[#allocation147_spill] sm:$0xff] }
 0x79b   : > { %v8815_v37 = vld [vmem:[#allocation148_spill] sm:$0xff] }
 0x79c   : > { %v3791_v46 = vpop.f32.mrf.mxu0 }
 0x79d   : > { %v3795_v48 = vpack.c.bf16 %v3791_v46, %v3791_v46  ;;  %v8817_v46 = vld [vmem:[#allocation150_spill] sm:$0xff] }
 0x79e   : > { %3924 = vmatpush.bf16.msrb.mxu1 %v8777_v49  ;;  %v8819_v49 = vld [vmem:[#allocation153_spill] sm:$0xff] }
 0x79f   : > { %3817 = vmatmul.bf16.vlgmr.msra.gmra.mxu2 %v3795_v48  ;;  %3843 = vmatmul.bf16.vlgmr.msrb.gmra.mxu0 %v3795_v48  ;;  %v8818_v48 = vld [vmem:[#allocation149_spill] sm:$0xff] }
 0x7a0   : > { %5981 = vmatpush.msk.msrb.mxu0 %vm3549_vm3, %v7765_v41  ;;  %3936 = vmatpush.bf16.msra.mxu2 %v8778_v57  ;;  %v8820_v57 = vld [vmem:[#allocation151_spill] sm:$0xff] }
 0x7a2   : > { %3925 = vmatpush.bf16.msrb.mxu1 %v8779_v59  ;;  %v8821_v59 = vld [vmem:[#allocation152_spill] sm:$0xff] }
 0x7a4   : > { %3937 = vmatpush.bf16.msra.mxu2 %v8780_v62  ;;  %v8822_v62 = vld [vmem:[#allocation156_spill] sm:$0xff] }
 0x7a6   : > { %3926 = vmatpush.bf16.msrb.mxu1 %v8781_v5  ;;  %v8824_v5 = vld [vmem:[#allocation158_spill] sm:$0xff] }
 0x7a8   : > { %3938 = vmatpush.bf16.msra.mxu2 %v8782_v9  ;;  %v8825_v9 = vld [vmem:[#allocation155_spill] sm:$0xff] }
 0x7a9   : > { %5975 = vmatmul.msk.f32.vlgmr.msra.gmra.mxu1 %vm3545_vm4, %v5973_v3 }
 0x7aa   : > { %3927 = vmatpush.bf16.msrb.mxu1 %v8783_v19  ;;  %v8826_v19 = vld [vmem:[#allocation160_spill] sm:$0xff] }
 0x7ac   : > { %3939 = vmatpush.bf16.msra.mxu2 %v8784_v20  ;;  %v8827_v20 = vld [vmem:[#allocation162_spill] sm:$0xff] }
 0x7ae   : > { %3928 = vmatpush.bf16.msrb.mxu1 %v8785_v38  ;;  %v8828_v38 = vld [vmem:[#allocation157_spill] sm:$0xff] }
 0x7af   : > { %5977 = vmatmul.msk.f32.vlgmr.msrb.gmra.mxu2 %vm3545_vm4, %v5973_v3  ;;  %v8823_v3 = vld [vmem:[#allocation154_spill] sm:$0xff] }
 0x7b0   : > { %3940 = vmatpush.bf16.msra.mxu2 %v8786_v58  ;;  %v8829_v58 = vld [vmem:[#allocation164_spill] sm:$0xff] }
 0x7b2   : > { %3929 = vmatpush.bf16.msrb.mxu1 %v8787_v14  ;;  %v8830_v14 = vld [vmem:[#allocation159_spill] sm:$0xff] }
 0x7b4   : > { %3941 = vmatpush.bf16.msra.mxu2 %v8788_v45  ;;  %v8831_v45 = vld [vmem:[#allocation166_spill] sm:$0xff] }
 0x7b6   : > { %3930 = vmatpush.bf16.msrb.mxu1 %v8789_v51  ;;  %v8832_v51 = vld [vmem:[#allocation161_spill] sm:$0xff] }
 0x7b8   : > { %3942 = vmatpush.bf16.msra.mxu2 %v8791_v35  ;;  %v8834_v35 = vld [vmem:[#allocation163_spill] sm:$0xff] }
 0x7ba   : > { %3998 = vmatpush.bf16.msra.mxu1 %v8790_v6  ;;  %v8833_v6 = vld [vmem:[#allocation167_spill] sm:$0xff] }
 0x7bc   : > { %3943 = vmatpush.bf16.msra.mxu2 %v8793_v30  ;;  %v8836_v30 = vld [vmem:[#allocation165_spill] sm:$0xff] }
 0x7be   : > { %3999 = vmatpush.bf16.msra.mxu1 %v8792_v60  ;;  %v8835_v60 = vld [vmem:[#allocation168_spill] sm:$0xff] }
 0x7c0   : > { %4011 = vmatpush.bf16.msrb.mxu2 %v8794_v54  ;;  %v8837_v54 = vld [vmem:[#allocation169_spill] sm:$0xff] }
 0x7c2   : > { %4000 = vmatpush.bf16.msra.mxu1 %v8795_v31  ;;  %v8838_v31 = vld [vmem:[#allocation170_spill] sm:$0xff] }
 0x7c4   : > { %4012 = vmatpush.bf16.msrb.mxu2 %v8796_v1  ;;  %v8839_v1 = vld [vmem:[#allocation171_spill] sm:$0xff] }
 0x7c6   : > { %4001 = vmatpush.bf16.msra.mxu1 %v8797_v29 }
 0x7c8   : > { %4013 = vmatpush.bf16.msrb.mxu2 %v8798_v43 }
 0x7ca   : > { %4002 = vmatpush.bf16.msra.mxu1 %v8799_v12 }
 0x7cc   : > { %4014 = vmatpush.bf16.msrb.mxu2 %v8800_v8 }
 0x7ce   : > { %4003 = vmatpush.bf16.msra.mxu1 %v8801_v39 }
 0x7d0   : > { %4015 = vmatpush.bf16.msrb.mxu2 %v8802_v42 }
 0x7d2   : > { %4004 = vmatpush.bf16.msra.mxu1 %v8803_v52 }
 0x7d4   : > { %4016 = vmatpush.bf16.msrb.mxu2 %v8804_v32 }
 0x7d6   : > { %4005 = vmatpush.bf16.msra.mxu1 %v8805_v18 }
 0x7d8   : > { %4017 = vmatpush.bf16.msrb.mxu2 %v8806_v11 }
 0x7dc   : > { %4018 = vmatpush.bf16.msrb.mxu2 %v8807_v23 }
 0x816   : > { %v3805_v44 = vpop.f32.mrf.mxu1 }
 0x81c   : > { %v3831_v26 = vpop.f32.mrf.mxu3  ;;  %v3844_v22 = vpop.f32.mrf.mxu0 }
 0x81d   : > { %v3845_v61 = vadd.f32 %v3844_v22, %v3831_v26 }
 0x81e   : > { %v3807_v7 = vpop.f32.mrf.mxu1 }
 0x81f   : > { %v3849_v4 = vadd.f32 %v3845_v61, %v3746_v21  ;;  %v8811_v21 = vld [vmem:[#allocation144_spill] sm:$0xff] }
 0x820   : > { %v8840_v61 = vld [vmem:[#allocation172_spill] sm:$0xff] }
 0x822   : > { %v3818_v24 = vpop.f32.mrf.mxu2 }
 0x823   : > { %v3819_v33 = vadd.f32 %v3818_v24, %v3805_v44 }
 0x824   : > { %v3846_v56 = vpop.f32.mrf.mxu0  ;;  %v3833_v15 = vpop.f32.mrf.mxu3 }
 0x825   : > { %v3848_v28 = vadd.f32 %v3819_v33, %v3720_v55  ;;  %v5978_v55 = vld [vmem:[%s8141_s8 + $0x10] sm:$0xf]  ;;  %v8841_v33 = vld [vmem:[#allocation173_spill] sm:$0xff] }
 0x826   : > { %v3872_v2 = vpop.f32.mrf.mxu1  ;;  %v8843_v56 = vld [vmem:[#allocation174_spill] sm:$0xff] }
 0x827   : > { %v3895_v63 = vpack.c.bf16 %v3872_v2, %v3872_v2  ;;  %v8844_v15 = vld [vmem:[#allocation178_spill] sm:$0xff]  ;;  %v8845_v2 = vld [vmem:[#allocation175_spill] sm:$0xff] }
 0x829   : > { %3905 = vmatmul.bf16.vlgmr.msra.gmra.mxu3 %v3895_v63  ;;  %3931 = vmatmul.bf16.vlgmr.msrb.gmra.mxu1 %v3895_v63  ;;  %v8846_v63 = vld [vmem:[#allocation180_spill] sm:$0xff] }
 0x82a   : > { %5984 = vmatpush.msk.msrb.mxu1 %vm3549_vm3, %v7755_v13  ;;  %v3820_v17 = vpop.f32.mrf.mxu2  ;;  %4024 = vmatpush.bf16.msra.mxu3 %v8808_v50  ;;  %v8848_v50 = vld [vmem:[#allocation182_spill] sm:$0xff] }
 0x82b   : > { %v8847_v17 = vld [vmem:[#allocation177_spill] sm:$0xff] }
 0x82e   : > { %4025 = vmatpush.bf16.msra.mxu3 %v8809_v0  ;;  %v8849_v0 = vld [vmem:[#allocation179_spill] sm:$0xff] }
 0x832   : > { %v3892_v36 = vpop.f32.mrf.mxu2  ;;  %4026 = vmatpush.bf16.msra.mxu3 %v8810_v47  ;;  %v8851_v47 = vld [vmem:[#allocation181_spill] sm:$0xff] }
 0x833   : > { %v3896_v10 = vpack.c.bf16 %v3892_v36, %v3892_v36  ;;  %v8850_v36 = vld [vmem:[#allocation185_spill] sm:$0xff] }
 0x835   : > { %3918 = vmatmul.bf16.vlgmr.msra.gmra.mxu0 %v3896_v10  ;;  %3944 = vmatmul.bf16.vlgmr.msra.gmra.mxu2 %v3896_v10  ;;  %v8852_v10 = vld [vmem:[#allocation187_spill] sm:$0xff] }
 0x836   : > { %5986 = vmatpush.msk.msra.mxu2 %vm3549_vm3, %v7765_v41  ;;  %4037 = vmatpush.bf16.msra.mxu0 %v8811_v21  ;;  %v8854_v21 = vld [vmem:[#allocation184_spill] sm:$0xff] }
 0x837   : > { %4027 = vmatpush.bf16.msra.mxu3 %v8812_v25  ;;  %v8855_v25 = vld [vmem:[#allocation189_spill] sm:$0xff] }
 0x839   : > { %5980 = vmatmul.msk.f32.vlgmr.msrb.gmra.mxu3 %vm3545_vm4, %v5978_v55 }
 0x83a   : > { %4038 = vmatpush.bf16.msra.mxu0 %v8813_v27  ;;  %v8856_v27 = vld [vmem:[#allocation186_spill] sm:$0xff] }
 0x83b   : > { %4028 = vmatpush.bf16.msra.mxu3 %v8814_v34  ;;  %v8857_v34 = vld [vmem:[#allocation191_spill] sm:$0xff] }
 0x83e   : > { %4039 = vmatpush.bf16.msra.mxu0 %v8815_v37  ;;  %v8858_v37 = vld [vmem:[#allocation192_spill] sm:$0xff] }
 0x83f   : > { %4029 = vmatpush.bf16.msra.mxu3 %v8816_v40  ;;  %v8859_v40 = vld [vmem:[#allocation188_spill] sm:$0xff] }
 0x842   : > { %4040 = vmatpush.bf16.msra.mxu0 %v8817_v46  ;;  %v8860_v46 = vld [vmem:[#allocation194_spill] sm:$0xff] }
 0x843   : > { %4030 = vmatpush.bf16.msra.mxu3 %v8818_v48  ;;  %v8861_v48 = vld [vmem:[#allocation190_spill] sm:$0xff] }
 0x845   : > { %5982 = vmatmul.msk.f32.vlgmr.msrb.gmra.mxu0 %vm3545_vm4, %v5978_v55  ;;  %v8853_v55 = vld [vmem:[#allocation183_spill] sm:$0xff] }
 0x846   : > { %4041 = vmatpush.bf16.msra.mxu0 %v8819_v49  ;;  %v8862_v49 = vld [vmem:[#allocation196_spill] sm:$0xff] }
 0x847   : > { %4031 = vmatpush.bf16.msra.mxu3 %v8820_v57  ;;  %v8863_v57 = vld [vmem:[#allocation193_spill] sm:$0xff] }
 0x84a   : > { %4042 = vmatpush.bf16.msra.mxu0 %v8822_v62  ;;  %v8865_v62 = vld [vmem:[#allocation195_spill] sm:$0xff] }
 0x84b   : > { %4099 = vmatpush.bf16.msrb.mxu3 %v8821_v59  ;;  %v8864_v59 = vld [vmem:[#allocation198_spill] sm:$0xff] }
 0x84e   : > { %4043 = vmatpush.bf16.msra.mxu0 %v8824_v5  ;;  %v8867_v5 = vld [vmem:[#allocation197_spill] sm:$0xff] }
 0x84f   : > { %4100 = vmatpush.bf16.msrb.mxu3 %v8823_v3  ;;  %v8866_v3 = vld [vmem:[#allocation200_spill] sm:$0xff] }
 0x852   : > { %4044 = vmatpush.bf16.msra.mxu0 %v8826_v19  ;;  %v8869_v19 = vld [vmem:[#allocation199_spill] sm:$0xff] }
 0x853   : > { %4101 = vmatpush.bf16.msrb.mxu3 %v8825_v9  ;;  %v8868_v9 = vld [vmem:[#allocation201_spill] sm:$0xff] }
 0x856   : > { %4112 = vmatpush.bf16.msrb.mxu0 %v8827_v20  ;;  %v8870_v20 = vld [vmem:[#allocation202_spill] sm:$0xff] }
 0x857   : > { %4102 = vmatpush.bf16.msrb.mxu3 %v8828_v38  ;;  %v8871_v38 = vld [vmem:[#allocation203_spill] sm:$0xff] }
 0x85a   : > { %4113 = vmatpush.bf16.msrb.mxu0 %v8829_v58 }
 0x85b   : > { %4103 = vmatpush.bf16.msrb.mxu3 %v8830_v14 }
 0x85e   : > { %4114 = vmatpush.bf16.msrb.mxu0 %v8831_v45 }
 0x85f   : > { %4104 = vmatpush.bf16.msrb.mxu3 %v8832_v51 }
 0x862   : > { %4115 = vmatpush.bf16.msrb.mxu0 %v8833_v6 }
 0x863   : > { %4105 = vmatpush.bf16.msrb.mxu3 %v8834_v35 }
 0x866   : > { %4116 = vmatpush.bf16.msrb.mxu0 %v8835_v60 }
 0x867   : > { %4106 = vmatpush.bf16.msrb.mxu3 %v8836_v30 }
 0x86a   : > { %4117 = vmatpush.bf16.msrb.mxu0 %v8837_v54 }
 0x86e   : > { %4118 = vmatpush.bf16.msrb.mxu0 %v8838_v31 }
 0x872   : > { %4119 = vmatpush.bf16.msrb.mxu0 %v8839_v1 }
 0x8a6   : > { %v3932_v29 = vpop.f32.mrf.mxu1 }
 0x8ac   : > { %v3906_v43 = vpop.f32.mrf.mxu3 }
 0x8ae   : > { %v3934_v12 = vpop.f32.mrf.mxu1 }
 0x8b2   : > { %v3919_v8 = vpop.f32.mrf.mxu0 }
 0x8b3   : > { %v3920_v39 = vadd.f32 %v3919_v8, %v3906_v43  ;;  %v8872_v8 = vld [vmem:[#allocation204_spill] sm:$0xff] }
 0x8b4   : > { %v3908_v42 = vpop.f32.mrf.mxu3 }
 0x8b5   : > { %v3949_v52 = vadd.f32 %v3920_v39, %v3848_v28  ;;  %v5983_v28 = vld [vmem:[%s8141_s8 + $0x14] sm:$0xf]  ;;  %v8873_v39 = vld [vmem:[#allocation205_spill] sm:$0xff] }
 0x8b8   : > { %v3945_v32 = vpop.f32.mrf.mxu2 }
 0x8b9   : > { %v3946_v18 = vadd.f32 %v3945_v32, %v3932_v29  ;;  %v8874_v32 = vld [vmem:[#allocation206_spill] sm:$0xff] }
 0x8ba   : > { %v3921_v11 = vpop.f32.mrf.mxu0 }
 0x8bb   : > { %v3950_v23 = vadd.f32 %v3946_v18, %v3849_v4  ;;  %v8842_v4 = vld [vmem:[#allocation176_spill] sm:$0xff] }
 0x8bc   : > { %v3973_v44 = vpop.f32.mrf.mxu3  ;;  %v8875_v11 = vld [vmem:[#allocation208_spill] sm:$0xff] }
 0x8bd   : > { %v3996_v26 = vpack.c.bf16 %v3973_v44, %v3973_v44  ;;  %v8877_v44 = vld [vmem:[#allocation210_spill] sm:$0xff] }
 0x8bf   : > { %4006 = vmatmul.bf16.vlgmr.msra.gmra.mxu1 %v3996_v26  ;;  %4032 = vmatmul.bf16.vlgmr.msra.gmra.mxu3 %v3996_v26  ;;  %v8878_v26 = vld [vmem:[#allocation209_spill] sm:$0xff] }
 0x8c0   : > { %5989 = vmatpush.msk.msra.mxu3 %vm3549_vm3, %v7755_v13  ;;  %v3947_v22 = vpop.f32.mrf.mxu2  ;;  %4125 = vmatpush.bf16.msra.mxu1 %v8840_v61  ;;  %v8880_v61 = vld [vmem:[#allocation211_spill] sm:$0xff] }
 0x8c1   : > { %v8879_v22 = vld [vmem:[#allocation212_spill] sm:$0xff] }
 0x8c2   : > { %v3993_v7 = vpop.f32.mrf.mxu0 }
 0x8c3   : > { %v3997_v24 = vpack.c.bf16 %v3993_v7, %v3993_v7  ;;  %v8881_v7 = vld [vmem:[#allocation214_spill] sm:$0xff] }
 0x8c4   : > { %4126 = vmatpush.bf16.msra.mxu1 %v8841_v33  ;;  %v8883_v33 = vld [vmem:[#allocation217_spill] sm:$0xff] }
 0x8c5   : > { %4019 = vmatmul.bf16.vlgmr.msrb.gmra.mxu2 %v3997_v24  ;;  %4045 = vmatmul.bf16.vlgmr.msra.gmra.mxu0 %v3997_v24  ;;  %v8882_v24 = vld [vmem:[#allocation213_spill] sm:$0xff] }
 0x8c6   : > { %5991 = vmatpush.msk.msra.mxu0 %vm3549_vm3, %v7765_v41  ;;  %4138 = vmatpush.bf16.msrb.mxu2 %v8842_v4  ;;  %v8884_v4 = vld [vmem:[#allocation215_spill] sm:$0xff] }
 0x8c8   : > { %4127 = vmatpush.bf16.msra.mxu1 %v8843_v56  ;;  %v8885_v56 = vld [vmem:[#allocation216_spill] sm:$0xff] }
 0x8ca   : > { %4139 = vmatpush.bf16.msrb.mxu2 %v8844_v15  ;;  %v8886_v15 = vld [vmem:[#allocation220_spill] sm:$0xff] }
 0x8cc   : > { %4128 = vmatpush.bf16.msra.mxu1 %v8845_v2  ;;  %v8888_v2 = vld [vmem:[#allocation222_spill] sm:$0xff] }
 0x8ce   : > { %4140 = vmatpush.bf16.msrb.mxu2 %v8846_v63  ;;  %v8889_v63 = vld [vmem:[#allocation219_spill] sm:$0xff] }
 0x8cf   : > { %5985 = vmatmul.msk.f32.vlgmr.msrb.gmra.mxu1 %vm3545_vm4, %v5983_v28 }
 0x8d0   : > { %4129 = vmatpush.bf16.msra.mxu1 %v8847_v17  ;;  %v8890_v17 = vld [vmem:[#allocation224_spill] sm:$0xff] }
 0x8d2   : > { %4141 = vmatpush.bf16.msrb.mxu2 %v8848_v50  ;;  %v8891_v50 = vld [vmem:[#allocation226_spill] sm:$0xff] }
 0x8d4   : > { %4130 = vmatpush.bf16.msra.mxu1 %v8849_v0  ;;  %v8892_v0 = vld [vmem:[#allocation221_spill] sm:$0xff] }
 0x8d5   : > { %5987 = vmatmul.msk.f32.vlgmr.msra.gmra.mxu2 %vm3545_vm4, %v5983_v28  ;;  %v8887_v28 = vld [vmem:[#allocation218_spill] sm:$0xff] }
 0x8d6   : > { %4142 = vmatpush.bf16.msrb.mxu2 %v8850_v36  ;;  %v8893_v36 = vld [vmem:[#allocation228_spill] sm:$0xff] }
 0x8d8   : > { %4131 = vmatpush.bf16.msra.mxu1 %v8851_v47  ;;  %v8894_v47 = vld [vmem:[#allocation223_spill] sm:$0xff] }
 0x8da   : > { %4143 = vmatpush.bf16.msrb.mxu2 %v8852_v10  ;;  %v8895_v10 = vld [vmem:[#allocation230_spill] sm:$0xff] }
 0x8dc   : > { %4132 = vmatpush.bf16.msra.mxu1 %v8853_v55  ;;  %v8896_v55 = vld [vmem:[#allocation225_spill] sm:$0xff] }
 0x8de   : > { %4144 = vmatpush.bf16.msrb.mxu2 %v8855_v25  ;;  %v8898_v25 = vld [vmem:[#allocation227_spill] sm:$0xff] }
 0x8e0   : > { %4200 = vmatpush.bf16.msrb.mxu1 %v8854_v21  ;;  %v8897_v21 = vld [vmem:[#allocation231_spill] sm:$0xff] }
 0x8e2   : > { %4145 = vmatpush.bf16.msrb.mxu2 %v8857_v34  ;;  %v8900_v34 = vld [vmem:[#allocation229_spill] sm:$0xff] }
 0x8e4   : > { %4201 = vmatpush.bf16.msrb.mxu1 %v8856_v27  ;;  %v8899_v27 = vld [vmem:[#allocation232_spill] sm:$0xff] }
 0x8e6   : > { %4213 = vmatpush.bf16.msra.mxu2 %v8858_v37  ;;  %v8901_v37 = vld [vmem:[#allocation233_spill] sm:$0xff] }
 0x8e8   : > { %4202 = vmatpush.bf16.msrb.mxu1 %v8859_v40  ;;  %v8902_v40 = vld [vmem:[#allocation234_spill] sm:$0xff] }
 0x8ea   : > { %4214 = vmatpush.bf16.msra.mxu2 %v8860_v46  ;;  %v8903_v46 = vld [vmem:[#allocation235_spill] sm:$0xff] }
 0x8ec   : > { %4203 = vmatpush.bf16.msrb.mxu1 %v8861_v48 }
 0x8ee   : > { %4215 = vmatpush.bf16.msra.mxu2 %v8862_v49 }
 0x8f0   : > { %4204 = vmatpush.bf16.msrb.mxu1 %v8863_v57 }
 0x8f2   : > { %4216 = vmatpush.bf16.msra.mxu2 %v8864_v59 }
 0x8f4   : > { %4205 = vmatpush.bf16.msrb.mxu1 %v8865_v62 }
 0x8f6   : > { %4217 = vmatpush.bf16.msra.mxu2 %v8866_v3 }
 0x8f8   : > { %4206 = vmatpush.bf16.msrb.mxu1 %v8867_v5 }
 0x8fa   : > { %4218 = vmatpush.bf16.msra.mxu2 %v8868_v9 }
 0x8fc   : > { %4207 = vmatpush.bf16.msrb.mxu1 %v8869_v19 }
 0x8fe   : > { %4219 = vmatpush.bf16.msra.mxu2 %v8870_v20 }
 0x902   : > { %4220 = vmatpush.bf16.msra.mxu2 %v8871_v38 }
 0x93c   : > { %v4007_v58 = vpop.f32.mrf.mxu1 }
 0x942   : > { %v4033_v14 = vpop.f32.mrf.mxu3  ;;  %v4046_v45 = vpop.f32.mrf.mxu0 }
 0x943   : > { %v4047_v51 = vadd.f32 %v4046_v45, %v4033_v14 }
 0x944   : > { %v4009_v6 = vpop.f32.mrf.mxu1 }
 0x945   : > { %v4051_v35 = vadd.f32 %v4047_v51, %v3950_v23  ;;  %v8876_v23 = vld [vmem:[#allocation207_spill] sm:$0xff]  ;;  %v8904_v51 = vld [vmem:[#allocation236_spill] sm:$0xff] }
 0x948   : > { %v4020_v60 = vpop.f32.mrf.mxu2 }
 0x949   : > { %v4021_v30 = vadd.f32 %v4020_v60, %v4007_v58 }
 0x94a   : > { %v4048_v54 = vpop.f32.mrf.mxu0  ;;  %v4035_v31 = vpop.f32.mrf.mxu3 }
 0x94b   : > { %v4050_v1 = vadd.f32 %v4021_v30, %v3949_v52  ;;  %v5988_v52 = vld [vmem:[%s8141_s8 + $0x18] sm:$0xf]  ;;  %v8905_v30 = vld [vmem:[#allocation237_spill] sm:$0xff]  ;;  %v8908_v31 = vld [vmem:[#allocation240_spill] sm:$0xff] }
 0x94c   : > { %v4074_v29 = vpop.f32.mrf.mxu1  ;;  %v8907_v54 = vld [vmem:[#allocation239_spill] sm:$0xff] }
 0x94d   : > { %v4097_v43 = vpack.c.bf16 %v4074_v29, %v4074_v29  ;;  %v8910_v29 = vld [vmem:[#allocation242_spill] sm:$0xff] }
 0x94f   : > { %4107 = vmatmul.bf16.vlgmr.msrb.gmra.mxu3 %v4097_v43  ;;  %4133 = vmatmul.bf16.vlgmr.msra.gmra.mxu1 %v4097_v43  ;;  %v8911_v43 = vld [vmem:[#allocation243_spill] sm:$0xff] }
 0x950   : > { %5994 = vmatpush.msk.msra.mxu1 %vm3549_vm3, %v7755_v13  ;;  %v4022_v12 = vpop.f32.mrf.mxu2  ;;  %4226 = vmatpush.bf16.msrb.mxu3 %v8872_v8  ;;  %v8914_v8 = vld [vmem:[#allocation246_spill] sm:$0xff] }
 0x951   : > { %v8912_v12 = vld [vmem:[#allocation244_spill] sm:$0xff] }
 0x954   : > { %4227 = vmatpush.bf16.msrb.mxu3 %v8873_v39  ;;  %v8915_v39 = vld [vmem:[#allocation247_spill] sm:$0xff] }
 0x958   : > { %v4094_v42 = vpop.f32.mrf.mxu2  ;;  %4228 = vmatpush.bf16.msrb.mxu3 %v8874_v32  ;;  %v8917_v32 = vld [vmem:[#allocation249_spill] sm:$0xff] }
 0x959   : > { %v4098_v18 = vpack.c.bf16 %v4094_v42, %v4094_v42  ;;  %v8916_v42 = vld [vmem:[#allocation248_spill] sm:$0xff] }
 0x95b   : > { %4120 = vmatmul.bf16.vlgmr.msrb.gmra.mxu0 %v4098_v18  ;;  %4146 = vmatmul.bf16.vlgmr.msrb.gmra.mxu2 %v4098_v18  ;;  %v8918_v18 = vld [vmem:[#allocation250_spill] sm:$0xff] }
 0x95c   : > { %5996 = vmatpush.msk.msrb.mxu2 %vm3549_vm3, %v7765_v41  ;;  %4239 = vmatpush.bf16.msrb.mxu0 %v8875_v11  ;;  %v8920_v11 = vld [vmem:[#allocation251_spill] sm:$0xff] }
 0x95d   : > { %4229 = vmatpush.bf16.msrb.mxu3 %v8876_v23  ;;  %v8921_v23 = vld [vmem:[#allocation255_spill] sm:$0xff] }
 0x95f   : > { %5990 = vmatmul.msk.f32.vlgmr.msra.gmra.mxu3 %vm3545_vm4, %v5988_v52 }
 0x960   : > { %4240 = vmatpush.bf16.msrb.mxu0 %v8877_v44  ;;  %v8922_v44 = vld [vmem:[#allocation256_spill] sm:$0xff] }
 0x961   : > { %4230 = vmatpush.bf16.msrb.mxu3 %v8878_v26  ;;  %v8923_v26 = vld [vmem:[#allocation261_spill] sm:$0xff] }
 0x964   : > { %4241 = vmatpush.bf16.msrb.mxu0 %v8879_v22  ;;  %v8924_v22 = vld [vmem:[#allocation259_spill] sm:$0xff] }
 0x965   : > { %4231 = vmatpush.bf16.msrb.mxu3 %v8880_v61  ;;  %v8925_v61 = vld [vmem:[#allocation265_spill] sm:$0xff] }
 0x968   : > { %4242 = vmatpush.bf16.msrb.mxu0 %v8881_v7  ;;  %v8926_v7 = vld [vmem:[#allocation263_spill] sm:$0xff] }
 0x969   : > { %4232 = vmatpush.bf16.msrb.mxu3 %v8882_v24  ;;  %v8927_v24 = vld [vmem:[#allocation269_spill] sm:$0xff] }
 0x96b   : > { %5992 = vmatmul.msk.f32.vlgmr.msra.gmra.mxu0 %vm3545_vm4, %v5988_v52  ;;  %v8919_v52 = vld [vmem:[#allocation253_spill] sm:$0xff] }
 0x96c   : > { %4243 = vmatpush.bf16.msrb.mxu0 %v8883_v33  ;;  %v8929_v33 = vld [vmem:[#allocation273_spill] sm:$0xff] }
 0x96d   : > { %4233 = vmatpush.bf16.msrb.mxu3 %v8884_v4  ;;  %v8930_v4 = vld [vmem:[#allocation271_spill] sm:$0xff] }
 0x970   : > { %4244 = vmatpush.bf16.msrb.mxu0 %v8886_v15  ;;  %v8932_v15 = vld [vmem:[#allocation275_spill] sm:$0xff] }
 0x971   : > { %4301 = vmatpush.bf16.msra.mxu3 %v8885_v56  ;;  %v8931_v56 = vld [vmem:[#allocation277_spill] sm:$0xff] }
 0x974   : > { %4245 = vmatpush.bf16.msrb.mxu0 %v8888_v2  ;;  %v8934_v2 = vld [vmem:[#allocation281_spill] sm:$0xff] }
 0x975   : > { %4302 = vmatpush.bf16.msra.mxu3 %v8887_v28  ;;  %v8933_v28 = vld [vmem:[#allocation279_spill] sm:$0xff] }
 0x978   : > { %4246 = vmatpush.bf16.msrb.mxu0 %v8890_v17 }
 0x979   : > { %4303 = vmatpush.bf16.msra.mxu3 %v8889_v63 }
 0x97c   : > { %4314 = vmatpush.bf16.msra.mxu0 %v8891_v50 }
 0x97d   : > { %4304 = vmatpush.bf16.msra.mxu3 %v8892_v0 }
 0x980   : > { %4315 = vmatpush.bf16.msra.mxu0 %v8893_v36 }
 0x981   : > { %4305 = vmatpush.bf16.msra.mxu3 %v8894_v47 }
 0x984   : > { %4316 = vmatpush.bf16.msra.mxu0 %v8895_v10 }
 0x985   : > { %4306 = vmatpush.bf16.msra.mxu3 %v8896_v55 }
 0x988   : > { %4317 = vmatpush.bf16.msra.mxu0 %v8897_v21 }
 0x989   : > { %4307 = vmatpush.bf16.msra.mxu3 %v8898_v25 }
 0x98c   : > { %4318 = vmatpush.bf16.msra.mxu0 %v8899_v27 }
 0x98d   : > { %4308 = vmatpush.bf16.msra.mxu3 %v8900_v34 }
 0x990   : > { %4319 = vmatpush.bf16.msra.mxu0 %v8901_v37 }
 0x994   : > { %4320 = vmatpush.bf16.msra.mxu0 %v8902_v40 }
 0x998   : > { %4321 = vmatpush.bf16.msra.mxu0 %v8903_v46  ;;  %v8935_v46 = vld [vmem:[#allocation252_spill] sm:$0xff] }
 0x9cc   : > { %v4134_v48 = vpop.f32.mrf.mxu1 }
 0x9d2   : > { %v4108_v49 = vpop.f32.mrf.mxu3 }
 0x9d4   : > { %v4136_v57 = vpop.f32.mrf.mxu1 }
 0x9d5   : > { %v8937_v57 = vld [vmem:[#allocation257_spill] sm:$0xff] }
 0x9d8   : > { %v4121_v59 = vpop.f32.mrf.mxu0 }
 0x9d9   : > { %v4122_v62 = vadd.f32 %v4121_v59, %v4108_v49 }
 0x9da   : > { %v4110_v3 = vpop.f32.mrf.mxu3 }
 0x9db   : > { %v4151_v5 = vadd.f32 %v4122_v62, %v4050_v1  ;;  %v8909_v1 = vld [vmem:[#allocation241_spill] sm:$0xff]  ;;  %v5998_v62 = vld [vmem:[%s8141_s8 + $0x20] sm:$0xf]  ;;  %v8938_v3 = vld [vmem:[#allocation258_spill] sm:$0xff] }
 0x9de   : > { %v4147_v9 = vpop.f32.mrf.mxu2 }
 0x9df   : > { %v4148_v19 = vadd.f32 %v4147_v9, %v4134_v48  ;;  %v8936_v48 = vld [vmem:[#allocation254_spill] sm:$0xff] }
 0x9e0   : > { %v4123_v20 = vpop.f32.mrf.mxu0  ;;  %v8940_v9 = vld [vmem:[#allocation262_spill] sm:$0xff] }
 0x9e1   : > { %v4152_v38 = vadd.f32 %v4148_v19, %v4051_v35  ;;  %v8906_v35 = vld [vmem:[#allocation238_spill] sm:$0xff]  ;;  %v8941_v19 = vld [vmem:[#allocation264_spill] sm:$0xff] }
 0x9e2   : > { %v4175_v58 = vpop.f32.mrf.mxu3  ;;  %v8942_v20 = vld [vmem:[#allocation266_spill] sm:$0xff] }
 0x9e3   : > { %v4198_v14 = vpack.c.bf16 %v4175_v58, %v4175_v58  ;;  %v8944_v58 = vld [vmem:[#allocation270_spill] sm:$0xff] }
 0x9e5   : > { %4208 = vmatmul.bf16.vlgmr.msrb.gmra.mxu1 %v4198_v14  ;;  %4234 = vmatmul.bf16.vlgmr.msrb.gmra.mxu3 %v4198_v14  ;;  %v8945_v14 = vld [vmem:[#allocation272_spill] sm:$0xff] }
 0x9e6   : > { %5999 = vmatpush.msk.msrb.mxu3 %vm3549_vm3, %v7755_v13  ;;  %v4149_v45 = vpop.f32.mrf.mxu2  ;;  %4327 = vmatpush.bf16.msrb.mxu1 %v8904_v51  ;;  %v5993_v13 = vld [vmem:[%s8141_s8 + $0x1c] sm:$0xf] }
 0x9e7   : > { %v8946_v45 = vld [vmem:[#allocation274_spill] sm:$0xff]  ;;  %v8947_v51 = vld [vmem:[#allocation276_spill] sm:$0xff] }
 0x9e8   : > { %v4195_v6 = vpop.f32.mrf.mxu0 }
 0x9e9   : > { %v4199_v60 = vpack.c.bf16 %v4195_v6, %v4195_v6  ;;  %v8948_v6 = vld [vmem:[#allocation278_spill] sm:$0xff] }
 0x9ea   : > { %4328 = vmatpush.bf16.msrb.mxu1 %v8905_v30  ;;  %v4456_v30 = vld [vmem:[%s8142_s9] sm:$0xf] }
 0x9eb   : > { %4221 = vmatmul.bf16.vlgmr.msra.gmra.mxu2 %v4199_v60  ;;  %4247 = vmatmul.bf16.vlgmr.msrb.gmra.mxu0 %v4199_v60  ;;  %v8949_v60 = vld [vmem:[#allocation280_spill] sm:$0xff] }
 0x9ec   : > { %6001 = vmatpush.msk.msrb.mxu0 %vm3549_vm3, %v7765_v41  ;;  %4340 = vmatpush.bf16.msra.mxu2 %v8906_v35  ;;  %v8913_v41 = vld [vmem:[#allocation245_spill] sm:$0xff] }
 0x9ed   : > { %4459 = vperm.xlu1 %6398, %v4456_v30  }
 0x9ee   : > { %4329 = vmatpush.bf16.msrb.mxu1 %v8907_v54 }
 0x9f0   : > { %4341 = vmatpush.bf16.msra.mxu2 %v8908_v31 }
 0x9f2   : > { %4330 = vmatpush.bf16.msrb.mxu1 %v8909_v1 }
 0x9f4   : > { %4342 = vmatpush.bf16.msra.mxu2 %v8910_v29 }
 0x9f5   : > { %5995 = vmatmul.msk.f32.vlgmr.msra.gmra.mxu1 %vm3545_vm4, %v5993_v13 }
 0x9f6   : > { %4331 = vmatpush.bf16.msrb.mxu1 %v8911_v43 }
 0x9f8   : > { %4343 = vmatpush.bf16.msra.mxu2 %v8912_v12 }
 0x9fa   : > { %4332 = vmatpush.bf16.msrb.mxu1 %v8913_v41 }
 0x9fb   : > { %5997 = vmatmul.msk.f32.vlgmr.msrb.gmra.mxu2 %vm3545_vm4, %v5993_v13 }
 0x9fc   : > { %4344 = vmatpush.bf16.msra.mxu2 %v8914_v8 }
 0x9fe   : > { %4333 = vmatpush.bf16.msrb.mxu1 %v8915_v39 }
 0xa00   : > { %4345 = vmatpush.bf16.msra.mxu2 %v8916_v42 }
 0xa02   : > { %4334 = vmatpush.bf16.msrb.mxu1 %v8917_v32 }
 0xa04   : > { %4346 = vmatpush.bf16.msra.mxu2 %v8918_v18 }
 0xa06   : > { %4402 = vmatpush.bf16.msra.mxu1 %v7616_v53  ;;  %v8928_v53 = vld [vmem:[#allocation267_spill] sm:$0xff] }
 0xa08   : > { %4347 = vmatpush.bf16.msra.mxu2 %v8920_v11 }
 0xa0a   : > { %4403 = vmatpush.bf16.msra.mxu1 %v8919_v52 }
 0xa0c   : > { %4415 = vmatpush.bf16.msrb.mxu2 %v8921_v23 }
 0xa0e   : > { %4404 = vmatpush.bf16.msra.mxu1 %v8922_v44 }
 0xa10   : > { %4416 = vmatpush.bf16.msrb.mxu2 %v8923_v26 }
 0xa12   : > { %4405 = vmatpush.bf16.msra.mxu1 %v8924_v22 }
 0xa14   : > { %4417 = vmatpush.bf16.msrb.mxu2 %v8925_v61 }
 0xa16   : > { %4406 = vmatpush.bf16.msra.mxu1 %v8926_v7 }
 0xa18   : > { %4418 = vmatpush.bf16.msrb.mxu2 %v8927_v24  ;;  %v4466_v24 = vstv %s5958_s15 }
 0xa1a   : > { %4407 = vmatpush.bf16.msra.mxu1 %v8928_v53 }
 0xa1c   : > { %4419 = vmatpush.bf16.msrb.mxu2 %v8929_v33 }
 0xa1e   : > { %4408 = vmatpush.bf16.msra.mxu1 %v8930_v4 }
 0xa20   : > { %4420 = vmatpush.bf16.msrb.mxu2 %v8931_v56 }
 0xa22   : > { %4409 = vmatpush.bf16.msra.mxu1 %v8932_v15 }
 0xa24   : > { %4421 = vmatpush.bf16.msrb.mxu2 %v8933_v28 }
 0xa28   : > { %4422 = vmatpush.bf16.msrb.mxu2 %v8934_v2 }
 0xa5f   : > { %v4460_v22 = vpop.permute.xlu1 %4459 }
 0xa62   : > { %v4209_v63 = vpop.f32.mrf.mxu1 }
 0xa68   : > { %v4235_v17 = vpop.f32.mrf.mxu3  ;;  %v4248_v50 = vpop.f32.mrf.mxu0 }
 0xa69   : > { %v4249_v0 = vadd.f32 %v4248_v50, %v4235_v17 }
 0xa6a   : > { %v4211_v36 = vpop.f32.mrf.mxu1 }
 0xa6b   : > { %v4253_v47 = vadd.f32 %v4249_v0, %v4152_v38  ;;  %v8943_v38 = vld [vmem:[#allocation268_spill] sm:$0xff] }
 0xa6e   : > { %v4222_v10 = vpop.f32.mrf.mxu2 }
 0xa6f   : > { %v4223_v55 = vadd.f32 %v4222_v10, %v4209_v63 }
 0xa70   : > { %v4250_v21 = vpop.f32.mrf.mxu0  ;;  %v4237_v25 = vpop.f32.mrf.mxu3 }
 0xa71   : > { %v4252_v27 = vadd.f32 %v4223_v55, %v4151_v5  ;;  %v8939_v5 = vld [vmem:[#allocation260_spill] sm:$0xff] }
 0xa72   : > { %v4276_v34 = vpop.f32.mrf.mxu1 }
 0xa73   : > { %v4299_v37 = vpack.c.bf16 %v4276_v34, %v4276_v34 }
 0xa75   : > { %4309 = vmatmul.bf16.vlgmr.msra.gmra.mxu3 %v4299_v37  ;;  %4335 = vmatmul.bf16.vlgmr.msrb.gmra.mxu1 %v4299_v37 }
 0xa76   : > { %v4224_v40 = vpop.f32.mrf.mxu2  ;;  %4428 = vmatpush.bf16.msra.mxu3 %v8935_v46 }
 0xa7a   : > { %4429 = vmatpush.bf16.msra.mxu3 %v8936_v48 }
 0xa7e   : > { %v4296_v49 = vpop.f32.mrf.mxu2  ;;  %4430 = vmatpush.bf16.msra.mxu3 %v8937_v57 }
 0xa7f   : > { %v4300_v59 = vpack.c.bf16 %v4296_v49, %v4296_v49 }
 0xa81   : > { %4322 = vmatmul.bf16.vlgmr.msra.gmra.mxu0 %v4300_v59  ;;  %4348 = vmatmul.bf16.vlgmr.msra.gmra.mxu2 %v4300_v59 }
 0xa82   : > { %4441 = vmatpush.bf16.msra.mxu0 %v8938_v3  ;;  %4431 = vmatpush.bf16.msra.mxu3 %v8939_v5 }
 0xa85   : > { %6000 = vmatmul.msk.f32.vlgmr.msrb.gmra.mxu3 %vm3545_vm4, %v5998_v62 }
 0xa86   : > { %4442 = vmatpush.bf16.msra.mxu0 %v8940_v9  ;;  %4432 = vmatpush.bf16.msra.mxu3 %v8941_v19 }
 0xa8a   : > { %4443 = vmatpush.bf16.msra.mxu0 %v8942_v20  ;;  %4433 = vmatpush.bf16.msra.mxu3 %v8943_v38 }
 0xa8e   : > { %4444 = vmatpush.bf16.msra.mxu0 %v8944_v58  ;;  %4434 = vmatpush.bf16.msra.mxu3 %v8945_v14 }
 0xa91   : > { %6002 = vmatmul.msk.f32.vlgmr.msrb.gmra.mxu0 %vm3545_vm4, %v5998_v62 }
 0xa92   : > { %4445 = vmatpush.bf16.msra.mxu0 %v8946_v45  ;;  %4435 = vmatpush.bf16.msra.mxu3 %v8947_v51 }
 0xa96   : > { %4446 = vmatpush.bf16.msra.mxu0 %v8948_v6 }
 0xa9a   : > { %4447 = vmatpush.bf16.msra.mxu0 %v8949_v60 }
 0xa9e   : > { %4448 = vmatpush.bf16.msra.mxu0 %v7715_v16 }
 0xaf2   : > { %v4336_v35 = vpop.f32.mrf.mxu1 }
 0xaf8   : > { %v4310_v54 = vpop.f32.mrf.mxu3 }
 0xafa   : > { %v4338_v31 = vpop.f32.mrf.mxu1 }
 0xafe   : > { %v4323_v13 = vpop.f32.mrf.mxu0 }
 0xaff   : > { %v4324_v1 = vadd.f32 %v4323_v13, %v4310_v54 }
 0xb00   : > { %v4312_v29 = vpop.f32.mrf.mxu3 }
 0xb01   : > { %v4353_v43 = vadd.f32 %v4324_v1, %v4252_v27 }
 0xb04   : > { %v4349_v12 = vpop.f32.mrf.mxu2 }
 0xb05   : > { %v4350_v41 = vadd.f32 %v4349_v12, %v4336_v35 }
 0xb06   : > { %v4325_v8 = vpop.f32.mrf.mxu0 }
 0xb07   : > { %v4354_v39 = vadd.f32 %v4350_v41, %v4253_v47 }
 0xb08   : > { %v4377_v42 = vpop.f32.mrf.mxu3 }
 0xb09   : > { %v4400_v32 = vpack.c.bf16 %v4377_v42, %v4377_v42 }
 0xb0b   : > { %4436 = vmatmul.bf16.vlgmr.msra.gmra.mxu3 %v4400_v32  ;;  %4410 = vmatmul.bf16.vlgmr.msra.gmra.mxu1 %v4400_v32 }
 0xb0c   : > { %v4351_v16 = vpop.f32.mrf.mxu2 }
 0xb0e   : > { %v4397_v18 = vpop.f32.mrf.mxu0 }
 0xb0f   : > { %v4401_v52 = vpack.c.bf16 %v4397_v18, %v4397_v18 }
 0xb11   : > { %4423 = vmatmul.bf16.vlgmr.msrb.gmra.mxu2 %v4401_v52  ;;  %4449 = vmatmul.bf16.vlgmr.msra.gmra.mxu0 %v4401_v52 }
 0xb88   : > { %v4411_v11 = vpop.f32.mrf.mxu1 }
 0xb8e   : > { %v4437_v23 = vpop.f32.mrf.mxu3  ;;  %v4450_v44 = vpop.f32.mrf.mxu0 }
 0xb8f   : > { %v4451_v26 = vadd.f32 %v4450_v44, %v4437_v23 }
 0xb90   : > { %v4413_v61 = vpop.f32.mrf.mxu1 }
 0xb91   : > { %v4455_v7 = vadd.f32 %v4451_v26, %v4354_v39 }
 0xb93   : > { %v4463_v53 = vadd.f32 %v4460_v22, %v4455_v7 }
 0xb94   : > { %v4424_v33 = vpop.f32.mrf.mxu2 }
 0xb95   : > { %v4468_v4 = vmul.f32 %v4466_v24, %v4463_v53  ;;  %v4425_v56 = vadd.f32 %v4424_v33, %v4411_v11  ;;  %vm4465_vm6 = vcmp.gt.f32.partialorder %v4463_v53, 0.0 }
 0xb96   : > { %v4452_v15 = vpop.f32.mrf.mxu0  ;;  %v4439_v28 = vpop.f32.mrf.mxu3 }
 0xb97   : > { %v4454_v2 = vadd.f32 %v4425_v56, %v4353_v43  ;;  %v4470_v63 = vsel %vm4465_vm6, %v4463_v53, %v4468_v4 }
 0xb98   : > { %v4473_v0 = vrot.slane %v4470_v63, 4 }
 0xb99   : > { %v4462_v17 = vadd.f32 %v4460_v22, %v4454_v2 }
 0xb9b   : > { %vm4464_vm7 = vcmp.gt.f32.partialorder %v4462_v17, 0.0  ;;  %v4467_v50 = vmul.f32 %v4466_v24, %v4462_v17 }
 0xb9c   : > { %v4426_v36 = vpop.f32.mrf.mxu2 }
 0xb9d   : > { %v4469_v47 = vsel %vm4464_vm7, %v4462_v17, %v4467_v50 }
 0xb9e   : > { %v4474_v10 = vsel %vm3549_vm3, %v4469_v47, %v4473_v0 }
 0xb9f   : > { %4476 = vst [vmem:[%s509_s25] sm:$0xff] %v4474_v10 }
 0xba0 PF: > { %s26_s21 = sadd.s32 1, %s6558_s21  }
 0xba1   : > { %p23_p7 = scmp.ge.s32.totalorder %s26_s21, 4  }
 0xba3   :  { %25 = sbr.rel (!%p23_p7) target bundleno = 7 (0x7), region = 147 }
 0xba8   :  { %4498 = vsyncpa [#allocation4], 1 }
 0xba9   :  { %4500 = vsyncpa [#allocation4 + $0x1], 1 }
 0xbaa   :  { %4501 = vsyncpa [#allocation7], 1 }
 0xbab   :  { %4502 = vsyncpa [#allocation10], 1 }
 0xbac   :  { %4503 = vsyncpa [#allocation5], 1 }
 0xbad   :  { %4505 = vsyncpa [#allocation5 + $0x1], 1 }

</bundles_post_ra>
